<compile_context>
chip_gen: v7x
topology: tpu7x:2x2x1
jax: 0.10.0
libtpu: 0.0.40
codegen_flags: <defaults>
</compile_context>

<pallas_src>
import math

import jax
import jax.numpy as jnp
from jax import lax
from jax.experimental import pallas as pl
from jax.experimental.pallas import tpu as pltpu

EPS = 1e-5  # GroupNorm eps (PyTorch default)


def _swish(z):
    return z * (1.0 / (1.0 + jnp.exp(-z)))


# ----------------------------------------------------------------- roll calibration
_ROLL_MODE = None


def _get_roll_mode():
    """Determine pltpu.roll availability / direction once (tiny probe kernel)."""
    global _ROLL_MODE
    if _ROLL_MODE is not None:
        return _ROLL_MODE
    try:
        v = jnp.arange(8 * 256, dtype=jnp.float32).reshape(8, 256)

        def probe(x_ref, o_ref):
            o_ref[...] = pltpu.roll(x_ref[...], shift=3, axis=1)

        out = jax.block_until_ready(
            pl.pallas_call(probe,
                           out_shape=jax.ShapeDtypeStruct((8, 256), jnp.float32))(v))
        if bool(jnp.array_equal(out, jnp.roll(v, 3, axis=1))):
            _ROLL_MODE = ("pltpu", True)      # same convention as jnp.roll
        elif bool(jnp.array_equal(out, jnp.roll(v, -3, axis=1))):
            _ROLL_MODE = ("pltpu", False)     # opposite convention
        else:
            _ROLL_MODE = ("jnp", True)
    except Exception:
        _ROLL_MODE = ("jnp", True)            # fall back to concat/slice roll
    return _ROLL_MODE


# ----------------------------------------------------------------------------- kernel
def _make_kernel(H, W, C, n_head, with_attn, bt, roll_mode):
    HW = H * W
    # tap order k = ky*3 + kx ; flat-index offset of the sampled input for that tap
    shifts = [(ky - 1) * W + (kx - 1) for ky in range(3) for kx in range(3)]
    roll_impl, roll_like_jnp = roll_mode

    def kernel(*refs):
        if with_attn:
            (x_ref, temb_ref, gmat_ref, mask_ref, w1_ref, w2_ref, pvec_ref,
             wqkv_ref, wout_ref, o_ref) = refs
        else:
            (x_ref, temb_ref, gmat_ref, mask_ref, w1_ref, w2_ref, pvec_ref,
             o_ref) = refs

        gmat = gmat_ref[...]                                    # (C, C) group-average matrix
        # boundary masks for the 9 conv taps, hoisted out of all loops (bf16 {0,1})
        mrows = [mask_ref[k:k + 1, :] for k in range(9)]        # each (1, HW)

        def col(p):                                             # (C, 1) parameter column
            return pvec_ref[:, p:p + 1]

        def lane_roll(a, d):
            # out[:, i] = a[:, (i + d) % HW]
            if roll_impl == "pltpu":
                s = (-d) % HW if roll_like_jnp else d % HW
                return pltpu.roll(a, shift=s, axis=1)
            return jnp.roll(a, -d, axis=1)

        def group_norm(z, gamma, beta):
            # z: (C, HW) channel-major.  Two-pass (mean, then centered 2nd moment)
            # for stability; group averaging via one tiny (C,C)x(C,1) matmul.
            m = jnp.mean(z, axis=1, keepdims=True)              # (C,1)
            gm = jnp.dot(gmat, m, preferred_element_type=jnp.float32)
            zc = z - gm
            v = jnp.mean(zc * zc, axis=1, keepdims=True)        # (C,1)
            gv = jnp.dot(gmat, v, preferred_element_type=jnp.float32)
            inv = lax.rsqrt(gv + EPS)
            return zc * (inv * gamma) + beta

        def swish(z):
            # z * sigmoid(z) via EUP tanh: no divide, bit-stable sign() inputs.
            return z * (0.5 * jnp.tanh(0.5 * z) + 0.5)

        def sign(z):                                            # BinaryActivation forward value
            return jnp.where(z > 0.0, 1.0, jnp.where(z < 0.0, -1.0, 0.0))

        def conv3x3(sgn, w_ref, scale):
            # 3x3 "same" conv of +-1/0 activations as ONE (C,9C)x(9C,HW) bf16 matmul.
            # Patches via lane-axis rolls (f32 roll -> cast bf16 -> boundary mask);
            # no padded scratch, no strided-slice relayouts.
            taps = []
            for k, d in enumerate(shifts):
                t = sgn if d == 0 else lane_roll(sgn, d)
                t = t.astype(jnp.bfloat16)                      # exact {-1, 0, +1}
                if k != 4:                                      # centre tap needs no mask
                    t = t * mrows[k]
                taps.append(t)
            patches = jnp.concatenate(taps, axis=0)             # (9C, HW) bf16
            acc = jnp.dot(w_ref[...], patches,
                          preferred_element_type=jnp.float32)   # (C, HW) f32, K = 9C
            return acc * scale                                  # per-out-channel mean|w|

        def bi_block(z, w_ref, p0):
            gamma, beta = col(p0), col(p0 + 1)
            mv, alpha = col(p0 + 2), col(p0 + 3)                # TaR shift, PReLU weight
            rb0, rb1 = col(p0 + 4), col(p0 + 5)                 # RPReLU biases
            scale = col(p0 + 6)                                 # binary-conv scale
            y = swish(group_norm(z, gamma, beta))               # GroupNorm + Swish (+Dropout=Id)
            s = sign(y + mv)                                    # LearnableBias + BinaryActivation
            c = conv3x3(s, w_ref, scale)                        # HardBinaryConv (bias=False)
            c = c + rb0
            c = jnp.where(c >= 0.0, c, alpha * c)               # PReLU
            c = c + rb1
            return c + y                                        # BIConv residual (adds its input)

        for b in range(bt):                                     # images in this grid step
            x = x_ref[b]                                        # (C, HW) f32, lane-dense
            h = bi_block(x, w1_ref, 0)                          # block1
            h = h + temb_ref[b]                                 # (C,1) timestep shift
            h = bi_block(h, w2_ref, 7)                          # block2
            res = h + x                                         # resnet skip (res_conv = Identity)

            if with_attn:
                nz = group_norm(res, col(14), col(15))
                qkv = jnp.dot(wqkv_ref[...], nz,
                              preferred_element_type=jnp.float32)        # (3C, HW) 1x1 conv
                hd = C // n_head
                inv_sc = 1.0 / math.sqrt(float(C))
                heads = []
                for n in range(n_head):
                    b0 = n * 3 * hd
                    q = qkv[b0:b0 + hd, :]
                    k = qkv[b0 + hd:b0 + 2 * hd, :]
                    v = qkv[b0 + 2 * hd:b0 + 3 * hd, :]
                    sc = lax.dot_general(q, k, (((0,), (0,)), ((), ())),
                                         preferred_element_type=jnp.float32)
                    sc = sc * inv_sc                                      # (HWq, HWk)
                    sc = sc - jnp.max(sc, axis=-1, keepdims=True)
                    p = jnp.exp(sc)
                    p = p * pl.reciprocal(jnp.sum(p, axis=-1, keepdims=True),
                                          approx=True)                    # softmax over keys
                    heads.append(lax.dot_general(
                        v, p, (((1,), (1,)), ((), ())),
                        preferred_element_type=jnp.float32))              # (hd, HWq)
                av = heads[0] if n_head == 1 else jnp.concatenate(heads, axis=0)
                proj = jnp.dot(wout_ref[...], av,
                               preferred_element_type=jnp.float32) + col(16)
                res = res + proj                                          # attention residual

            o_ref[b] = res                                      # lane-dense (C, HW) store

    return kernel


# ----------------------------------------------------------------------------- wrapper
def bi_resnet_block_with_attn(x, time_emb, t, params, *, norm_groups,
                              with_attn, n_head=1, batch_tile=1):
    """Forward pass of BI_ResnetBlocWithAttn (inference forward values)."""
    B, C, H, W = x.shape
    HW = H * W
    f32 = jnp.float32
    bf16 = jnp.bfloat16
    assert B % batch_tile == 0

    # --- tiny parameter prep (weight-only, O(C^2)) --------------------------------
    def sign_w_im2col(w):
        # HardBinaryConv sign weights (scale factored out), laid out
        # (co, ky, kx, ci) -> (C, 9C) so K matches the tap-major patch rows.
        ws = jnp.sign(w.astype(f32))
        return jnp.transpose(ws, (0, 2, 3, 1)).reshape(C, 9 * C).astype(bf16)

    def wscale(w):
        return jnp.mean(jnp.abs(w.astype(f32)), axis=(1, 2, 3))            # (C,)

    w1s, w2s = sign_w_im2col(params["conv1_w"]), sign_w_im2col(params["conv2_w"])

    # timestep_func = Linear(Swish(time_emb)) -> per-(batch, channel) shift
    te = _swish(time_emb.astype(f32))
    temb = te @ params["time_w"].T.astype(f32) + params["time_b"].astype(f32)
    temb = temb[:, :, None]                                                 # (B, C, 1)

    # group-averaging matrix for in-kernel GroupNorm statistics
    gs = C // norm_groups
    gid = jnp.arange(C) // gs
    gmat = (gid[:, None] == gid[None, :]).astype(f32) / float(gs)           # (C, C)

    # boundary-validity masks for the 9 conv taps (tap k = ky*3 + kx)
    ii = jnp.arange(HW)
    hh, ww = ii // W, ii % W
    mrows = []
    for ky in range(3):
        for kx in range(3):
            dy, dx = ky - 1, kx - 1
            mrows.append((hh + dy >= 0) & (hh + dy < H) &
                         (ww + dx >= 0) & (ww + dx < W))
    masks = jnp.stack(mrows, axis=0).astype(bf16)                           # (9, HW)

    def colv(v):
        return v.reshape(C).astype(f32)

    cols = [
        colv(params["gn1_g"]), colv(params["gn1_b"]),
        colv(params["move1"][t]), colv(params["prelu1"][t]),
        colv(params["rp1_b0"][t]), colv(params["rp1_b1"][t]),
        wscale(params["conv1_w"]),
        colv(params["gn2_g"]), colv(params["gn2_b"]),
        colv(params["move2"][t]), colv(params["prelu2"][t]),
        colv(params["rp2_b0"][t]), colv(params["rp2_b1"][t]),
        wscale(params["conv2_w"]),
    ]
    if with_attn:
        cols += [colv(params["attn_gn_g"]), colv(params["attn_gn_b"]),
                 colv(params["attn_out_b"])]
    pvec = jnp.stack(cols, axis=1)                                          # (C, P)
    P = pvec.shape[1]

    x_flat = x.reshape(B, C, HW).astype(f32)      # free reshape: NCHW is (B, C, H*W)

    inputs = [x_flat, temb, gmat, masks, w1s, w2s, pvec]
    in_specs = [
        pl.BlockSpec((batch_tile, C, HW), lambda i: (i, 0, 0)),
        pl.BlockSpec((batch_tile, C, 1), lambda i: (i, 0, 0)),
        pl.BlockSpec((C, C), lambda i: (0, 0)),
        pl.BlockSpec((9, HW), lambda i: (0, 0)),
        pl.BlockSpec((C, 9 * C), lambda i: (0, 0)),
        pl.BlockSpec((C, 9 * C), lambda i: (0, 0)),
        pl.BlockSpec((C, P), lambda i: (0, 0)),
    ]
    if with_attn:
        wqkv = params["attn_qkv_w"].reshape(3 * C, C).astype(f32)           # (3C, C)
        wout = params["attn_out_w"].reshape(C, C).astype(f32)               # (C, C)
        inputs += [wqkv, wout]
        in_specs += [pl.BlockSpec((3 * C, C), lambda i: (0, 0)),
                     pl.BlockSpec((C, C), lambda i: (0, 0))]

    kernel = _make_kernel(H, W, C, n_head, with_attn, batch_tile, _get_roll_mode())

    out = pl.pallas_call(
        kernel,
        out_shape=jax.ShapeDtypeStruct((B, C, HW), f32),
        grid_spec=pltpu.PrefetchScalarGridSpec(
            num_scalar_prefetch=0,
            grid=(B // batch_tile,),
            in_specs=in_specs,
            out_specs=pl.BlockSpec((batch_tile, C, HW), lambda i: (i, 0, 0)),
        ),
        compiler_params=pltpu.CompilerParams(
            dimension_semantics=("parallel",)),
    )(*inputs)

    return out.reshape(B, C, H, W)


# ----------------------------------------------------------------------------- reference
def _group_norm_ref(x, groups, gamma, beta):
    B, C, H, W = x.shape
    xg = x.reshape(B, groups, C // groups, H, W)
    m = jnp.mean(xg, axis=(2, 3, 4), keepdims=True)
    v = jnp.mean((xg - m) ** 2, axis=(2, 3, 4), keepdims=True)
    xn = ((xg - m) / jnp.sqrt(v + EPS)).reshape(B, C, H, W)
    return xn * gamma[None, :, None, None] + beta[None, :, None, None]


def _biconv_ref(x, move_b, w, alpha, rb0, rb1):
    out = x + move_b[None, :, None, None]
    out = jnp.sign(out)
    scale = jnp.mean(jnp.abs(w), axis=(1, 2, 3), keepdims=True)
    wb = scale * jnp.sign(w)
    out = lax.conv_general_dilated(
        out, wb, window_strides=(1, 1), padding=((1, 1), (1, 1)),
        dimension_numbers=("NCHW", "OIHW", "NCHW"))
    out = out + rb0[None, :, None, None]
    out = jnp.where(out >= 0, out, alpha[None, :, None, None] * out)
    out = out + rb1[None, :, None, None]
    return out + x


def _reference_forward(x, time_emb, t, params, *, norm_groups, with_attn,
                       n_head=1, risky_tol=1e-5):
    """Pure-JAX reference.  Also returns the number of 'risky' sign() arguments
    (within risky_tol of 0) whose decision could legitimately flip under fp
    reordering between kernel and reference."""
    B, C, H, W = x.shape
    y1 = _swish(_group_norm_ref(x, norm_groups, params["gn1_g"], params["gn1_b"]))
    a1 = y1 + params["move1"][t][None, :, None, None]
    h = _biconv_ref(y1, params["move1"][t], params["conv1_w"], params["prelu1"][t],
                    params["rp1_b0"][t], params["rp1_b1"][t])
    temb = _swish(time_emb) @ params["time_w"].T + params["time_b"]
    h = h + temb[:, :, None, None]
    y2 = _swish(_group_norm_ref(h, norm_groups, params["gn2_g"], params["gn2_b"]))
    a2 = y2 + params["move2"][t][None, :, None, None]
    h2 = _biconv_ref(y2, params["move2"][t], params["conv2_w"], params["prelu2"][t],
                     params["rp2_b0"][t], params["rp2_b1"][t])
    res = h2 + x
    n_risky = int(jnp.sum(jnp.abs(a1) < risky_tol) + jnp.sum(jnp.abs(a2) < risky_tol))
    if not with_attn:
        return res, n_risky

    nz = _group_norm_ref(res, norm_groups, params["attn_gn_g"], params["attn_gn_b"])
    wqkv = params["attn_qkv_w"].reshape(3 * C, C)
    qkv = jnp.einsum("oc,bchw->bohw", wqkv, nz)
    hd = C // n_head
    qkv = qkv.reshape(B, n_head, 3 * hd, H, W)
    q, k, v = qkv[:, :, :hd], qkv[:, :, hd:2 * hd], qkv[:, :, 2 * hd:]
    attn = jnp.einsum("bnchw,bncyx->bnhwyx", q, k) * (1.0 / math.sqrt(float(C)))
    attn = attn.reshape(B, n_head, H, W, H * W)
    attn = jax.nn.softmax(attn, axis=-1)
    attn = attn.reshape(B, n_head, H, W, H, W)
    out = jnp.einsum("bnhwyx,bncyx->bnchw", attn, v).reshape(B, C, H, W)
    wout = params["attn_out_w"].reshape(C, C)
    out = jnp.einsum("oc,bchw->bohw", wout, out) + params["attn_out_b"][None, :, None, None]
    return out + res, n_risky


# ----------------------------------------------------------------------------- demo
if __name__ == "__main__":
    B, C, H, W = 2, 32, 16, 16
    NORM_GROUPS = 8
    EMB = 64            # timestep_level_emb_dim
    DYNAMIC_GROUP = 5
    T_IDX = 3           # dynamic group index t (host-side int, like the ModuleDict key)
    N_HEAD = 1

    keys = iter(jax.random.split(jax.random.PRNGKey(0), 24))

    def nrm(shape, s=1.0):
        return s * jax.random.normal(next(keys), shape, jnp.float32)

    def uni(shape, bound):
        return jax.random.uniform(next(keys), shape, jnp.float32, -bound, bound)

    cb = 1.0 / math.sqrt(9 * C)
    params = {
        "time_w": uni((C, EMB), 1.0 / math.sqrt(EMB)),
        "time_b": uni((C,), 1.0 / math.sqrt(EMB)),
        "gn1_g": 1.0 + nrm((C,), 0.1),
        "gn1_b": nrm((C,), 0.1),
        "move1": nrm((DYNAMIC_GROUP, C), 0.3),
        "conv1_w": uni((C, C, 3, 3), cb),
        "prelu1": 0.25 + nrm((DYNAMIC_GROUP, C), 0.05),
        "rp1_b0": nrm((DYNAMIC_GROUP, C), 0.2),
        "rp1_b1": nrm((DYNAMIC_GROUP, C), 0.2),
        "gn2_g": 1.0 + nrm((C,), 0.1),
        "gn2_b": nrm((C,), 0.1),
        "move2": nrm((DYNAMIC_GROUP, C), 0.3),
        "conv2_w": uni((C, C, 3, 3), cb),
        "prelu2": 0.25 + nrm((DYNAMIC_GROUP, C), 0.05),
        "rp2_b0": nrm((DYNAMIC_GROUP, C), 0.2),
        "rp2_b1": nrm((DYNAMIC_GROUP, C), 0.2),
        "attn_gn_g": 1.0 + nrm((C,), 0.1),
        "attn_gn_b": nrm((C,), 0.1),
        "attn_qkv_w": uni((3 * C, C, 1, 1), 1.0 / math.sqrt(C)),
        "attn_out_w": uni((C, C, 1, 1), 1.0 / math.sqrt(C)),
        "attn_out_b": uni((C,), 1.0 / math.sqrt(C)),
    }

    x = jax.random.normal(next(keys), (B, C, H, W), jnp.float32)
    time_emb = jax.random.normal(next(keys), (B, EMB), jnp.float32)

    for with_attn in (False, True):
        out = bi_resnet_block_with_attn(
            x, time_emb, T_IDX, params,
            norm_groups=NORM_GROUPS, with_attn=with_attn, n_head=N_HEAD,
            batch_tile=1)
        out = jax.block_until_ready(out)
        assert out.shape == (B, C, H, W), out.shape

        ref, n_risky = _reference_forward(
            x, time_emb, T_IDX, params,
            norm_groups=NORM_GROUPS, with_attn=with_attn, n_head=N_HEAD)
        ref = jax.block_until_ready(ref)

        err = jnp.abs(out - ref)
        tol = 4e-3 + 4e-3 * jnp.abs(ref)
        n_bad = int(jnp.sum((err > tol).astype(jnp.int32)))
        if n_risky == 0:
            # No sign() argument is near 0 -> every element must match tightly.
            assert n_bad == 0, (with_attn, n_bad, float(jnp.max(err)))
        else:
            # A borderline sign() decision may flip under fp reordering; each flip
            # perturbs a 3x3/5x5 x C neighbourhood plus a small diffuse attention
            # term, so require the bulk of elements to stay tight.
            med = float(jnp.median(err))
            assert n_bad <= err.size // 8 and med <= 1e-3, \
                (with_attn, n_bad, n_risky, med)

    print("KERNEL_OK")
</pallas_src>

<mosaic_0001>
module attributes {stable_mosaic.version = 11 : i64} {
  func.func @probe(%arg0: memref<8x256xf32, #tpu.memory_space<vmem>>, %arg1: memref<8x256xf32, #tpu.memory_space<vmem>>) attributes {dimension_semantics = [], scalar_prefetch = 0 : i64, scratch_operands = 0 : i64, tpu.core_type = #tpu.core_type<tc>} {
    %c0 = arith.constant 0 : index
    %c0_0 = arith.constant 0 : index
    %0 = vector.load %arg0[%c0, %c0_0] : memref<8x256xf32, #tpu.memory_space<vmem>>, vector<8x256xf32>
    %c3_i32 = arith.constant 3 : i32
    %1 = tpu.dynamic_rotate %0 by %c3_i32 dim 1 : vector<8x256xf32>, i32 -> vector<8x256xf32>
    %c0_1 = arith.constant 0 : index
    %c0_2 = arith.constant 0 : index
    %2 = vector.load %arg1[%c0_1, %c0_2] : memref<8x256xf32, #tpu.memory_space<vmem>>, vector<8x256xf32>
    tpu.vector_store %arg1[%c0_1, %c0_2], %1 {strides = array<i32>} : memref<8x256xf32, #tpu.memory_space<vmem>>, vector<8x256xf32>,
    return
  }
}

module attributes {stable_mosaic.version = 11 : i64} {
  func.func @kernel(%arg0: i32, %arg1: memref<1x32x256xf32, #tpu.memory_space<vmem>>, %arg2: memref<1x32x1xf32, #tpu.memory_space<vmem>>, %arg3: memref<32x32xf32, #tpu.memory_space<vmem>>, %arg4: memref<9x256xbf16, #tpu.memory_space<vmem>>, %arg5: memref<32x288xbf16, #tpu.memory_space<vmem>>, %arg6: memref<32x288xbf16, #tpu.memory_space<vmem>>, %arg7: memref<32x14xf32, #tpu.memory_space<vmem>>, %arg8: memref<1x32x256xf32, #tpu.memory_space<vmem>>) attributes {dimension_semantics = [#tpu.dimension_semantics<parallel>], iteration_bounds = array<i64: 2>, scalar_prefetch = 0 : i64, scratch_operands = 0 : i64, tpu.core_type = #tpu.core_type<tc>, window_params = [{transform_indices = @transform_0, window_bounds = array<i64: 1, 32, 256>}, {transform_indices = @transform_1, window_bounds = array<i64: 1, 32, 1>}, {pipeline_mode = #tpu.pipeline_mode<synchronous>, transform_indices = @transform_2, window_bounds = array<i64: 32, 32>}, {pipeline_mode = #tpu.pipeline_mode<synchronous>, transform_indices = @transform_3, window_bounds = array<i64: 9, 256>}, {pipeline_mode = #tpu.pipeline_mode<synchronous>, transform_indices = @transform_4, window_bounds = array<i64: 32, 288>}, {pipeline_mode = #tpu.pipeline_mode<synchronous>, transform_indices = @transform_5, window_bounds = array<i64: 32, 288>}, {pipeline_mode = #tpu.pipeline_mode<synchronous>, transform_indices = @transform_6, window_bounds = array<i64: 32, 14>}, {transform_indices = @transform_7, window_bounds = array<i64: 1, 32, 256>}]} {
    %c0 = arith.constant 0 : index
    %c0_0 = arith.constant 0 : index
    %0 = vector.load %arg3[%c0, %c0_0] : memref<32x32xf32, #tpu.memory_space<vmem>>, vector<32x32xf32>
    %c0_1 = arith.constant 0 : index
    %c0_2 = arith.constant 0 : index
    %1 = vector.load %arg4[%c0_1, %c0_2] : memref<9x256xbf16, #tpu.memory_space<vmem>>, vector<1x256xbf16>
    %c1 = arith.constant 1 : index
    %c0_3 = arith.constant 0 : index
    %2 = vector.load %arg4[%c1, %c0_3] : memref<9x256xbf16, #tpu.memory_space<vmem>>, vector<1x256xbf16>
    %c2 = arith.constant 2 : index
    %c0_4 = arith.constant 0 : index
    %3 = vector.load %arg4[%c2, %c0_4] : memref<9x256xbf16, #tpu.memory_space<vmem>>, vector<1x256xbf16>
    %c3 = arith.constant 3 : index
    %c0_5 = arith.constant 0 : index
    %4 = vector.load %arg4[%c3, %c0_5] : memref<9x256xbf16, #tpu.memory_space<vmem>>, vector<1x256xbf16>
    %c5 = arith.constant 5 : index
    %c0_6 = arith.constant 0 : index
    %5 = vector.load %arg4[%c5, %c0_6] : memref<9x256xbf16, #tpu.memory_space<vmem>>, vector<1x256xbf16>
    %c6 = arith.constant 6 : index
    %c0_7 = arith.constant 0 : index
    %6 = vector.load %arg4[%c6, %c0_7] : memref<9x256xbf16, #tpu.memory_space<vmem>>, vector<1x256xbf16>
    %c7 = arith.constant 7 : index
    %c0_8 = arith.constant 0 : index
    %7 = vector.load %arg4[%c7, %c0_8] : memref<9x256xbf16, #tpu.memory_space<vmem>>, vector<1x256xbf16>
    %c8 = arith.constant 8 : index
    %c0_9 = arith.constant 0 : index
    %8 = vector.load %arg4[%c8, %c0_9] : memref<9x256xbf16, #tpu.memory_space<vmem>>, vector<1x256xbf16>
    %c0_10 = arith.constant 0 : index
    %c0_11 = arith.constant 0 : index
    %c0_12 = arith.constant 0 : index
    %9 = vector.load %arg1[%c0_10, %c0_11, %c0_12] : memref<1x32x256xf32, #tpu.memory_space<vmem>>, vector<1x32x256xf32>
    %10 = vector.shape_cast %9 : vector<1x32x256xf32> to vector<32x256xf32>
    %c0_13 = arith.constant 0 : index
    %c0_14 = arith.constant 0 : index
    %11 = vector.load %arg7[%c0_13, %c0_14] : memref<32x14xf32, #tpu.memory_space<vmem>>, vector<32x1xf32>
    %c0_15 = arith.constant 0 : index
    %c1_16 = arith.constant 1 : index
    %12 = vector.load %arg7[%c0_15, %c1_16] : memref<32x14xf32, #tpu.memory_space<vmem>>, vector<32x1xf32>
    %c0_17 = arith.constant 0 : index
    %c2_18 = arith.constant 2 : index
    %13 = vector.load %arg7[%c0_17, %c2_18] : memref<32x14xf32, #tpu.memory_space<vmem>>, vector<32x1xf32>
    %c0_19 = arith.constant 0 : index
    %c3_20 = arith.constant 3 : index
    %14 = vector.load %arg7[%c0_19, %c3_20] : memref<32x14xf32, #tpu.memory_space<vmem>>, vector<32x1xf32>
    %c0_21 = arith.constant 0 : index
    %c4 = arith.constant 4 : index
    %15 = vector.load %arg7[%c0_21, %c4] : memref<32x14xf32, #tpu.memory_space<vmem>>, vector<32x1xf32>
    %c0_22 = arith.constant 0 : index
    %c5_23 = arith.constant 5 : index
    %16 = vector.load %arg7[%c0_22, %c5_23] : memref<32x14xf32, #tpu.memory_space<vmem>>, vector<32x1xf32>
    %c0_24 = arith.constant 0 : index
    %c6_25 = arith.constant 6 : index
    %17 = vector.load %arg7[%c0_24, %c6_25] : memref<32x14xf32, #tpu.memory_space<vmem>>, vector<32x1xf32>
    %cst = arith.constant dense<0.000000e+00> : vector<32xf32>
    %18 = vector.multi_reduction <add>, %10, %cst [1] : vector<32x256xf32> to vector<32xf32>
    %19 = vector.shape_cast %18 : vector<32xf32> to vector<32x1xf32>
    %cst_26 = arith.constant 2.560000e+02 : f32
    %20 = vector.broadcast %cst_26 : f32 to vector<32x1xf32>
    %21 = arith.divf %19, %20 : vector<32x1xf32>
    %cst_27 = arith.constant dense<0.000000e+00> : vector<32x1xf32>
    %22 = tpu.matmul %0, %21, %cst_27 {dimension_numbers = #tpu.dot_dimension_numbers<[1], [0], [0], [1], [0, 0, 1, 1], [], []>} : vector<32x32xf32>, vector<32x1xf32>, vector<32x1xf32> -> vector<32x1xf32>
    %23 = vector.broadcast %22 : vector<32x1xf32> to vector<32x256xf32>
    %24 = arith.subf %10, %23 : vector<32x256xf32>
    %25 = arith.mulf %24, %24 : vector<32x256xf32>
    %cst_28 = arith.constant dense<0.000000e+00> : vector<32xf32>
    %26 = vector.multi_reduction <add>, %25, %cst_28 [1] : vector<32x256xf32> to vector<32xf32>
    %27 = vector.shape_cast %26 : vector<32xf32> to vector<32x1xf32>
    %cst_29 = arith.constant 2.560000e+02 : f32
    %28 = vector.broadcast %cst_29 : f32 to vector<32x1xf32>
    %29 = arith.divf %27, %28 : vector<32x1xf32>
    %cst_30 = arith.constant dense<0.000000e+00> : vector<32x1xf32>
    %30 = tpu.matmul %0, %29, %cst_30 {dimension_numbers = #tpu.dot_dimension_numbers<[1], [0], [0], [1], [0, 0, 1, 1], [], []>} : vector<32x32xf32>, vector<32x1xf32>, vector<32x1xf32> -> vector<32x1xf32>
    %cst_31 = arith.constant 9.99999974E-6 : f32
    %31 = vector.broadcast %cst_31 : f32 to vector<32x1xf32>
    %32 = arith.addf %30, %31 : vector<32x1xf32>
    %33 = math.rsqrt %32 : vector<32x1xf32>
    %34 = arith.mulf %33, %11 : vector<32x1xf32>
    %35 = vector.broadcast %34 : vector<32x1xf32> to vector<32x256xf32>
    %36 = arith.mulf %24, %35 : vector<32x256xf32>
    %37 = vector.broadcast %12 : vector<32x1xf32> to vector<32x256xf32>
    %38 = arith.addf %36, %37 : vector<32x256xf32>
    %cst_32 = arith.constant 5.000000e-01 : f32
    %39 = vector.broadcast %cst_32 : f32 to vector<32x256xf32>
    %40 = arith.mulf %39, %38 : vector<32x256xf32>
    %41 = math.tanh %40 : vector<32x256xf32>
    %cst_33 = arith.constant 5.000000e-01 : f32
    %42 = vector.broadcast %cst_33 : f32 to vector<32x256xf32>
    %43 = arith.mulf %42, %41 : vector<32x256xf32>
    %cst_34 = arith.constant 5.000000e-01 : f32
    %44 = vector.broadcast %cst_34 : f32 to vector<32x256xf32>
    %45 = arith.addf %43, %44 : vector<32x256xf32>
    %46 = arith.mulf %38, %45 : vector<32x256xf32>
    %47 = vector.broadcast %13 : vector<32x1xf32> to vector<32x256xf32>
    %48 = arith.addf %46, %47 : vector<32x256xf32>
    %cst_35 = arith.constant 0.000000e+00 : f32
    %49 = vector.broadcast %cst_35 : f32 to vector<32x256xf32>
    %50 = arith.cmpf ogt, %48, %49 : vector<32x256xf32>
    %cst_36 = arith.constant 0.000000e+00 : f32
    %51 = vector.broadcast %cst_36 : f32 to vector<32x256xf32>
    %52 = arith.cmpf olt, %48, %51 : vector<32x256xf32>
    %cst_37 = arith.constant -1.000000e+00 : f32
    %cst_38 = arith.constant 0.000000e+00 : f32
    %53 = vector.broadcast %cst_37 : f32 to vector<32x256xf32>
    %54 = vector.broadcast %cst_38 : f32 to vector<32x256xf32>
    %55 = arith.select %52, %53, %54 : vector<32x256xi1>, vector<32x256xf32>
    %cst_39 = arith.constant 1.000000e+00 : f32
    %56 = vector.broadcast %cst_39 : f32 to vector<32x256xf32>
    %57 = arith.select %50, %56, %55 : vector<32x256xi1>, vector<32x256xf32>
    %58 = vector.extract_strided_slice %57 {offsets = [0, 239], sizes = [32, 17], strides = [1, 1]} : vector<32x256xf32> to vector<32x17xf32>
    %59 = vector.extract_strided_slice %57 {offsets = [0, 0], sizes = [32, 239], strides = [1, 1]} : vector<32x256xf32> to vector<32x239xf32>
    %60 = tpu.concatenate %58, %59 in 1 : vector<32x17xf32>, vector<32x239xf32> -> vector<32x256xf32>
    %61 = arith.truncf %60 : vector<32x256xf32> to vector<32x256xbf16>
    %62 = vector.broadcast %1 : vector<1x256xbf16> to vector<32x256xbf16>
    %63 = arith.mulf %61, %62 : vector<32x256xbf16>
    %64 = vector.extract_strided_slice %57 {offsets = [0, 240], sizes = [32, 16], strides = [1, 1]} : vector<32x256xf32> to vector<32x16xf32>
    %65 = vector.extract_strided_slice %57 {offsets = [0, 0], sizes = [32, 240], strides = [1, 1]} : vector<32x256xf32> to vector<32x240xf32>
    %66 = tpu.concatenate %64, %65 in 1 : vector<32x16xf32>, vector<32x240xf32> -> vector<32x256xf32>
    %67 = arith.truncf %66 : vector<32x256xf32> to vector<32x256xbf16>
    %68 = vector.broadcast %2 : vector<1x256xbf16> to vector<32x256xbf16>
    %69 = arith.mulf %67, %68 : vector<32x256xbf16>
    %70 = vector.extract_strided_slice %57 {offsets = [0, 241], sizes = [32, 15], strides = [1, 1]} : vector<32x256xf32> to vector<32x15xf32>
    %71 = vector.extract_strided_slice %57 {offsets = [0, 0], sizes = [32, 241], strides = [1, 1]} : vector<32x256xf32> to vector<32x241xf32>
    %72 = tpu.concatenate %70, %71 in 1 : vector<32x15xf32>, vector<32x241xf32> -> vector<32x256xf32>
    %73 = arith.truncf %72 : vector<32x256xf32> to vector<32x256xbf16>
    %74 = vector.broadcast %3 : vector<1x256xbf16> to vector<32x256xbf16>
    %75 = arith.mulf %73, %74 : vector<32x256xbf16>
    %76 = vector.extract_strided_slice %57 {offsets = [0, 255], sizes = [32, 1], strides = [1, 1]} : vector<32x256xf32> to vector<32x1xf32>
    %77 = vector.extract_strided_slice %57 {offsets = [0, 0], sizes = [32, 255], strides = [1, 1]} : vector<32x256xf32> to vector<32x255xf32>
    %78 = tpu.concatenate %76, %77 in 1 : vector<32x1xf32>, vector<32x255xf32> -> vector<32x256xf32>
    %79 = arith.truncf %78 : vector<32x256xf32> to vector<32x256xbf16>
    %80 = vector.broadcast %4 : vector<1x256xbf16> to vector<32x256xbf16>
    %81 = arith.mulf %79, %80 : vector<32x256xbf16>
    %82 = arith.truncf %57 : vector<32x256xf32> to vector<32x256xbf16>
    %83 = vector.extract_strided_slice %57 {offsets = [0, 1], sizes = [32, 255], strides = [1, 1]} : vector<32x256xf32> to vector<32x255xf32>
    %84 = vector.extract_strided_slice %57 {offsets = [0, 0], sizes = [32, 1], strides = [1, 1]} : vector<32x256xf32> to vector<32x1xf32>
    %85 = tpu.concatenate %83, %84 in 1 : vector<32x255xf32>, vector<32x1xf32> -> vector<32x256xf32>
    %86 = arith.truncf %85 : vector<32x256xf32> to vector<32x256xbf16>
    %87 = vector.broadcast %5 : vector<1x256xbf16> to vector<32x256xbf16>
    %88 = arith.mulf %86, %87 : vector<32x256xbf16>
    %89 = vector.extract_strided_slice %57 {offsets = [0, 15], sizes = [32, 241], strides = [1, 1]} : vector<32x256xf32> to vector<32x241xf32>
    %90 = vector.extract_strided_slice %57 {offsets = [0, 0], sizes = [32, 15], strides = [1, 1]} : vector<32x256xf32> to vector<32x15xf32>
    %91 = tpu.concatenate %89, %90 in 1 : vector<32x241xf32>, vector<32x15xf32> -> vector<32x256xf32>
    %92 = arith.truncf %91 : vector<32x256xf32> to vector<32x256xbf16>
    %93 = vector.broadcast %6 : vector<1x256xbf16> to vector<32x256xbf16>
    %94 = arith.mulf %92, %93 : vector<32x256xbf16>
    %95 = vector.extract_strided_slice %57 {offsets = [0, 16], sizes = [32, 240], strides = [1, 1]} : vector<32x256xf32> to vector<32x240xf32>
    %96 = vector.extract_strided_slice %57 {offsets = [0, 0], sizes = [32, 16], strides = [1, 1]} : vector<32x256xf32> to vector<32x16xf32>
    %97 = tpu.concatenate %95, %96 in 1 : vector<32x240xf32>, vector<32x16xf32> -> vector<32x256xf32>
    %98 = arith.truncf %97 : vector<32x256xf32> to vector<32x256xbf16>
    %99 = vector.broadcast %7 : vector<1x256xbf16> to vector<32x256xbf16>
    %100 = arith.mulf %98, %99 : vector<32x256xbf16>
    %101 = vector.extract_strided_slice %57 {offsets = [0, 17], sizes = [32, 239], strides = [1, 1]} : vector<32x256xf32> to vector<32x239xf32>
    %102 = vector.extract_strided_slice %57 {offsets = [0, 0], sizes = [32, 17], strides = [1, 1]} : vector<32x256xf32> to vector<32x17xf32>
    %103 = tpu.concatenate %101, %102 in 1 : vector<32x239xf32>, vector<32x17xf32> -> vector<32x256xf32>
    %104 = arith.truncf %103 : vector<32x256xf32> to vector<32x256xbf16>
    %105 = vector.broadcast %8 : vector<1x256xbf16> to vector<32x256xbf16>
    %106 = arith.mulf %104, %105 : vector<32x256xbf16>
    %107 = tpu.concatenate %63, %69, %75, %81, %82, %88, %94, %100, %106 in 0 : vector<32x256xbf16>, vector<32x256xbf16>, vector<32x256xbf16>, vector<32x256xbf16>, vector<32x256xbf16>, vector<32x256xbf16>, vector<32x256xbf16>, vector<32x256xbf16>, vector<32x256xbf16> -> vector<288x256xbf16>
    %c0_40 = arith.constant 0 : index
    %c0_41 = arith.constant 0 : index
    %108 = vector.load %arg5[%c0_40, %c0_41] : memref<32x288xbf16, #tpu.memory_space<vmem>>, vector<32x288xbf16>
    %cst_42 = arith.constant dense<0.000000e+00> : vector<32x256xf32>
    %109 = tpu.matmul %108, %107, %cst_42 {dimension_numbers = #tpu.dot_dimension_numbers<[1], [0], [0], [1], [0, 0, 1, 1], [], []>} : vector<32x288xbf16>, vector<288x256xbf16>, vector<32x256xf32> -> vector<32x256xf32>
    %110 = vector.broadcast %17 : vector<32x1xf32> to vector<32x256xf32>
    %111 = arith.mulf %109, %110 : vector<32x256xf32>
    %112 = vector.broadcast %15 : vector<32x1xf32> to vector<32x256xf32>
    %113 = arith.addf %111, %112 : vector<32x256xf32>
    %cst_43 = arith.constant 0.000000e+00 : f32
    %114 = vector.broadcast %cst_43 : f32 to vector<32x256xf32>
    %115 = arith.cmpf oge, %113, %114 : vector<32x256xf32>
    %116 = vector.broadcast %14 : vector<32x1xf32> to vector<32x256xf32>
    %117 = arith.mulf %116, %113 : vector<32x256xf32>
    %118 = arith.select %115, %113, %117 : vector<32x256xi1>, vector<32x256xf32>
    %119 = vector.broadcast %16 : vector<32x1xf32> to vector<32x256xf32>
    %120 = arith.addf %118, %119 : vector<32x256xf32>
    %121 = arith.addf %120, %46 : vector<32x256xf32>
    %c0_44 = arith.constant 0 : index
    %c0_45 = arith.constant 0 : index
    %c0_46 = arith.constant 0 : index
    %122 = vector.load %arg2[%c0_44, %c0_45, %c0_46] : memref<1x32x1xf32, #tpu.memory_space<vmem>>, vector<1x32x1xf32>
    %123 = vector.shape_cast %122 : vector<1x32x1xf32> to vector<32x1xf32>
    %124 = vector.broadcast %123 : vector<32x1xf32> to vector<32x256xf32>
    %125 = arith.addf %121, %124 : vector<32x256xf32>
    %c0_47 = arith.constant 0 : index
    %c7_48 = arith.constant 7 : index
    %126 = vector.load %arg7[%c0_47, %c7_48] : memref<32x14xf32, #tpu.memory_space<vmem>>, vector<32x1xf32>
    %c0_49 = arith.constant 0 : index
    %c8_50 = arith.constant 8 : index
    %127 = vector.load %arg7[%c0_49, %c8_50] : memref<32x14xf32, #tpu.memory_space<vmem>>, vector<32x1xf32>
    %c0_51 = arith.constant 0 : index
    %c9 = arith.constant 9 : index
    %128 = vector.load %arg7[%c0_51, %c9] : memref<32x14xf32, #tpu.memory_space<vmem>>, vector<32x1xf32>
    %c0_52 = arith.constant 0 : index
    %c10 = arith.constant 10 : index
    %129 = vector.load %arg7[%c0_52, %c10] : memref<32x14xf32, #tpu.memory_space<vmem>>, vector<32x1xf32>
    %c0_53 = arith.constant 0 : index
    %c11 = arith.constant 11 : index
    %130 = vector.load %arg7[%c0_53, %c11] : memref<32x14xf32, #tpu.memory_space<vmem>>, vector<32x1xf32>
    %c0_54 = arith.constant 0 : index
    %c12 = arith.constant 12 : index
    %131 = vector.load %arg7[%c0_54, %c12] : memref<32x14xf32, #tpu.memory_space<vmem>>, vector<32x1xf32>
    %c0_55 = arith.constant 0 : index
    %c13 = arith.constant 13 : index
    %132 = vector.load %arg7[%c0_55, %c13] : memref<32x14xf32, #tpu.memory_space<vmem>>, vector<32x1xf32>
    %cst_56 = arith.constant dense<0.000000e+00> : vector<32xf32>
    %133 = vector.multi_reduction <add>, %125, %cst_56 [1] : vector<32x256xf32> to vector<32xf32>
    %134 = vector.shape_cast %133 : vector<32xf32> to vector<32x1xf32>
    %cst_57 = arith.constant 2.560000e+02 : f32
    %135 = vector.broadcast %cst_57 : f32 to vector<32x1xf32>
    %136 = arith.divf %134, %135 : vector<32x1xf32>
    %cst_58 = arith.constant dense<0.000000e+00> : vector<32x1xf32>
    %137 = tpu.matmul %0, %136, %cst_58 {dimension_numbers = #tpu.dot_dimension_numbers<[1], [0], [0], [1], [0, 0, 1, 1], [], []>} : vector<32x32xf32>, vector<32x1xf32>, vector<32x1xf32> -> vector<32x1xf32>
    %138 = vector.broadcast %137 : vector<32x1xf32> to vector<32x256xf32>
    %139 = arith.subf %125, %138 : vector<32x256xf32>
    %140 = arith.mulf %139, %139 : vector<32x256xf32>
    %cst_59 = arith.constant dense<0.000000e+00> : vector<32xf32>
    %141 = vector.multi_reduction <add>, %140, %cst_59 [1] : vector<32x256xf32> to vector<32xf32>
    %142 = vector.shape_cast %141 : vector<32xf32> to vector<32x1xf32>
    %cst_60 = arith.constant 2.560000e+02 : f32
    %143 = vector.broadcast %cst_60 : f32 to vector<32x1xf32>
    %144 = arith.divf %142, %143 : vector<32x1xf32>
    %cst_61 = arith.constant dense<0.000000e+00> : vector<32x1xf32>
    %145 = tpu.matmul %0, %144, %cst_61 {dimension_numbers = #tpu.dot_dimension_numbers<[1], [0], [0], [1], [0, 0, 1, 1], [], []>} : vector<32x32xf32>, vector<32x1xf32>, vector<32x1xf32> -> vector<32x1xf32>
    %cst_62 = arith.constant 9.99999974E-6 : f32
    %146 = vector.broadcast %cst_62 : f32 to vector<32x1xf32>
    %147 = arith.addf %145, %146 : vector<32x1xf32>
    %148 = math.rsqrt %147 : vector<32x1xf32>
    %149 = arith.mulf %148, %126 : vector<32x1xf32>
    %150 = vector.broadcast %149 : vector<32x1xf32> to vector<32x256xf32>
    %151 = arith.mulf %139, %150 : vector<32x256xf32>
    %152 = vector.broadcast %127 : vector<32x1xf32> to vector<32x256xf32>
    %153 = arith.addf %151, %152 : vector<32x256xf32>
    %cst_63 = arith.constant 5.000000e-01 : f32
    %154 = vector.broadcast %cst_63 : f32 to vector<32x256xf32>
    %155 = arith.mulf %154, %153 : vector<32x256xf32>
    %156 = math.tanh %155 : vector<32x256xf32>
    %cst_64 = arith.constant 5.000000e-01 : f32
    %157 = vector.broadcast %cst_64 : f32 to vector<32x256xf32>
    %158 = arith.mulf %157, %156 : vector<32x256xf32>
    %cst_65 = arith.constant 5.000000e-01 : f32
    %159 = vector.broadcast %cst_65 : f32 to vector<32x256xf32>
    %160 = arith.addf %158, %159 : vector<32x256xf32>
    %161 = arith.mulf %153, %160 : vector<32x256xf32>
    %162 = vector.broadcast %128 : vector<32x1xf32> to vector<32x256xf32>
    %163 = arith.addf %161, %162 : vector<32x256xf32>
    %cst_66 = arith.constant 0.000000e+00 : f32
    %164 = vector.broadcast %cst_66 : f32 to vector<32x256xf32>
    %165 = arith.cmpf ogt, %163, %164 : vector<32x256xf32>
    %cst_67 = arith.constant 0.000000e+00 : f32
    %166 = vector.broadcast %cst_67 : f32 to vector<32x256xf32>
    %167 = arith.cmpf olt, %163, %166 : vector<32x256xf32>
    %cst_68 = arith.constant -1.000000e+00 : f32
    %cst_69 = arith.constant 0.000000e+00 : f32
    %168 = vector.broadcast %cst_68 : f32 to vector<32x256xf32>
    %169 = vector.broadcast %cst_69 : f32 to vector<32x256xf32>
    %170 = arith.select %167, %168, %169 : vector<32x256xi1>, vector<32x256xf32>
    %cst_70 = arith.constant 1.000000e+00 : f32
    %171 = vector.broadcast %cst_70 : f32 to vector<32x256xf32>
    %172 = arith.select %165, %171, %170 : vector<32x256xi1>, vector<32x256xf32>
    %173 = vector.extract_strided_slice %172 {offsets = [0, 239], sizes = [32, 17], strides = [1, 1]} : vector<32x256xf32> to vector<32x17xf32>
    %174 = vector.extract_strided_slice %172 {offsets = [0, 0], sizes = [32, 239], strides = [1, 1]} : vector<32x256xf32> to vector<32x239xf32>
    %175 = tpu.concatenate %173, %174 in 1 : vector<32x17xf32>, vector<32x239xf32> -> vector<32x256xf32>
    %176 = arith.truncf %175 : vector<32x256xf32> to vector<32x256xbf16>
    %177 = vector.broadcast %1 : vector<1x256xbf16> to vector<32x256xbf16>
    %178 = arith.mulf %176, %177 : vector<32x256xbf16>
    %179 = vector.extract_strided_slice %172 {offsets = [0, 240], sizes = [32, 16], strides = [1, 1]} : vector<32x256xf32> to vector<32x16xf32>
    %180 = vector.extract_strided_slice %172 {offsets = [0, 0], sizes = [32, 240], strides = [1, 1]} : vector<32x256xf32> to vector<32x240xf32>
    %181 = tpu.concatenate %179, %180 in 1 : vector<32x16xf32>, vector<32x240xf32> -> vector<32x256xf32>
    %182 = arith.truncf %181 : vector<32x256xf32> to vector<32x256xbf16>
    %183 = vector.broadcast %2 : vector<1x256xbf16> to vector<32x256xbf16>
    %184 = arith.mulf %182, %183 : vector<32x256xbf16>
    %185 = vector.extract_strided_slice %172 {offsets = [0, 241], sizes = [32, 15], strides = [1, 1]} : vector<32x256xf32> to vector<32x15xf32>
    %186 = vector.extract_strided_slice %172 {offsets = [0, 0], sizes = [32, 241], strides = [1, 1]} : vector<32x256xf32> to vector<32x241xf32>
    %187 = tpu.concatenate %185, %186 in 1 : vector<32x15xf32>, vector<32x241xf32> -> vector<32x256xf32>
    %188 = arith.truncf %187 : vector<32x256xf32> to vector<32x256xbf16>
    %189 = vector.broadcast %3 : vector<1x256xbf16> to vector<32x256xbf16>
    %190 = arith.mulf %188, %189 : vector<32x256xbf16>
    %191 = vector.extract_strided_slice %172 {offsets = [0, 255], sizes = [32, 1], strides = [1, 1]} : vector<32x256xf32> to vector<32x1xf32>
    %192 = vector.extract_strided_slice %172 {offsets = [0, 0], sizes = [32, 255], strides = [1, 1]} : vector<32x256xf32> to vector<32x255xf32>
    %193 = tpu.concatenate %191, %192 in 1 : vector<32x1xf32>, vector<32x255xf32> -> vector<32x256xf32>
    %194 = arith.truncf %193 : vector<32x256xf32> to vector<32x256xbf16>
    %195 = vector.broadcast %4 : vector<1x256xbf16> to vector<32x256xbf16>
    %196 = arith.mulf %194, %195 : vector<32x256xbf16>
    %197 = arith.truncf %172 : vector<32x256xf32> to vector<32x256xbf16>
    %198 = vector.extract_strided_slice %172 {offsets = [0, 1], sizes = [32, 255], strides = [1, 1]} : vector<32x256xf32> to vector<32x255xf32>
    %199 = vector.extract_strided_slice %172 {offsets = [0, 0], sizes = [32, 1], strides = [1, 1]} : vector<32x256xf32> to vector<32x1xf32>
    %200 = tpu.concatenate %198, %199 in 1 : vector<32x255xf32>, vector<32x1xf32> -> vector<32x256xf32>
    %201 = arith.truncf %200 : vector<32x256xf32> to vector<32x256xbf16>
    %202 = vector.broadcast %5 : vector<1x256xbf16> to vector<32x256xbf16>
    %203 = arith.mulf %201, %202 : vector<32x256xbf16>
    %204 = vector.extract_strided_slice %172 {offsets = [0, 15], sizes = [32, 241], strides = [1, 1]} : vector<32x256xf32> to vector<32x241xf32>
    %205 = vector.extract_strided_slice %172 {offsets = [0, 0], sizes = [32, 15], strides = [1, 1]} : vector<32x256xf32> to vector<32x15xf32>
    %206 = tpu.concatenate %204, %205 in 1 : vector<32x241xf32>, vector<32x15xf32> -> vector<32x256xf32>
    %207 = arith.truncf %206 : vector<32x256xf32> to vector<32x256xbf16>
    %208 = vector.broadcast %6 : vector<1x256xbf16> to vector<32x256xbf16>
    %209 = arith.mulf %207, %208 : vector<32x256xbf16>
    %210 = vector.extract_strided_slice %172 {offsets = [0, 16], sizes = [32, 240], strides = [1, 1]} : vector<32x256xf32> to vector<32x240xf32>
    %211 = vector.extract_strided_slice %172 {offsets = [0, 0], sizes = [32, 16], strides = [1, 1]} : vector<32x256xf32> to vector<32x16xf32>
    %212 = tpu.concatenate %210, %211 in 1 : vector<32x240xf32>, vector<32x16xf32> -> vector<32x256xf32>
    %213 = arith.truncf %212 : vector<32x256xf32> to vector<32x256xbf16>
    %214 = vector.broadcast %7 : vector<1x256xbf16> to vector<32x256xbf16>
    %215 = arith.mulf %213, %214 : vector<32x256xbf16>
    %216 = vector.extract_strided_slice %172 {offsets = [0, 17], sizes = [32, 239], strides = [1, 1]} : vector<32x256xf32> to vector<32x239xf32>
    %217 = vector.extract_strided_slice %172 {offsets = [0, 0], sizes = [32, 17], strides = [1, 1]} : vector<32x256xf32> to vector<32x17xf32>
    %218 = tpu.concatenate %216, %217 in 1 : vector<32x239xf32>, vector<32x17xf32> -> vector<32x256xf32>
    %219 = arith.truncf %218 : vector<32x256xf32> to vector<32x256xbf16>
    %220 = vector.broadcast %8 : vector<1x256xbf16> to vector<32x256xbf16>
    %221 = arith.mulf %219, %220 : vector<32x256xbf16>
    %222 = tpu.concatenate %178, %184, %190, %196, %197, %203, %209, %215, %221 in 0 : vector<32x256xbf16>, vector<32x256xbf16>, vector<32x256xbf16>, vector<32x256xbf16>, vector<32x256xbf16>, vector<32x256xbf16>, vector<32x256xbf16>, vector<32x256xbf16>, vector<32x256xbf16> -> vector<288x256xbf16>
    %c0_71 = arith.constant 0 : index
    %c0_72 = arith.constant 0 : index
    %223 = vector.load %arg6[%c0_71, %c0_72] : memref<32x288xbf16, #tpu.memory_space<vmem>>, vector<32x288xbf16>
    %cst_73 = arith.constant dense<0.000000e+00> : vector<32x256xf32>
    %224 = tpu.matmul %223, %222, %cst_73 {dimension_numbers = #tpu.dot_dimension_numbers<[1], [0], [0], [1], [0, 0, 1, 1], [], []>} : vector<32x288xbf16>, vector<288x256xbf16>, vector<32x256xf32> -> vector<32x256xf32>
    %225 = vector.broadcast %132 : vector<32x1xf32> to vector<32x256xf32>
    %226 = arith.mulf %224, %225 : vector<32x256xf32>
    %227 = vector.broadcast %130 : vector<32x1xf32> to vector<32x256xf32>
    %228 = arith.addf %226, %227 : vector<32x256xf32>
    %cst_74 = arith.constant 0.000000e+00 : f32
    %229 = vector.broadcast %cst_74 : f32 to vector<32x256xf32>
    %230 = arith.cmpf oge, %228, %229 : vector<32x256xf32>
    %231 = vector.broadcast %129 : vector<32x1xf32> to vector<32x256xf32>
    %232 = arith.mulf %231, %228 : vector<32x256xf32>
    %233 = arith.select %230, %228, %232 : vector<32x256xi1>, vector<32x256xf32>
    %234 = vector.broadcast %131 : vector<32x1xf32> to vector<32x256xf32>
    %235 = arith.addf %233, %234 : vector<32x256xf32>
    %236 = arith.addf %235, %161 : vector<32x256xf32>
    %237 = arith.addf %236, %10 : vector<32x256xf32>
    %c0_75 = arith.constant 0 : index
    %c0_76 = arith.constant 0 : index
    %c0_77 = arith.constant 0 : index
    %238 = vector.load %arg8[%c0_75, %c0_76, %c0_77] : memref<1x32x256xf32, #tpu.memory_space<vmem>>, vector<1x32x256xf32>
    %239 = vector.shape_cast %238 : vector<1x32x256xf32> to vector<32x256xf32>
    %240 = vector.shape_cast %237 : vector<32x256xf32> to vector<1x32x256xf32>
    tpu.vector_store %arg8[%c0_75, %c0_76, %c0_77], %240 {strides = array<i32>} : memref<1x32x256xf32, #tpu.memory_space<vmem>>, vector<1x32x256xf32>,
    return
  }
  func.func @transform_0(%arg0: i32) -> (i32, i32, i32) {
    %c0_i32 = arith.constant 0 : i32
    %c0_i32_0 = arith.constant 0 : i32
    %c0_i32_1 = arith.constant 0 : i32
    return %arg0, %c0_i32, %c0_i32_0 : i32, i32, i32
  }
  func.func @transform_1(%arg0: i32) -> (i32, i32, i32) {
    %c0_i32 = arith.constant 0 : i32
    %c0_i32_0 = arith.constant 0 : i32
    %c0_i32_1 = arith.constant 0 : i32
    return %arg0, %c0_i32, %c0_i32_0 : i32, i32, i32
  }
  func.func @transform_2(%arg0: i32) -> (i32, i32) {
    %c0_i32 = arith.constant 0 : i32
    %c0_i32_0 = arith.constant 0 : i32
    %c0_i32_1 = arith.constant 0 : i32
    return %c0_i32, %c0_i32_0 : i32, i32
  }
  func.func @transform_3(%arg0: i32) -> (i32, i32) {
    %c0_i32 = arith.constant 0 : i32
    %c0_i32_0 = arith.constant 0 : i32
    %c0_i32_1 = arith.constant 0 : i32
    return %c0_i32, %c0_i32_0 : i32, i32
  }
  func.func @transform_4(%arg0: i32) -> (i32, i32) {
    %c0_i32 = arith.constant 0 : i32
    %c0_i32_0 = arith.constant 0 : i32
    %c0_i32_1 = arith.constant 0 : i32
    return %c0_i32, %c0_i32_0 : i32, i32
  }
  func.func @transform_5(%arg0: i32) -> (i32, i32) {
    %c0_i32 = arith.constant 0 : i32
    %c0_i32_0 = arith.constant 0 : i32
    %c0_i32_1 = arith.constant 0 : i32
    return %c0_i32, %c0_i32_0 : i32, i32
  }
  func.func @transform_6(%arg0: i32) -> (i32, i32) {
    %c0_i32 = arith.constant 0 : i32
    %c0_i32_0 = arith.constant 0 : i32
    %c0_i32_1 = arith.constant 0 : i32
    return %c0_i32, %c0_i32_0 : i32, i32
  }
  func.func @transform_7(%arg0: i32) -> (i32, i32, i32) {
    %c0_i32 = arith.constant 0 : i32
    %c0_i32_0 = arith.constant 0 : i32
    %c0_i32_1 = arith.constant 0 : i32
    return %arg0, %c0_i32, %c0_i32_0 : i32, i32, i32
  }
}

</mosaic_0001>

<bundles_post_ra>
// kernel: tpu_custom_call.1
= control target key start
LH: loop header
LB: loop body
LE: loop exit
PB: predicated region body
PF: predicated region fallthrough
CT: control target
= control target key end

     0   :  { %6 = vsyncpa [#allocation3], 0  ;;  %s137_s0 = inlined_call_operand.hbm [shape: f32[8,256], index: 0, kind: input, shape index: {}]   ;;  %s138_s1 = inlined_call_operand.hbm [shape: f32[8,256], index: 1, kind: output, shape index: {}]  }
   0x1   :  { %7 = vsyncpa [#allocation4], 0  ;;  %s100_s6 = smov [#allocation2]   ;;  %s52_s10 = scalar_lea.hbm %s137_s0, 256 }
   0x2   :  { %s14_s7 = sshll.u32 %s100_s6, 4  ;;  %p53_p0 = scmp.ne.s32.totalorder %s137_s0, %s52_s10  ;;  %s15_s7 = int_to_ptr.vmem [resolvable:$true] %s14_s7 }
   0x3   :  { %p56_p1 = scmp.lt.u32.totalorder %s52_s10, %s137_s0 }
   0x5   :  { %p58_p2 = pnand %p56_p1, %p53_p0 }
   0x7   :  { %61 = shalt.err (!%p58_p2)
}
   0x8   :  { %s62_s15 = scalar_lea.vmem %s15_s7, 256  ;;  %p67_p4 = scmp.lt.s32.totalorder %s15_s7, %s15_s7 }
   0x9   :  { %p63_p3 = scmp.ne.s32.totalorder %s15_s7, %s62_s15  ;;  %p68_p5 = scmp.lt.s32.totalorder %s62_s15, %s62_s15 }
   0xb   :  { %p69_p6 = por %p68_p5, %p67_p4 }
   0xd   :  { %p70_p7 = pnand %p69_p6, %p63_p3 }
   0xf   :  { %73 = shalt.err (!%p70_p7)
}
  0x10   :  { %17 = dma.hbm_to_vmem [thread:$0]  %s137_s0, 256, %s15_s7, [#allocation3]  }
  0x11   :  { %96 = dma.done.wait [#allocation3], 256  }
  0x12   :  { %97 = vsyncadd [#allocation3], 4294967040  ;;  %v21_v0 = vld [vmem:[#allocation2] sm:$0xff]  ;;  %s101_s18 = smov 3   ;;  %v22_v1 = vld [vmem:[#allocation2 + $0x8] sm:$0xff]  ;;  %v27_v2 = vlaneseq  ;;  %s102_s19 = smov [#allocation5]  }
  0x13   :  { %23 = vrot.lane.b32.xlu0 %v21_v0, %s101_s18  ;;  %s40_s20 = sshll.u32 %s102_s19, 4  ;;  %s41_s20 = int_to_ptr.vmem [resolvable:$true] %s40_s20 }
  0x14   :  { %v28_v3 = vand.u32 127, %v27_v2  ;;  %s74_s0 = scalar_lea.vmem %s41_s20, 256  ;;  %p79_p9 = scmp.lt.s32.totalorder %s41_s20, %s41_s20 }
  0x15   :  { %p75_p8 = scmp.ne.s32.totalorder %s41_s20, %s74_s0  ;;  %p80_p10 = scmp.lt.s32.totalorder %s74_s0, %s74_s0 }
  0x16   :  { %vm29_vm0 = vcmp.lt.s32.totalorder %v28_v3, 3 }
  0x17   :  { %25 = vrot.lane.b32.xlu0 %v22_v1, %s101_s18  ;;  %p81_p11 = por %p80_p10, %p79_p9 }
  0x19   :  { %p82_p12 = pnand %p81_p11, %p75_p8 }
  0x85   :  { %v24_v4 = vpop.permute.xlu0 %23 }
  0x89   :  { %v26_v5 = vpop.permute.xlu0 %25 }
  0x8a   :  { %v30_v6 = vsel %vm29_vm0, %v24_v4, %v26_v5  ;;  %v31_v7 = vsel %vm29_vm0, %v26_v5, %v24_v4 }
  0x8b   :  { %32 = vst [vmem:[#allocation5] sm:$0xff] %v31_v7  ;;  %33 = vst [vmem:[#allocation5 + $0x8] sm:$0xff] %v30_v6 }
  0x8c   :  { %85 = shalt.err (!%p82_p12)
}
  0x8d   :  { %s86_s23 = scalar_lea.hbm %s138_s1, 256 }
  0x8e   :  { %p87_p13 = scmp.ne.s32.totalorder %s138_s1, %s86_s23  ;;  %p90_p0 = scmp.lt.u32.totalorder %s86_s23, %s138_s1 }
  0x90   :  { %p92_p1 = pnand %p90_p0, %p87_p13 }
  0x92   :  { %95 = shalt.err (!%p92_p1)
}
  0x93   :  { %43 = dma.vmem_to_hbm [thread:$0]  %s41_s20, 256, %s138_s1, [#allocation4]  }
  0x94   :  { %98 = dma.done.wait [#allocation4], 256  }
  0x95   :  { %99 = vsyncadd [#allocation4], 4294967040 }
  0x96   :  { %47 = vsyncpa [#allocation3], 1 }
  0x97   :  { %48 = vsyncpa [#allocation4], 1 }

// kernel: tpu_custom_call.1
= control target key start
LH: loop header
LB: loop body
LE: loop exit
PB: predicated region body
PF: predicated region fallthrough
CT: control target
= control target key end

     0   :  { %12 = vsyncpa [#allocation3], 0  ;;  %s4780_s0 = inlined_call_operand.hbm [shape: f32[2,32,256], index: 0, kind: input, shape index: {}]   ;;  %s4781_s1 = inlined_call_operand.vmem [shape: f32[2,32,1], index: 1, kind: input, shape index: {}]   ;;  %s4782_s2 = inlined_call_operand.hbm [shape: f32[32,32], index: 2, kind: input, shape index: {}]   ;;  %s4783_s3 = inlined_call_operand.vmem [shape: bf16[9,256], index: 3, kind: input, shape index: {}]   ;;  %s4784_s4 = inlined_call_operand.vmem [shape: bf16[32,288], index: 4, kind: input, shape index: {}]   ;;  %s4785_s5 = inlined_call_operand.vmem [shape: bf16[32,288], index: 5, kind: input, shape index: {}]   ;;  %s4786_s6 = inlined_call_operand.vmem [shape: f32[32,14], index: 6, kind: input, shape index: {}]   ;;  %s4787_s7 = inlined_call_operand.hbm [shape: f32[2,32,256], index: 7, kind: output, shape index: {}]  }
   0x1   :  { %14 = vsyncpa [#allocation3 + $0x1], 0 }
   0x2   :  { %15 = vsyncpa [#allocation6], 0 }
   0x3   :  { %16 = vsyncpa [#allocation4], 0 }
   0x4   :  { %18 = vsyncpa [#allocation4 + $0x1], 0  ;;  %s3677_s24 = smov 0   ;;  %s3679_s25 = smov 0  }
   0x5   :  { %s3681_s26 = smov 0   ;;  %s3683_s27 = smov 0  }
   0x6 LB: > { %s3698_s28 = sadd.s32 4294967295, %s3604_s27   ;;  %s2744_s29 = sadd.s32 4294967294, %s3604_s27   ;;  %s3604_s27 = sphi %s3683_s27, %s4821_s27   ;;  %s3600_s26 = sphi %s3681_s26, %s4820_s26   ;;  %s3596_s25 = sphi %s3679_s25, %s4819_s25   ;;  %s3592_s24 = sphi %s3677_s24, %s4818_s24  }
   0x7   : > { %p44_p0 = scmp.ne.s32.totalorder %s3596_s25, %s3592_s24  ;;  %p4788_p1 = scmp.eq.s32.totalorder %s3698_s28, 0 }
   0x8   : > { %p205_p3 = scmp.eq.s32.totalorder %s2744_s29, 1  ;;  %p2745_p5 = scmp.ge.s32.totalorder %s3604_s27, 1 }
   0x9   : > { %p3707_p4 = por %p4788_p1, %p44_p0  ;;  %p212_p7 = scmp.lt.s32.totalorder %s3604_s27, 3 }
   0xa   : > { %p3712_p6 = por %p205_p3, %p44_p0  ;;  %s3606_s10 = smov [#allocation5]  }
   0xb   : > { %s4799_s30 = scalar_select %p3707_p4, 1, 0 }
   0xc   : > { %s4800_s8 = scalar_select %p3712_p6, 1, 0 }
   0xd   : > { %p3717_p8 = pnand %p2745_p5, %p212_p7  ;;  %s224_s11 = sshll.u32 %s3606_s10, 4  ;;  %s3721_s11 = int_to_ptr.vmem [resolvable:$true] %s224_s11 }
   0xe   : > { %s3733_s13 = sadd.s32 1, %s3604_s27   ;;  %s31_s14 = sadd.s32 1, %s3600_s26 }
   0xf   : > { %s4801_s9 = scalar_select %p3717_p8, 1, 0 }
  0x10   : > { %p2951_p9 = pneg %p3717_p8  ;;  %s28_s15 = ssub.s32 %s3604_s27, %s3733_s13 }
  0x11   : > { %s3476_s18 = scalar_lea.hbm %s4782_s2, 512 }
  0x12   : > { %p3728_p11 = pnand %p2951_p9, %p4788_p1  ;;  %p3477_p12 = scmp.ne.s32.totalorder %s4782_s2, %s3476_s18 }
  0x13   : > { %p3483_p5 = scmp.lt.u32.totalorder %s3476_s18, %s4782_s2 }
  0x14   : > { %p3478_p13 = pneg %p3728_p11 }
  0x16   : > { %p3479_p0 = pnand %p3478_p13, %p3477_p12 }
  0x18   : > { %p3480_p3 = pneg %p3479_p0 }
  0x1a   : > { %p3485_p7 = pnand %p3483_p5, %p3480_p3 }
  0x1c   : > { %3488 = shalt.err (!%p3485_p7)
}
  0x1d   : > { %s3489_s23 = scalar_lea.vmem %s3721_s11, 512  ;;  %p3497_p2 = scmp.lt.s32.totalorder %s3721_s11, %s3721_s11 }
  0x1e   : > { %p3490_p9 = scmp.ne.s32.totalorder %s3721_s11, %s3489_s23  ;;  %p3498_p6 = scmp.lt.s32.totalorder %s3489_s23, %s3489_s23 }
  0x20   : > { %p3492_p10 = pnand %p3490_p9, %p3478_p13  ;;  %p3499_p4 = por %p3498_p6, %p3497_p2 }
  0x22   : > { %p3493_p1 = pneg %p3492_p10 }
  0x24   : > { %p3500_p8 = pnand %p3499_p4, %p3493_p1 }
  0x26   : > { %3503 = shalt.err (!%p3500_p8)
}
  0x27   : > { %s3607_s29 = smov 128   ;;  %s3608_s10 = smov 8  }
  0x28   : > { %2954 = dma.hbm_to_vmem [thread:$0]  (!%p3728_p11), %s4782_s2, 512, %s3721_s11, [#allocation6], %s3607_s29, %s3607_s29, %s3608_s10  }
  0x29   : > { %p29_p2 = scmp.eq.s32.totalorder %s28_s15, 0  ;;  %p38_p1 = scmp.ne.s32.totalorder %s3600_s26, %s3596_s25 }
  0x2a   : > { %p39_p4 = scmp.eq.s32.totalorder %s3604_s27, 0  ;;  %p2964_p6 = scmp.lt.s32.totalorder %s3604_s27, 2 }
  0x2b   : > { %s3764_s18 = scalar_select %p29_p2, %s3600_s26, %s31_s14  }
  0x2c   : > { %p40_p8 = por %p39_p4, %p38_p1  ;;  %p4803_p10 = scmp.eq.s32.totalorder %s3698_s28, 1 }
  0x2d   : > { %s250_s20 = sand.u32 1, %s3600_s26   ;;  %s2804_s21 = sshll.u32 %s3604_s27, 10 }
  0x2e   : > { %p3768_p12 = por %p4803_p10, %p38_p1  ;;  %s2748_s22 = sshll.u32 %s250_s20, 6 }
  0x2f   : > { %s3777_s16 = scalar_lea.hbm %s4780_s0, %s2804_s21  ;;  %s254_s11 = scalar_lea.vmem [#allocation2], %s2748_s22 }
  0x30   : > { %s261_s14 = sshll.u32 %s254_s11, 4  ;;  %p3779_p11 = pnand %p2964_p6, %p40_p8  ;;  %s3783_s14 = int_to_ptr.vmem [resolvable:$true] %s261_s14 }
  0x31   : > { %s3785_s29 = scalar_lea.sflag [#allocation3], %s250_s20  ;;  %s3504_s10 = scalar_lea.hbm %s3777_s16, 1024 }
  0x32   : > { %p3505_p13 = scmp.ne.s32.totalorder %s3777_s16, %s3504_s10  ;;  %p3506_p0 = pneg %p3779_p11 }
  0x33   : > { %s3509_s22 = scalar_lea.hbm %s4780_s0, 2048  ;;  %p3510_p7 = scmp.lt.u32.totalorder %s3777_s16, %s4780_s0 }
  0x34   : > { %p3507_p3 = pnand %p3506_p0, %p3505_p13  ;;  %p3511_p9 = scmp.lt.u32.totalorder %s3509_s22, %s3504_s10 }
  0x35   : > { %p3513_p1 = scmp.lt.u32.totalorder %s3504_s10, %s3777_s16 }
  0x36   : > { %p3508_p5 = pneg %p3507_p3  ;;  %p3512_p2 = por %p3511_p9, %p3510_p7 }
  0x38   : > { %p3514_p4 = por %p3513_p1, %p3512_p2 }
  0x3a   : > { %p3515_p6 = pnand %p3514_p4, %p3508_p5 }
  0x3c   : > { %3518 = shalt.err (!%p3515_p6)
}
  0x3d   : > { %s3519_s20 = scalar_lea.vmem %s3783_s14, 1024  ;;  %s3609_s11 = smov [#allocation2]  }
  0x3e   : > { %p3520_p8 = scmp.ne.s32.totalorder %s3783_s14, %s3519_s20  ;;  %s3524_s17 = sshll.u32 %s3609_s11, 4  ;;  %s3525_s17 = int_to_ptr.vmem [resolvable:$false] %s3524_s17 }
  0x3f   : > { %s3526_s21 = scalar_lea.vmem %s3525_s17, 2048  ;;  %p3527_p3 = scmp.lt.s32.totalorder %s3783_s14, %s3525_s17 }
  0x40   : > { %p3522_p10 = pnand %p3520_p8, %p3506_p0  ;;  %p3528_p7 = scmp.lt.s32.totalorder %s3526_s21, %s3519_s20 }
  0x42   : > { %p3523_p13 = pneg %p3522_p10  ;;  %p3529_p9 = por %p3528_p7, %p3527_p3 }
  0x44   : > { %p3530_p2 = pnand %p3529_p9, %p3523_p13 }
  0x46   : > { %3533 = shalt.err (!%p3530_p2)
}
  0x47   : > { %s3610_s10 = smov 256   ;;  %s3611_s22 = smov 16  }
  0x48   : > { %2958 = dma.hbm_to_vmem [thread:$0]  (!%p3779_p11), %s3777_s16, 1024, %s3783_s14, %s3785_s29, %s3610_s10, %s3610_s10, %s3611_s22  }
  0x49   : > { %p4806_p0 = scmp.ne.s32.totalorder %s4801_s9, 0 }
  0x4a   : > { %s3816_s12 = sand.u32 (!%p4806_p0), 1, %s3596_s25   ;;  %p4807_p5 = scmp.ne.s32.totalorder (!%p4806_p0), %s4799_s30, 0 }
  0x4b   : > { %281 = sbr.rel (%p4806_p0) target bundleno = 3089 (0xc11), region = 48  ;;  %s4791_s23 = sshll.u32 (!%p4806_p0), %s3816_s12, 6 }
  0x4c   : > { %s284_s20 = scalar_lea.sflag (!%p4806_p0), [#allocation3], %s3816_s12  ;;  %s3822_s11 = scalar_lea.vmem (!%p4806_p0), [#allocation2], %s4791_s23 }
  0x52   : > { %3579 = dma.done.wait (%p4807_p5), %s284_s20, 1024  }
  0x53   : > { %3581 = vsyncadd (%p4807_p5), %s284_s20, 4294966272  ;;  %p4808_p11 = scmp.eq.s32.totalorder %s3698_s28, 0 }
  0x55   : > { %3583 = dma.done.wait (%p4808_p11), [#allocation6], 512   ;;  %p4809_p1 = pmov %p4808_p11 }
  0x56   : > { %v3833_v0 = vld [vmem:[%s3822_s11 + $0x20] sm:$0xff]  ;;  %v3836_v1 = vld [vmem:[%s3822_s11 + $0x28] sm:$0xff]  ;;  %v3843_v5 = vld [vmem:[%s3822_s11 + $0x30] sm:$0xff]  ;;  %vm4798_vm0 = vcmask 261120   ;;  %v3612_v13 = vmov 0   ;;  %s3616_s10 = smov 17  }
  0x57   : > { %3585 = vsyncadd (%p4809_p1), [#allocation6], 4294966784  ;;  %v342_v2 = vld [vmem:[%s3822_s11] sm:$0xff]  ;;  %v360_v3 = vadd.f32 %v3836_v1, %v3833_v0  ;;  %v343_v4 = vld [vmem:[%s3822_s11 + $0x8] sm:$0xff]  ;;  %3029 = vset.pattern.permute.xlu1 %v3612_v13  ;;  %3028 = vset.pattern.permute.xlu0 %v3612_v13  ;;  %s3617_s22 = smov 16   ;;  %s3618_s20 = smov 15  }
  0x58   : > { %v3846_v6 = vld [vmem:[%s3822_s11 + $0x38] sm:$0xff]  ;;  %v354_v7 = vadd.f32 %v343_v4, %v342_v2  ;;  %v344_v8 = vld [vmem:[%s3822_s11 + $0x10] sm:$0xff]  ;;  %v333_v12 = vld [vmem:[#allocation5] sm:$0xff]  ;;  %s3619_s30 = smov 1   ;;  %s3620_s9 = smov 127  }
  0x59   : > { %v345_v9 = vld [vmem:[%s3822_s11 + $0x18] sm:$0xff]  ;;  %361 = vadd.xlane.f32.xlu1 %v360_v3  ;;  %v363_v10 = vadd.f32 %v3846_v6, %v3843_v5  ;;  %2847 = vmatprep.mubr.msk.f32.mxu0 %vm4798_vm0, %v333_v12  ;;  %v334_v24 = vld [vmem:[#allocation5 + $0x8] sm:$0xff]  ;;  %v335_v25 = vld [vmem:[#allocation5 + $0x10] sm:$0xff]  ;;  %s4796_s16 = smov 113   ;;  %s4794_s14 = smov 112  }
  0x5a   : > { %355 = vadd.xlane.f32.xlu0 %v354_v7  ;;  %v357_v11 = vadd.f32 %v345_v9, %v344_v8  ;;  %2875 = vmatprep.mubr.msk.f32.mxu1 %vm4798_vm0, %v333_v12  ;;  %v336_v26 = vld [vmem:[#allocation5 + $0x18] sm:$0xff]  ;;  %v3908_v3 = vld [vmem:[%s4786_s6 + $0x8] sm:$0xff]  ;;  %s4792_s15 = smov 111   ;;  %p327_p4 = scmp.lt.s32.totalorder %s3698_s28, 1 }
  0x5b   : > { %s2806_s21 = sshll.u32 %s3698_s28, 10 }
  0x5c   : > { %s328_s17 = scalar_select %p327_p4, %s3698_s28, 1 }
  0x5d   : > { %364 = vadd.xlane.f32.xlu1 %v363_v10 }
  0x5e   : > { %358 = vadd.xlane.f32.xlu0 %v357_v11  ;;  %s2805_s23 = sshll.u32 %s328_s17, 5 }
  0x5f   : > { %s4091_s17 = scalar_lea.vmem %s4781_s1, %s2805_s23 }
  0xe6   : > { %v362_v14 = vpop.xlane.xlu1 %361 }
  0xe7   : > { %v356_v15 = vpop.xlane.xlu0 %355  ;;  %v369_v18 = vmul.f32 0.00390625, %v362_v14 }
  0xe8   : > { %v367_v19 = vmul.f32 0.00390625, %v356_v15 }
  0xea   : > { %v365_v16 = vpop.xlane.xlu1 %364 }
  0xeb   : > { %v359_v17 = vpop.xlane.xlu0 %358  ;;  %v370_v20 = vmul.f32 0.00390625, %v365_v16 }
  0xec   : > { %v368_v21 = vmul.f32 0.00390625, %v359_v17  ;;  %v3917_v17 = vld [vmem:[%s4786_s6 + $0x18] sm:$0xff] }
  0xed   : > { %v2899_v23 = vpack.c.bf16 %v370_v20, %v369_v18  ;;  %v3922_v18 = vld [vmem:[%s4786_s6 + $0x10] sm:$0xff] }
  0xee   : > { %v2895_v22 = vpack.c.bf16 %v368_v21, %v367_v19 }
  0xf0   : > { %2896 = vmatprep.subr.bf16.mxu0 %v2895_v22 }
  0xf1   : > { %2898 = vmatpush3.bf16.msra.mxu0 %v2895_v22 }
  0xf2   : > { %2900 = vmatprep.subr.bf16.mxu0 %v2899_v23 }
  0xf5   : > { %2902 = vmatpush3.bf16.msra.mxu0 %v2899_v23  ;;  %v3614_v23 = vmov 2  }
  0xf8   : > { %2848 = vmatmul.mubr.msk.f32.vlgmr.msra.gmra.mrb[0].mxu0 %vm4798_vm0, %v334_v24 }
  0xf9   : > { %2850 = vmatprep.mubr.msk.f32.mxu0 %vm4798_vm0, %v335_v25 }
  0xfc   : > { %2851 = vmatmul.mubr.msk.f32.gmra.mrb[2].mxu0 %vm4798_vm0, %v336_v26 }
  0xfd   : > { %2861 = vmatprep.mubr.msk.f32.mxu0 %vm4798_vm0, %v333_v12 }
 0x1cb   : > { %v2849_v27 = vpop.f32.mrb[0].mxu0 }
 0x1cc   : > { %476 = vperm.xlu1 %3029, %v2849_v27   ;;  %v450_v28 = vpop.f32.mrb[1].mxu0 }
 0x1cd   : > { %471 = vperm.xlu0 %3028, %v450_v28  }
 0x1cf   : > { %v2852_v29 = vpop.f32.mrb[2].mxu0 }
 0x1d0   : > { %v460_v30 = vpop.f32.mrb[3].mxu0 }
 0x1d1   : > { %481 = vperm.xlu1 %3029, %v460_v30  }
 0x1d5   : > { %486 = vperm.xlu1 %3029, %v2852_v29  }
 0x24b   : > { %v477_v31 = vpop.permute.xlu1 %476 }
 0x24c   : > { %v3860_v32 = vsub.f32 %v344_v8, %v477_v31  ;;  %v3862_v33 = vsub.f32 %v345_v9, %v477_v31  ;;  %v472_v34 = vpop.permute.xlu0 %471 }
 0x24d   : > { %v3864_v35 = vsub.f32 %v342_v2, %v472_v34  ;;  %v3866_v36 = vsub.f32 %v343_v4, %v472_v34  ;;  %v3902_v2 = vld [vmem:[%s4786_s6] sm:$0xff] }
 0x24e   : > { %v499_v37 = vmul.f32 %v3860_v32, %v3860_v32  ;;  %v500_v38 = vmul.f32 %v3862_v33, %v3862_v33 }
 0x24f   : > { %v497_v39 = vmul.f32 %v3864_v35, %v3864_v35  ;;  %v498_v40 = vmul.f32 %v3866_v36, %v3866_v36 }
 0x250   : > { %v482_v41 = vpop.permute.xlu1 %481  ;;  %v508_v42 = vadd.f32 %v500_v38, %v499_v37 }
 0x251   : > { %v3877_v43 = vsub.f32 %v3833_v0, %v482_v41  ;;  %v3880_v44 = vsub.f32 %v3836_v1, %v482_v41  ;;  %v505_v45 = vadd.f32 %v498_v40, %v497_v39  ;;  %v3613_v1 = vmov 1  }
 0x252   : > { %509 = vadd.xlane.f32.xlu0 %v508_v42  ;;  %3030 = vset.pattern.permute.xlu1 %v3613_v1 }
 0x253   : > { %506 = vadd.xlane.f32.xlu1 %v505_v45  ;;  %v501_v46 = vmul.f32 %v3877_v43, %v3877_v43  ;;  %v502_v47 = vmul.f32 %v3880_v44, %v3880_v44 }
 0x254   : > { %v487_v48 = vpop.permute.xlu1 %486 }
 0x255   : > { %v3887_v49 = vsub.f32 %v3843_v5, %v487_v48  ;;  %v3890_v50 = vsub.f32 %v3846_v6, %v487_v48  ;;  %v511_v51 = vadd.f32 %v502_v47, %v501_v46 }
 0x257   : > { %512 = vadd.xlane.f32.xlu1 %v511_v51  ;;  %v503_v52 = vmul.f32 %v3887_v49, %v3887_v49  ;;  %v504_v53 = vmul.f32 %v3890_v50, %v3890_v50 }
 0x259   : > { %v514_v54 = vadd.f32 %v504_v53, %v503_v52 }
 0x25b   : > { %515 = vadd.xlane.f32.xlu1 %v514_v54 }
 0x26c   : > { %644 = vperm.xlu1 %3030, %v3902_v2  }
 0x270   : > { %649 = vperm.xlu1 %3030, %v3908_v3  }
 0x274   : > { %3031 = vset.pattern.permute.xlu1 %v3612_v13 }
 0x2df   : > { %v510_v55 = vpop.xlane.xlu0 %509 }
 0x2e0   : > { %v518_v56 = vmul.f32 0.00390625, %v510_v55  ;;  %v507_v57 = vpop.xlane.xlu1 %506 }
 0x2e1   : > { %v517_v58 = vmul.f32 0.00390625, %v507_v57 }
 0x2e3   : > { %v2903_v59 = vpack.c.bf16 %v518_v56, %v517_v58 }
 0x2e4   : > { %v513_v60 = vpop.xlane.xlu1 %512 }
 0x2e5   : > { %2904 = vmatprep.subr.bf16.mxu0 %v2903_v59  ;;  %v519_v62 = vmul.f32 0.00390625, %v513_v60 }
 0x2e6   : > { %2906 = vmatpush3.bf16.msra.mxu0 %v2903_v59 }
 0x2e8   : > { %v516_v61 = vpop.xlane.xlu1 %515 }
 0x2e9   : > { %v520_v63 = vmul.f32 0.00390625, %v516_v61 }
 0x2eb   : > { %v2907_v0 = vpack.c.bf16 %v520_v63, %v519_v62 }
 0x2ed   : > { %2908 = vmatprep.subr.bf16.mxu0 %v2907_v0 }
 0x2ee   : > { %2910 = vmatpush3.bf16.msra.mxu0 %v2907_v0 }
 0x2f1   : > { %2862 = vmatmul.mubr.msk.f32.vlgmr.msra.gmra.mrb[4].mxu0 %vm4798_vm0, %v334_v24  ;;  %v645_v24 = vpop.permute.xlu1 %644 }
 0x2f2   : > { %2864 = vmatprep.mubr.msk.f32.mxu0 %vm4798_vm0, %v335_v25 }
 0x2f5   : > { %2865 = vmatmul.mubr.msk.f32.gmra.mrb[6].mxu0 %vm4798_vm0, %v336_v26  ;;  %v650_v25 = vpop.permute.xlu1 %649 }
 0x3c4   : > { %v2863_v4 = vpop.f32.mrb[4].mxu0 }
 0x3c5   : > { %v593_v5 = vadd.f32 1e-05, %v2863_v4  ;;  %v587_v6 = vpop.f32.mrb[5].mxu0 }
 0x3c6   : > { %v588_v7 = vadd.f32 1e-05, %v587_v6 }
 0x3c7   : > { %3412 = vrsqrt.f32 %v593_v5 }
 0x3c8   : > { %3414 = vrsqrt.f32 %v588_v7  ;;  %v2866_v8 = vpop.f32.mrb[6].mxu0 }
 0x3c9   : > { %v603_v9 = vadd.f32 1e-05, %v2866_v8  ;;  %v597_v10 = vpop.f32.mrb[7].mxu0 }
 0x3ca   : > { %v598_v11 = vadd.f32 1e-05, %v597_v10 }
 0x3cb   : > { %3416 = vrsqrt.f32 %v603_v9 }
 0x3cc   : > { %3418 = vrsqrt.f32 %v598_v11 }
 0x3d1   : > { %v3413_v12 = vpop.eup %3412 }
 0x3d2   : > { %v3415_v14 = vpop.eup %3414  ;;  %v611_v15 = vmul.f32 %v3413_v12, %v3908_v3 }
 0x3d3   : > { %v610_v16 = vmul.f32 %v3415_v14, %v3902_v2 }
 0x3d4   : > { %621 = vperm.xlu0 %3028, %v611_v15  }
 0x3d5   : > { %v3417_v19 = vpop.eup %3416  ;;  %616 = vperm.xlu1 %3031, %v610_v16  }
 0x3d6   : > { %v3419_v20 = vpop.eup %3418  ;;  %v613_v21 = vmul.f32 %v3417_v19, %v3917_v17 }
 0x3d7   : > { %v612_v22 = vmul.f32 %v3419_v20, %v3922_v18 }
 0x3d8   : > { %631 = vperm.xlu0 %3028, %v613_v21  }
 0x3d9   : > { %626 = vperm.xlu1 %3031, %v612_v22  }
 0x3dc   : > { %3033 = vset.pattern.permute.xlu0 %v3613_v1 }
 0x3dd   : > { %659 = vperm.xlu0 %3033, %v3917_v17   ;;  %3032 = vset.pattern.permute.xlu1 %v3613_v1 }
 0x3de   : > { %654 = vperm.xlu1 %3032, %v3922_v18  }
 0x3e1   : > { %3035 = vset.pattern.permute.xlu0 %v3614_v23 }
 0x3e2   : > { %3034 = vset.pattern.permute.xlu1 %v3614_v23  ;;  %719 = vperm.xlu0 %3035, %v3922_v18  }
 0x3e3   : > { %711 = vperm.xlu1 %3034, %v3902_v2  }
 0x3e7   : > { %715 = vperm.xlu1 %3034, %v3908_v3  }
 0x3eb   : > { %723 = vperm.xlu1 %3034, %v3917_v17  }
 0x453   : > { %v622_v26 = vpop.permute.xlu0 %621 }
 0x454   : > { %v636_v27 = vmul.f32 %v622_v26, %v3860_v32  ;;  %v637_v28 = vmul.f32 %v622_v26, %v3862_v33  ;;  %v617_v29 = vpop.permute.xlu1 %616 }
 0x455   : > { %v634_v30 = vmul.f32 %v617_v29, %v3864_v35  ;;  %v635_v31 = vmul.f32 %v617_v29, %v3866_v36 }
 0x456   : > { %v664_v34 = vadd.f32 %v650_v25, %v636_v27  ;;  %v665_v37 = vadd.f32 %v650_v25, %v637_v28 }
 0x457   : > { %v662_v38 = vadd.f32 %v645_v24, %v634_v30  ;;  %v663_v39 = vadd.f32 %v645_v24, %v635_v31  ;;  %v632_v40 = vpop.permute.xlu0 %631  ;;  %v3615_v24 = vmov 0.0  }
 0x458   : > { %v672_v41 = vmul.f32 0.5, %v664_v34  ;;  %v673_v42 = vmul.f32 0.5, %v665_v37  ;;  %v627_v45 = vpop.permute.xlu1 %626  ;;  %v640_v32 = vmul.f32 %v632_v40, %v3887_v49  ;;  %v641_v33 = vmul.f32 %v632_v40, %v3890_v50 }
 0x459   : > { %v670_v46 = vmul.f32 0.5, %v662_v38  ;;  %v671_v47 = vmul.f32 0.5, %v663_v39  ;;  %v638_v35 = vmul.f32 %v627_v45, %v3877_v43  ;;  %v639_v36 = vmul.f32 %v627_v45, %v3880_v44 }
 0x45a   : > { %3420 = vtanh.f32 %v672_v41 }
 0x45b   : > { %3422 = vtanh.f32 %v673_v42 }
 0x45c   : > { %3424 = vtanh.f32 %v670_v46  ;;  %v660_v48 = vpop.permute.xlu0 %659 }
 0x45d   : > { %3426 = vtanh.f32 %v671_v47  ;;  %v3940_v51 = vadd.f32 %v660_v48, %v640_v32  ;;  %v3942_v52 = vadd.f32 %v660_v48, %v641_v33  ;;  %v655_v53 = vpop.permute.xlu1 %654 }
 0x45e   : > { %v3944_v54 = vadd.f32 %v655_v53, %v638_v35  ;;  %v3946_v55 = vadd.f32 %v655_v53, %v639_v36 }
 0x45f   : > { %v676_v49 = vmul.f32 0.5, %v3940_v51  ;;  %v677_v50 = vmul.f32 0.5, %v3942_v52 }
 0x460   : > { %v674_v56 = vmul.f32 0.5, %v3944_v54  ;;  %v675_v43 = vmul.f32 0.5, %v3946_v55 }
 0x461   : > { %3428 = vtanh.f32 %v676_v49  ;;  %v720_v53 = vpop.permute.xlu0 %719 }
 0x462   : > { %3430 = vtanh.f32 %v677_v50  ;;  %v712_v57 = vpop.permute.xlu1 %711 }
 0x463   : > { %3432 = vtanh.f32 %v674_v56 }
 0x464   : > { %v3421_v44 = vpop.eup %3420  ;;  %3434 = vtanh.f32 %v675_v43 }
 0x465   : > { %v3423_v58 = vpop.eup %3422  ;;  %v688_v59 = vmul.f32 0.5, %v3421_v44 }
 0x466   : > { %v3425_v60 = vpop.eup %3424  ;;  %v689_v61 = vmul.f32 0.5, %v3423_v58  ;;  %v716_v9 = vpop.permute.xlu1 %715 }
 0x467   : > { %v3427_v62 = vpop.eup %3426  ;;  %v686_v63 = vmul.f32 0.5, %v3425_v60  ;;  %v696_v0 = vadd.f32 0.5, %v688_v59 }
 0x468   : > { %v687_v1 = vmul.f32 0.5, %v3427_v62  ;;  %v697_v4 = vadd.f32 0.5, %v689_v61 }
 0x469   : > { %v694_v5 = vadd.f32 0.5, %v686_v63  ;;  %v3952_v6 = vmul.f32 %v696_v0, %v664_v34 }
 0x46a   : > { %v695_v7 = vadd.f32 0.5, %v687_v1  ;;  %v3954_v8 = vmul.f32 %v697_v4, %v665_v37  ;;  %v724_v32 = vpop.permute.xlu1 %723 }
 0x46b   : > { %v3429_v10 = vpop.eup %3428  ;;  %v3956_v11 = vmul.f32 %v694_v5, %v662_v38  ;;  %v728_v12 = vadd.f32 %v716_v9, %v3952_v6 }
 0x46c   : > { %v3431_v14 = vpop.eup %3430  ;;  %v3959_v15 = vmul.f32 %v695_v7, %v663_v39  ;;  %v729_v16 = vadd.f32 %v716_v9, %v3954_v8  ;;  %v692_v19 = vmul.f32 0.5, %v3429_v10  ;;  %v3398_v10 = vld [vmem:[%s4784_s4 + $0x4] ss:$12 sps:$4 sm:$0xff]  }
 0x46d   : > { %v726_v20 = vadd.f32 %v712_v57, %v3956_v11  ;;  %vm736_vm1 = vcmp.gt.f32.partialorder %v728_v12, 0.0  ;;  %vm744_vm2 = vcmp.lt.f32.partialorder %v728_v12, 0.0  ;;  %v693_v21 = vmul.f32 0.5, %v3431_v14  ;;  %v3433_v22 = vpop.eup %3432  ;;  %1353 = vmatprep.mubr.bf16.mxu0 %v3398_v10 }
 0x46e   : > { %v727_v23 = vadd.f32 %v712_v57, %v3959_v15  ;;  %vm737_vm3 = vcmp.gt.f32.partialorder %v729_v16, 0.0  ;;  %vm745_vm4 = vcmp.lt.f32.partialorder %v729_v16, 0.0  ;;  %v752_v25 = vsel %vm744_vm2, -1.0, %v3615_v24  ;;  %v3435_v26 = vpop.eup %3434 }
 0x46f   : > { %vm734_vm5 = vcmp.gt.f32.partialorder %v726_v20, 0.0  ;;  %vm742_vm6 = vcmp.lt.f32.partialorder %v726_v20, 0.0  ;;  %v753_v27 = vsel %vm745_vm4, -1.0, %v3615_v24  ;;  %v3966_v28 = vsel %vm736_vm1, 1.0, %v752_v25  ;;  %v337_v20 = vld [vmem:[%s4783_s3] sm:$0x11] }
 0x470   : > { %vm735_vm7 = vcmp.gt.f32.partialorder %v727_v23, 0.0  ;;  %vm743_vm8 = vcmp.lt.f32.partialorder %v727_v23, 0.0  ;;  %v750_v29 = vsel %vm742_vm6, -1.0, %v3615_v24  ;;  %v3969_v30 = vsel %vm737_vm3, 1.0, %v753_v27 }
 0x471   : > { %v751_v31 = vsel %vm743_vm8, -1.0, %v3615_v24  ;;  %v3972_v34 = vsel %vm734_vm5, 1.0, %v750_v29  ;;  %v700_v37 = vadd.f32 0.5, %v692_v19  ;;  %v701_v38 = vadd.f32 0.5, %v693_v21 }
 0x472   : > { %v3974_v39 = vsel %vm735_vm7, 1.0, %v751_v31  ;;  %v690_v40 = vmul.f32 0.5, %v3433_v22  ;;  %v691_v41 = vmul.f32 0.5, %v3435_v26  ;;  %v3041_v42 = vpack.i.bf16 %v3966_v28, %v3972_v34 }
 0x473   : > { %v3979_v45 = vmul.f32 %v700_v37, %v3940_v51  ;;  %v3982_v46 = vmul.f32 %v701_v38, %v3942_v52  ;;  %v3036_v47 = vpack.i.bf16 %v3969_v30, %v3974_v39  ;;  %v1021_v62 = vpack.c.bf16 %v3969_v30, %v3974_v39 }
 0x474   : > { %v698_v33 = vadd.f32 0.5, %v690_v40  ;;  %v699_v35 = vadd.f32 0.5, %v691_v41  ;;  %3042 = vrot.lane.b32.xlu0 %v3041_v42, %s3616_s10  ;;  %v1020_v63 = vpack.c.bf16 %v3966_v28, %v3972_v34  ;;  %v3116_v4 = vpack.i.bf16 %v3974_v39, %v3972_v34 }
 0x475   : > { %v732_v36 = vadd.f32 %v724_v32, %v3979_v45  ;;  %v733_v48 = vadd.f32 %v724_v32, %v3982_v46  ;;  %3037 = vrot.lane.b32.xlu1 %v3036_v47, %s3616_s10  ;;  %v3121_v5 = vpack.i.bf16 %v3969_v30, %v3966_v28  ;;  %v3624_v12 = vmov 6  }
 0x476   : > { %v3991_v51 = vmul.f32 %v698_v33, %v3944_v54  ;;  %v3994_v52 = vmul.f32 %v699_v35, %v3946_v55  ;;  %3196 = vset.pattern.permute.xlu1 %v3624_v12  ;;  %3197 = vset.pattern.permute.xlu0 %v3624_v12  ;;  %v3625_v14 = vmov 4   ;;  %v3626_v16 = vmov 3  }
 0x477   : > { %vm740_vm9 = vcmp.gt.f32.partialorder %v732_v36, 0.0  ;;  %vm741_vm10 = vcmp.gt.f32.partialorder %v733_v48, 0.0  ;;  %vm748_vm11 = vcmp.lt.f32.partialorder %v732_v36, 0.0  ;;  %vm749_vm12 = vcmp.lt.f32.partialorder %v733_v48, 0.0 }
 0x478   : > { %v756_v49 = vsel %vm748_vm11, -1.0, %v3615_v24  ;;  %v757_v50 = vsel %vm749_vm12, -1.0, %v3615_v24  ;;  %v730_v56 = vadd.f32 %v720_v53, %v3991_v51  ;;  %v731_v43 = vadd.f32 %v720_v53, %v3994_v52 }
 0x479   : > { %v4000_v44 = vsel %vm740_vm9, 1.0, %v756_v49  ;;  %v4002_v57 = vsel %vm741_vm10, 1.0, %v757_v50  ;;  %v823_v19 = vlaneseq  ;;  %v2765_v21 = vcombine.low %v337_v20, %v337_v20 }
 0x47a   : > { %vm738_vm13 = vcmp.gt.f32.partialorder %v730_v56, 0.0  ;;  %vm739_vm14 = vcmp.gt.f32.partialorder %v731_v43, 0.0  ;;  %vm746_vm15 = vcmp.lt.f32.partialorder %v730_v56, 0.0  ;;  %vm747_vm1 = vcmp.lt.f32.partialorder %v731_v43, 0.0 }
 0x47b   : > { %v754_v54 = vsel %vm746_vm15, -1.0, %v3615_v24  ;;  %v755_v55 = vsel %vm747_vm1, -1.0, %v3615_v24  ;;  %v3126_v9 = vpack.i.bf16 %v4002_v57, %v4000_v44  ;;  %v2766_v22 = vcombine.high %v337_v20, %v337_v20 }
 0x47c   : > { %v4006_v58 = vsel %vm738_vm13, 1.0, %v754_v54  ;;  %v4008_v59 = vsel %vm739_vm14, 1.0, %v755_v55  ;;  %v4077_v23 = vshrl.u32 %v823_v19, 7  ;;  %v821_v27 = vpack.i.b16 %v2765_v21, %v2765_v21 }
 0x47d   : > { %v3046_v60 = vpack.i.bf16 %v4002_v57, %v4008_v59  ;;  %v3056_v61 = vpack.i.bf16 %v4000_v44, %v4006_v58  ;;  %v1023_v0 = vpack.c.bf16 %v4002_v57, %v4008_v59  ;;  %v1022_v1 = vpack.c.bf16 %v4000_v44, %v4006_v58 }
 0x47e   : > { %v3131_v7 = vpack.i.bf16 %v4008_v59, %v4006_v58  ;;  %v4083_v25 = vsub.s32 0, %v4077_v23  ;;  %v828_v26 = vpack.i.b16 %v2766_v22, %v2766_v22  ;;  %v3627_v29 = vmov 5  }
 0x47f   : > { %3047 = vrot.lane.b32.xlu1 %v3046_v60, %s3616_s10  ;;  %3057 = vrot.lane.b32.xlu0 %v3056_v61, %s3616_s10  ;;  %vm794_vm2 = vcmask 138240   ;;  %v886_v54 = vshrl.u32 %v2766_v22, 16  ;;  %v879_v55 = vshrl.u32 %v2765_v21, 16  ;;  %vm858_vm3 = vcmask 130048  }
 0x480   : > { %v4095_v32 = vrot.slane %v828_v26, %v4083_v25  ;;  %v4098_v33 = vrot.slane %v821_v27, %v4083_v25  ;;  %vm917_vm4 = vcmask 121856   ;;  %vm981_vm5 = vcmask 7168  }
 0x481   : > { %vm1040_vm6 = vcmask 1039360   ;;  %vm1106_vm7 = vcmask 924672   ;;  %vm1170_vm8 = vcmask 916480   ;;  %vm1229_vm9 = vcmask 908288  }
 0x483   : > { %3052 = vrot.lane.b32.xlu1 %v3036_v47, %s3617_s22  ;;  %3062 = vrot.lane.b32.xlu0 %v3041_v42, %s3617_s22 }
 0x487   : > { %3067 = vrot.lane.b32.xlu1 %v3046_v60, %s3617_s22  ;;  %3077 = vrot.lane.b32.xlu0 %v3056_v61, %s3617_s22 }
 0x48b   : > { %3072 = vrot.lane.b32.xlu1 %v3036_v47, %s3618_s20  ;;  %3082 = vrot.lane.b32.xlu0 %v3041_v42, %s3618_s20 }
 0x48f   : > { %3087 = vrot.lane.b32.xlu1 %v3046_v60, %s3618_s20  ;;  %3097 = vrot.lane.b32.xlu0 %v3056_v61, %s3618_s20 }
 0x493   : > { %3092 = vrot.lane.b32.xlu1 %v3036_v47, %s3619_s30  ;;  %3102 = vrot.lane.b32.xlu0 %v3041_v42, %s3619_s30  ;;  %v1549_v47 = vld [vmem:[%s4091_s17 + $0x10] sm:$0xff] }
 0x497   : > { %3107 = vrot.lane.b32.xlu1 %v3046_v60, %s3619_s30  ;;  %3112 = vrot.lane.b32.xlu0 %v3056_v61, %s3619_s30 }
 0x49b   : > { %3117 = vrot.lane.b32.xlu1 %v3116_v4, %s3620_s9  ;;  %3122 = vrot.lane.b32.xlu0 %v3121_v5, %s3620_s9 }
 0x49f   : > { %3132 = vrot.lane.b32.xlu1 %v3131_v7, %s3620_s9  ;;  %3127 = vrot.lane.b32.xlu0 %v3126_v9, %s3620_s9 }
 0x4a3   : > { %3137 = vrot.lane.b32.xlu1 %v3116_v4, %s4796_s16  ;;  %3142 = vrot.lane.b32.xlu0 %v3121_v5, %s4796_s16 }
 0x4a7   : > { %3152 = vrot.lane.b32.xlu1 %v3131_v7, %s4796_s16  ;;  %3147 = vrot.lane.b32.xlu0 %v3126_v9, %s4796_s16  ;;  %s4815_s16 = sshll.u32 %s3816_s12, 6 }
 0x4ab   : > { %3157 = vrot.lane.b32.xlu1 %v3116_v4, %s4794_s14  ;;  %3162 = vrot.lane.b32.xlu0 %v3121_v5, %s4794_s14 }
 0x4af   : > { %3167 = vrot.lane.b32.xlu1 %v3131_v7, %s4794_s14  ;;  %3172 = vrot.lane.b32.xlu0 %v3126_v9, %s4794_s14  ;;  %s4728_s14 = scalar_lea.hbm %s4787_s7, %s2806_s21 }
 0x4b3   : > { %3177 = vrot.lane.b32.xlu1 %v3116_v4, %s4792_s15  ;;  %3182 = vrot.lane.b32.xlu0 %v3121_v5, %s4792_s15  ;;  %v887_v4 = vpack.i.b16 %v886_v54, %v886_v54 }
 0x4b7   : > { %3187 = vrot.lane.b32.xlu1 %v3131_v7, %s4792_s15  ;;  %3192 = vrot.lane.b32.xlu0 %v3126_v9, %s4792_s15  ;;  %s2636_s15 = scalar_lea.sflag [#allocation4], %s3816_s12 }
 0x4bb   : > { %1428 = vperm.xlu1 %3196, %v3902_v2   ;;  %1432 = vperm.xlu0 %3197, %v3908_v3  }
 0x4bf   : > { %3198 = vset.pattern.permute.xlu1 %v3625_v14  ;;  %1436 = vperm.xlu0 %3197, %v3922_v18  }
 0x4c0   : > { %1452 = vperm.xlu1 %3198, %v3902_v2  }
 0x4c3   : > { %3202 = vset.pattern.permute.xlu0 %v3625_v14 }
 0x4c4   : > { %1456 = vperm.xlu1 %3198, %v3908_v3   ;;  %1464 = vperm.xlu0 %3202, %v3917_v17  }
 0x4c8   : > { %3199 = vset.pattern.permute.xlu1 %v3624_v12  ;;  %3203 = vset.pattern.permute.xlu0 %v3626_v16  ;;  %v880_v12 = vpack.i.b16 %v879_v55, %v879_v55  ;;  %v4136_v55 = vsub.s32 1, %v4077_v23 }
 0x4c9   : > { %1440 = vperm.xlu1 %3199, %v3917_v17   ;;  %1484 = vperm.xlu0 %3203, %v3902_v2  }
 0x4cd   : > { %3200 = vset.pattern.permute.xlu1 %v3626_v16  ;;  %1492 = vperm.xlu0 %3203, %v3922_v18  }
 0x4ce   : > { %1488 = vperm.xlu1 %3200, %v3908_v3  }
 0x4d1   : > { %3207 = vset.pattern.permute.xlu0 %v3627_v29 }
 0x4d2   : > { %3201 = vset.pattern.permute.xlu1 %v3625_v14  ;;  %1528 = vperm.xlu0 %3207, %v3917_v17  }
 0x4d3   : > { %1460 = vperm.xlu1 %3201, %v3922_v18  }
 0x4d6   : > { %3209 = vset.pattern.permute.xlu0 %v3612_v13 }
 0x4d7   : > { %3204 = vset.pattern.permute.xlu1 %v3627_v29  ;;  %1563 = vperm.xlu0 %3209, %v1549_v47  }
 0x4d8   : > { %1516 = vperm.xlu1 %3204, %v3902_v2   ;;  %v338_v2 = vld [vmem:[%s4783_s3] sm:$0x22] }
 0x4dc   : > { %1520 = vperm.xlu1 %3204, %v3908_v3  }
 0x4e0   : > { %3205 = vset.pattern.permute.xlu1 %v3626_v16  ;;  %v4127_v16 = vrot.slane %v880_v12, %v4083_v25 }
 0x4e1   : > { %1496 = vperm.xlu1 %3205, %v3917_v17  }
 0x4e5   : > { %3206 = vset.pattern.permute.xlu1 %v3627_v29 }
 0x4e6   : > { %v3043_v31 = vpop.permute.xlu0 %3042  ;;  %1524 = vperm.xlu1 %3206, %v3922_v18  }
 0x4e7   : > { %v3045_v37 = vunpack.i.h.bf16 %v3043_v31  ;;  %v3044_v38 = vunpack.i.l.bf16 %v3043_v31  ;;  %v3038_v40 = vpop.permute.xlu1 %3037  ;;  %v4119_v31 = vrot.slane %v887_v4, %v4083_v25 }
 0x4e8   : > { %v3040_v41 = vunpack.i.h.bf16 %v3038_v40  ;;  %v3039_v42 = vunpack.i.l.bf16 %v3038_v40 }
 0x4ea   : > { %v808_v35 = vsel %vm794_vm2, %v3040_v41, %v3045_v37  ;;  %v807_v36 = vsel %vm794_vm2, %v3039_v42, %v3044_v38  ;;  %v795_v48 = vsel %vm794_vm2, %v3044_v38, %v3039_v42  ;;  %v796_v53 = vsel %vm794_vm2, %v3045_v37, %v3040_v41  ;;  %3208 = vset.pattern.permute.xlu1 %v3612_v13 }
 0x4eb   : > { %v811_v49 = vpack.c.bf16 %v808_v35, %v807_v36  ;;  %v812_v50 = vpack.c.bf16 %v796_v53, %v795_v48  ;;  %v4121_v37 = vcombine.high %v338_v2, %v338_v2  ;;  %v4129_v36 = vcombine.low %v338_v2, %v338_v2 }
 0x4ed   : > { %v835_v56 = vmul.bf16 %v4095_v32, %v812_v50  ;;  %v834_v43 = vmul.bf16 %v4098_v33, %v811_v49  ;;  %v944_v2 = vpack.i.b16 %v4129_v36, %v4129_v36 }
 0x4ef   : > { %1321 = vmatprep.subr.bf16.mxu0 %v835_v56 }
 0x4f0   : > { %1322 = vmatpush1.bf16.msra.mxu0 %v834_v43 }
 0x4f1   : > { %v3058_v60 = vpop.permute.xlu0 %3057  ;;  %v3048_v61 = vpop.permute.xlu1 %3047 }
 0x4f2   : > { %v3060_v5 = vunpack.i.h.bf16 %v3058_v60  ;;  %v3059_v7 = vunpack.i.l.bf16 %v3058_v60  ;;  %v3050_v9 = vunpack.i.h.bf16 %v3048_v61  ;;  %v3049_v10 = vunpack.i.l.bf16 %v3048_v61 }
 0x4f3   : > { %v951_v60 = vpack.i.b16 %v4121_v37, %v4121_v37 }
 0x4f4   : > { %v810_v14 = vsel %vm794_vm2, %v3050_v9, %v3060_v5  ;;  %v809_v19 = vsel %vm794_vm2, %v3049_v10, %v3059_v7  ;;  %v797_v20 = vsel %vm794_vm2, %v3059_v7, %v3049_v10  ;;  %v798_v3 = vsel %vm794_vm2, %v3060_v5, %v3050_v9 }
 0x4f5   : > { %v813_v21 = vpack.c.bf16 %v810_v14, %v809_v19  ;;  %v3063_v22 = vpop.permute.xlu0 %3062  ;;  %v3053_v26 = vpop.permute.xlu1 %3052  ;;  %v814_v27 = vpack.c.bf16 %v798_v3, %v797_v20  ;;  %v1547_v20 = vld [vmem:[%s4091_s17] sm:$0xff] }
 0x4f6   : > { %v3065_v38 = vunpack.i.h.bf16 %v3063_v22  ;;  %v3064_v40 = vunpack.i.l.bf16 %v3063_v22  ;;  %v3055_v41 = vunpack.i.h.bf16 %v3053_v26  ;;  %v3054_v42 = vunpack.i.l.bf16 %v3053_v26  ;;  %1553 = vperm.xlu1 %3208, %v1547_v20  }
 0x4f7   : > { %v837_v47 = vmul.bf16 %v4095_v32, %v814_v27  ;;  %v836_v35 = vmul.bf16 %v4098_v33, %v813_v21  ;;  %v4152_v26 = vrot.slane %v951_v60, %v4136_v55  ;;  %v1009_v27 = vshrl.u32 %v4121_v37, 16 }
 0x4f8   : > { %v872_v48 = vsel %vm858_vm3, %v3055_v41, %v3065_v38  ;;  %v871_v53 = vsel %vm858_vm3, %v3054_v42, %v3064_v40  ;;  %v859_v49 = vsel %vm858_vm3, %v3064_v40, %v3054_v42  ;;  %v860_v17 = vsel %vm858_vm3, %v3065_v38, %v3055_v41 }
 0x4f9   : > { %v875_v50 = vpack.c.bf16 %v872_v48, %v871_v53  ;;  %v3078_v56 = vpop.permute.xlu0 %3077  ;;  %v3068_v43 = vpop.permute.xlu1 %3067  ;;  %1323 = vmatprep.subr.bf16.mxu0 %v837_v47  ;;  %v876_v54 = vpack.c.bf16 %v860_v17, %v859_v49  ;;  %v4159_v48 = vrot.slane %v944_v2, %v4136_v55  ;;  %v1002_v53 = vshrl.u32 %v4129_v36, 16 }
 0x4fa   : > { %v3080_v61 = vunpack.i.h.bf16 %v3078_v56  ;;  %v3079_v4 = vunpack.i.l.bf16 %v3078_v56  ;;  %v3070_v5 = vunpack.i.h.bf16 %v3068_v43  ;;  %v3069_v7 = vunpack.i.l.bf16 %v3068_v43  ;;  %1324 = vmatpush1.bf16.msra.mxu0 %v836_v35  ;;  %v1548_v56 = vld [vmem:[%s4091_s17 + $0x8] sm:$0xff] }
 0x4fb   : > { %v894_v9 = vmul.bf16 %v4119_v31, %v876_v54  ;;  %v893_v10 = vmul.bf16 %v4127_v16, %v875_v50  ;;  %1558 = vperm.xlu1 %3208, %v1548_v56  }
 0x4fc   : > { %v874_v12 = vsel %vm858_vm3, %v3070_v5, %v3080_v61  ;;  %v873_v14 = vsel %vm858_vm3, %v3069_v7, %v3079_v4  ;;  %v861_v29 = vsel %vm858_vm3, %v3079_v4, %v3069_v7  ;;  %v862_v19 = vsel %vm858_vm3, %v3080_v61, %v3070_v5 }
 0x4fd   : > { %v877_v3 = vpack.c.bf16 %v874_v12, %v873_v14  ;;  %v3083_v21 = vpop.permute.xlu0 %3082  ;;  %v3073_v18 = vpop.permute.xlu1 %3072  ;;  %1325 = vmatprep.subr.bf16.mxu0 %v894_v9  ;;  %v878_v22 = vpack.c.bf16 %v862_v19, %v861_v29  ;;  %v1010_v4 = vpack.i.b16 %v1009_v27, %v1009_v27  ;;  %v1003_v12 = vpack.i.b16 %v1002_v53, %v1002_v53 }
 0x4fe   : > { %v3085_v38 = vunpack.i.h.bf16 %v3083_v21  ;;  %v3084_v40 = vunpack.i.l.bf16 %v3083_v21  ;;  %v3075_v41 = vunpack.i.h.bf16 %v3073_v18  ;;  %v3074_v42 = vunpack.i.l.bf16 %v3073_v18  ;;  %1326 = vmatpush1.bf16.msra.mxu0 %v893_v10  ;;  %v1550_v21 = vld [vmem:[%s4091_s17 + $0x18] sm:$0xff]  ;;  %s3628_s17 = smov 121  }
 0x4ff   : > { %v896_v47 = vmul.bf16 %v4119_v31, %v878_v22  ;;  %v895_v35 = vmul.bf16 %v4127_v16, %v877_v3  ;;  %v339_v3 = vld [vmem:[%s4783_s3] sm:$0x44]  ;;  %1568 = vperm.xlu1 %3208, %v1550_v21  }
 0x500   : > { %v931_v37 = vsel %vm917_vm4, %v3075_v41, %v3085_v38  ;;  %v930_v49 = vsel %vm917_vm4, %v3074_v42, %v3084_v40  ;;  %v918_v17 = vsel %vm917_vm4, %v3084_v40, %v3074_v42  ;;  %v919_v50 = vsel %vm917_vm4, %v3085_v38, %v3075_v41 }
 0x501   : > { %v934_v43 = vpack.c.bf16 %v931_v37, %v930_v49  ;;  %v3098_v54 = vpop.permute.xlu0 %3097  ;;  %v3088_v60 = vpop.permute.xlu1 %3087  ;;  %1327 = vmatprep.subr.bf16.mxu0 %v896_v47  ;;  %v935_v61 = vpack.c.bf16 %v919_v50, %v918_v17  ;;  %v4178_v40 = vrot.slane %v1010_v4, %v4136_v55  ;;  %v4183_v49 = vrot.slane %v1003_v12, %v4136_v55 }
 0x502   : > { %v3100_v5 = vunpack.i.h.bf16 %v3098_v54  ;;  %v3099_v7 = vunpack.i.l.bf16 %v3098_v54  ;;  %v3090_v36 = vunpack.i.h.bf16 %v3088_v60  ;;  %v3089_v9 = vunpack.i.l.bf16 %v3088_v60  ;;  %1328 = vmatpush1.bf16.msra.mxu0 %v895_v35 }
 0x503   : > { %v958_v10 = vmul.bf16 %v4152_v26, %v935_v61  ;;  %v957_v2 = vmul.bf16 %v4159_v48, %v934_v43  ;;  %v2770_v17 = vcombine.high %v339_v3, %v339_v3  ;;  %v2769_v12 = vcombine.low %v339_v3, %v339_v3 }
 0x504   : > { %v933_v14 = vsel %vm917_vm4, %v3090_v36, %v3100_v5  ;;  %v932_v29 = vsel %vm917_vm4, %v3089_v9, %v3099_v7  ;;  %v920_v19 = vsel %vm917_vm4, %v3099_v7, %v3089_v9  ;;  %v921_v20 = vsel %vm917_vm4, %v3100_v5, %v3090_v36 }
 0x505   : > { %v936_v18 = vpack.c.bf16 %v933_v14, %v932_v29  ;;  %v3103_v22 = vpop.permute.xlu0 %3102  ;;  %v3093_v27 = vpop.permute.xlu1 %3092  ;;  %1329 = vmatprep.subr.bf16.mxu0 %v958_v10  ;;  %v937_v38 = vpack.c.bf16 %v921_v20, %v920_v19  ;;  %v1079_v14 = vshrl.u32 %v2770_v17, 16  ;;  %v1076_v17 = vsub.s32 2, %v4077_v23 }
 0x506   : > { %v3105_v41 = vunpack.i.h.bf16 %v3103_v22  ;;  %v3104_v42 = vunpack.i.l.bf16 %v3103_v22  ;;  %v3095_v47 = vunpack.i.h.bf16 %v3093_v27  ;;  %v3094_v35 = vunpack.i.l.bf16 %v3093_v27  ;;  %1330 = vmatpush1.bf16.msra.mxu0 %v957_v2 }
 0x507   : > { %v960_v53 = vmul.bf16 %v4152_v26, %v937_v38  ;;  %v959_v37 = vmul.bf16 %v4159_v48, %v936_v18 }
 0x508   : > { %v995_v50 = vsel %vm981_vm5, %v3095_v47, %v3105_v41  ;;  %v994_v56 = vsel %vm981_vm5, %v3094_v35, %v3104_v42  ;;  %v982_v43 = vsel %vm981_vm5, %v3104_v42, %v3094_v35  ;;  %v983_v54 = vsel %vm981_vm5, %v3105_v41, %v3095_v47 }
 0x509   : > { %v998_v60 = vpack.c.bf16 %v995_v50, %v994_v56  ;;  %v3113_v61 = vpop.permute.xlu0 %3112  ;;  %v3108_v4 = vpop.permute.xlu1 %3107  ;;  %1331 = vmatprep.subr.bf16.mxu0 %v960_v53  ;;  %v999_v5 = vpack.c.bf16 %v983_v54, %v982_v43  ;;  %v1080_v50 = vpack.i.b16 %v1079_v14, %v1079_v14  ;;  %v340_v56 = vld [vmem:[%s4783_s3] sm:$0x88] }
 0x50a   : > { %v3115_v7 = vunpack.i.h.bf16 %v3113_v61  ;;  %v3114_v36 = vunpack.i.l.bf16 %v3113_v61  ;;  %v3110_v9 = vunpack.i.h.bf16 %v3108_v4  ;;  %v3109_v55 = vunpack.i.l.bf16 %v3108_v4  ;;  %1332 = vmatpush1.bf16.msra.mxu0 %v959_v37 }
 0x50b   : > { %v1017_v10 = vmul.bf16 %v4178_v40, %v999_v5  ;;  %v1016_v2 = vmul.bf16 %v4183_v49, %v998_v60  ;;  %v1071_v37 = vshrl.u32 %v2769_v12, 16 }
 0x50c   : > { %v997_v29 = vsel %vm981_vm5, %v3110_v9, %v3115_v7  ;;  %v996_v19 = vsel %vm981_vm5, %v3109_v55, %v3114_v36  ;;  %v984_v20 = vsel %vm981_vm5, %v3114_v36, %v3109_v55  ;;  %v985_v21 = vsel %vm981_vm5, %v3115_v7, %v3110_v9 }
 0x50d   : > { %v1000_v18 = vpack.c.bf16 %v997_v29, %v996_v19  ;;  %v3123_v22 = vpop.permute.xlu0 %3122  ;;  %v3118_v27 = vpop.permute.xlu1 %3117  ;;  %1333 = vmatprep.subr.bf16.mxu0 %v1017_v10  ;;  %v1001_v38 = vpack.c.bf16 %v985_v21, %v984_v20  ;;  %v2772_v9 = vcombine.high %v340_v56, %v340_v56  ;;  %v4206_v10 = vrot.slane %v1080_v50, %v1076_v17 }
 0x50e   : > { %v3125_v41 = vunpack.i.h.bf16 %v3123_v22  ;;  %v3124_v42 = vunpack.i.l.bf16 %v3123_v22  ;;  %v3120_v47 = vunpack.i.h.bf16 %v3118_v27  ;;  %v3119_v35 = vunpack.i.l.bf16 %v3118_v27  ;;  %1334 = vmatpush1.bf16.msra.mxu0 %v1016_v2 }
 0x50f   : > { %v1019_v3 = vmul.bf16 %v4178_v40, %v1001_v38  ;;  %v1018_v53 = vmul.bf16 %v4183_v49, %v1000_v18  ;;  %v1072_v2 = vpack.i.b16 %v1071_v37, %v1071_v37  ;;  %v4219_v27 = vsub.s32 3, %v4077_v23 }
 0x510   : > { %v1057_v60 = vsel %vm1040_vm6, %v3120_v47, %v3119_v35  ;;  %v1058_v61 = vsel %vm1040_vm6, %v3125_v41, %v3124_v42  ;;  %v1042_v12 = vsel %vm1040_vm6, %v3124_v42, %v3125_v41  ;;  %v1041_v14 = vsel %vm1040_vm6, %v3119_v35, %v3120_v47 }
 0x511   : > { %v3128_v43 = vpop.permute.xlu0 %3127  ;;  %v3133_v54 = vpop.permute.xlu1 %3132  ;;  %1335 = vmatprep.subr.bf16.mxu0 %v1019_v3  ;;  %v1062_v55 = vpack.c.bf16 %v1058_v61, %v1057_v60  ;;  %v1144_v38 = vpack.i.b16 %v2772_v9, %v2772_v9  ;;  %v1061_v41 = vpack.c.bf16 %v1042_v12, %v1041_v14  ;;  %v4222_v47 = vrot.slane %v1072_v2, %v1076_v17 }
 0x512   : > { %v3130_v4 = vunpack.i.h.bf16 %v3128_v43  ;;  %v3129_v5 = vunpack.i.l.bf16 %v3128_v43  ;;  %v3135_v7 = vunpack.i.h.bf16 %v3133_v54  ;;  %v3134_v36 = vunpack.i.l.bf16 %v3133_v54  ;;  %1336 = vmatpush1.bf16.msra.mxu0 %v1018_v53 }
 0x513   : > { %1337 = vmatprep.subr.bf16.mxu0 %v1021_v62  ;;  %v2771_v62 = vcombine.low %v340_v56, %v340_v56  ;;  %v1087_v42 = vmul.bf16 %v4206_v10, %v1062_v55  ;;  %v4232_v17 = vrot.slane %v1144_v38, %v4219_v27  ;;  %v1202_v56 = vshrl.u32 %v2772_v9, 16 }
 0x514   : > { %v1060_v29 = vsel %vm1040_vm6, %v3130_v4, %v3129_v5  ;;  %v1059_v21 = vsel %vm1040_vm6, %v3135_v7, %v3134_v36  ;;  %v1044_v3 = vsel %vm1040_vm6, %v3129_v5, %v3130_v4  ;;  %v1043_v28 = vsel %vm1040_vm6, %v3134_v36, %v3135_v7 }
 0x515   : > { %v3143_v19 = vpop.permute.xlu0 %3142  ;;  %v3138_v20 = vpop.permute.xlu1 %3137  ;;  %v1064_v35 = vpack.c.bf16 %v1060_v29, %v1059_v21  ;;  %v1137_v50 = vpack.i.b16 %v2771_v62, %v2771_v62  ;;  %v1063_v43 = vpack.c.bf16 %v1044_v3, %v1043_v28  ;;  %v1086_v54 = vmul.bf16 %v4222_v47, %v1061_v41 }
 0x516   : > { %v3145_v18 = vunpack.i.h.bf16 %v3143_v19  ;;  %v3144_v22 = vunpack.i.l.bf16 %v3143_v19  ;;  %v3140_v30 = vunpack.i.h.bf16 %v3138_v20  ;;  %v3139_v39 = vunpack.i.l.bf16 %v3138_v20  ;;  %1338 = vmatpush1.bf16.msra.mxu0 %v1020_v63 }
 0x517   : > { %1339 = vmatprep.subr.bf16.mxu0 %v1023_v0  ;;  %v1089_v60 = vmul.bf16 %v4206_v10, %v1064_v35  ;;  %v4241_v12 = vrot.slane %v1137_v50, %v4219_v27  ;;  %v1203_v14 = vpack.i.b16 %v1202_v56, %v1202_v56  ;;  %v1195_v29 = vshrl.u32 %v2771_v62, 16 }
 0x518   : > { %v1124_v34 = vsel %vm1106_vm7, %v3145_v18, %v3144_v22  ;;  %v1123_v59 = vsel %vm1106_vm7, %v3140_v30, %v3139_v39  ;;  %v1108_v4 = vsel %vm1106_vm7, %v3144_v22, %v3145_v18  ;;  %v1107_v5 = vsel %vm1106_vm7, %v3139_v39, %v3140_v30  ;;  %v341_v22 = vld [vmem:[%s4783_s3 + $0x8] sm:$0x11] }
 0x519   : > { %v3148_v63 = vpop.permute.xlu0 %3147  ;;  %v3153_v57 = vpop.permute.xlu1 %3152  ;;  %v1128_v61 = vpack.c.bf16 %v1124_v34, %v1123_v59  ;;  %v1127_v19 = vpack.c.bf16 %v1108_v4, %v1107_v5  ;;  %v1088_v20 = vmul.bf16 %v4222_v47, %v1063_v43  ;;  %v2774_v59 = vcombine.high %v341_v22, %v341_v22 }
 0x51a   : > { %v3150_v0 = vunpack.i.h.bf16 %v3148_v63  ;;  %v3149_v23 = vunpack.i.l.bf16 %v3148_v63  ;;  %v3155_v53 = vunpack.i.h.bf16 %v3153_v57  ;;  %v3154_v37 = vunpack.i.l.bf16 %v3153_v57  ;;  %1340 = vmatpush1.bf16.msra.mxu0 %v1022_v1 }
 0x51b   : > { %1341 = vmatprep.subr.bf16.mxu0 %v1087_v42  ;;  %v1151_v21 = vmul.bf16 %v4232_v17, %v1128_v61  ;;  %v4253_v63 = vrot.slane %v1203_v14, %v4219_v27  ;;  %v1196_v57 = vpack.i.b16 %v1195_v29, %v1195_v29  ;;  %v1267_v14 = vpack.i.b16 %v2774_v59, %v2774_v59 }
 0x51c   : > { %v1126_v44 = vsel %vm1106_vm7, %v3150_v0, %v3149_v23  ;;  %v1125_v7 = vsel %vm1106_vm7, %v3155_v53, %v3154_v37  ;;  %v1110_v30 = vsel %vm1106_vm7, %v3149_v23, %v3150_v0  ;;  %v1109_v39 = vsel %vm1106_vm7, %v3154_v37, %v3155_v53 }
 0x51d   : > { %v3163_v58 = vpop.permute.xlu0 %3162  ;;  %v3158_v1 = vpop.permute.xlu1 %3157  ;;  %v1130_v18 = vpack.c.bf16 %v1126_v44, %v1125_v7  ;;  %v1129_v0 = vpack.c.bf16 %v1110_v30, %v1109_v39  ;;  %v1150_v23 = vmul.bf16 %v4241_v12, %v1127_v19  ;;  %v2773_v7 = vcombine.low %v341_v22, %v341_v22 }
 0x51e   : > { %v3165_v36 = vunpack.i.h.bf16 %v3163_v58  ;;  %v3164_v55 = vunpack.i.l.bf16 %v3163_v58  ;;  %v3160_v2 = vunpack.i.h.bf16 %v3158_v1  ;;  %v3159_v9 = vunpack.i.l.bf16 %v3158_v1  ;;  %1342 = vmatpush1.bf16.msra.mxu0 %v1086_v54 }
 0x51f   : > { %1343 = vmatprep.subr.bf16.mxu0 %v1089_v60  ;;  %v1153_v53 = vmul.bf16 %v4232_v17, %v1130_v18  ;;  %v4262_v1 = vrot.slane %v1196_v57, %v4219_v27 }
 0x520   : > { %v1188_v38 = vsel %vm1170_vm8, %v3165_v36, %v3164_v55  ;;  %v1187_v62 = vsel %vm1170_vm8, %v3160_v2, %v3159_v9  ;;  %v1172_v50 = vsel %vm1170_vm8, %v3164_v55, %v3165_v36  ;;  %v1171_v56 = vsel %vm1170_vm8, %v3159_v9, %v3160_v2 }
 0x521   : > { %v3173_v41 = vpop.permute.xlu0 %3172  ;;  %v3168_v42 = vpop.permute.xlu1 %3167  ;;  %v1192_v37 = vpack.c.bf16 %v1188_v38, %v1187_v62  ;;  %v1191_v36 = vpack.c.bf16 %v1172_v50, %v1171_v56  ;;  %v1152_v2 = vmul.bf16 %v4241_v12, %v1129_v0  ;;  %v1260_v62 = vpack.i.b16 %v2773_v7, %v2773_v7  ;;  %v3402_v7 = vld [vmem:[%s4784_s4 + $0x8] ss:$12 sps:$4 sm:$0xff]  }
 0x522   : > { %v3175_v35 = vunpack.i.h.bf16 %v3173_v41  ;;  %v3174_v3 = vunpack.i.l.bf16 %v3173_v41  ;;  %v3170_v28 = vunpack.i.h.bf16 %v3168_v42  ;;  %v3169_v34 = vunpack.i.l.bf16 %v3168_v42  ;;  %1344 = vmatpush1.bf16.msra.mxu0 %v1088_v20 }
 0x523   : > { %1345 = vmatprep.subr.bf16.mxu0 %v1151_v21  ;;  %v1210_v9 = vmul.bf16 %v4253_v63, %v1192_v37  ;;  %v1209_v42 = vmul.bf16 %v4262_v1, %v1191_v36  ;;  %v4281_v37 = vrot.slane %v1260_v62, %v4083_v25 }
 0x524   : > { %v1190_v43 = vsel %vm1170_vm8, %v3175_v35, %v3174_v3  ;;  %v1189_v61 = vsel %vm1170_vm8, %v3170_v28, %v3169_v34  ;;  %v1174_v55 = vsel %vm1170_vm8, %v3174_v3, %v3175_v35  ;;  %v1173_v29 = vsel %vm1170_vm8, %v3169_v34, %v3170_v28 }
 0x525   : > { %v3183_v54 = vpop.permute.xlu0 %3182  ;;  %v3178_v60 = vpop.permute.xlu1 %3177  ;;  %v1194_v18 = vpack.c.bf16 %v1190_v43, %v1189_v61  ;;  %v1193_v41 = vpack.c.bf16 %v1174_v55, %v1173_v29  ;;  %v4272_v35 = vrot.slane %v1267_v14, %v4083_v25  ;;  %v3399_v61 = vld [vmem:[%s4784_s4 + $0x1c] ss:$12 sps:$4 sm:$0xff]   ;;  %v3403_v14 = vld [vmem:[%s4784_s4 + $0x20] ss:$12 sps:$4 sm:$0xff]  }
 0x526   : > { %v3185_v4 = vunpack.i.h.bf16 %v3183_v54  ;;  %v3184_v5 = vunpack.i.l.bf16 %v3183_v54  ;;  %v3180_v44 = vunpack.i.h.bf16 %v3178_v60  ;;  %v3179_v58 = vunpack.i.l.bf16 %v3178_v60  ;;  %1346 = vmatpush1.bf16.msra.mxu0 %v1150_v23  ;;  %v3396_v54 = vld [vmem:[%s4784_s4] ss:$12 sps:$4 sm:$0xff]  }
 0x527   : > { %1347 = vmatprep.subr.bf16.mxu0 %v1153_v53  ;;  %v1212_v34 = vmul.bf16 %v4253_v63, %v1194_v18  ;;  %v1211_v53 = vmul.bf16 %v4262_v1, %v1193_v41 }
 0x528   : > { %v1247_v19 = vsel %vm1229_vm9, %v3185_v4, %v3184_v5  ;;  %v1246_v30 = vsel %vm1229_vm9, %v3180_v44, %v3179_v58  ;;  %v1231_v3 = vsel %vm1229_vm9, %v3184_v5, %v3185_v4  ;;  %v1230_v28 = vsel %vm1229_vm9, %v3179_v58, %v3180_v44  ;;  %v3401_v58 = vld [vmem:[%s4784_s4 + $0x18] ss:$12 sps:$4 sm:$0xff]  }
 0x529   : > { %v3193_v20 = vpop.permute.xlu0 %3192  ;;  %v3188_v21 = vpop.permute.xlu1 %3187  ;;  %v1251_v57 = vpack.c.bf16 %v1247_v19, %v1246_v30  ;;  %v1250_v23 = vpack.c.bf16 %v1231_v3, %v1230_v28 }
 0x52a   : > { %v3195_v27 = vunpack.i.h.bf16 %v3193_v20  ;;  %v3194_v39 = vunpack.i.l.bf16 %v3193_v20  ;;  %v3190_v22 = vunpack.i.h.bf16 %v3188_v21  ;;  %v3189_v38 = vunpack.i.l.bf16 %v3188_v21  ;;  %1348 = vmatpush1.bf16.msra.mxu0 %v1152_v2 }
 0x52b   : > { %1349 = vmatprep.subr.bf16.mxu0 %v1210_v9  ;;  %v1274_v43 = vmul.bf16 %v4272_v35, %v1251_v57  ;;  %v1273_v25 = vmul.bf16 %v4281_v37, %v1250_v23 }
 0x52c   : > { %v1249_v59 = vsel %vm1229_vm9, %v3195_v27, %v3194_v39  ;;  %v1248_v0 = vsel %vm1229_vm9, %v3190_v22, %v3189_v38  ;;  %v1233_v50 = vsel %vm1229_vm9, %v3194_v39, %v3195_v27  ;;  %v1232_v56 = vsel %vm1229_vm9, %v3189_v38, %v3190_v22 }
 0x52d   : > { %v1253_v60 = vpack.c.bf16 %v1249_v59, %v1248_v0  ;;  %v1252_v4 = vpack.c.bf16 %v1233_v50, %v1232_v56 }
 0x52e   : > { %1350 = vmatpush1.bf16.msra.mxu0 %v1209_v42 }
 0x52f   : > { %1351 = vmatprep.subr.bf16.mxu0 %v1212_v34  ;;  %v1276_v5 = vmul.bf16 %v4272_v35, %v1253_v60  ;;  %v1275_v44 = vmul.bf16 %v4281_v37, %v1252_v4 }
 0x532   : > { %1352 = vmatpush1.bf16.msra.mxu0 %v1211_v53 }
 0x533   : > { %1374 = vmatprep.subr.bf16.mxu0 %v1274_v43 }
 0x535   : > { %1354 = vmatmul.mubr.bf16.vlgmr.msra.gmra.mrb[8].mxu0 %v3396_v54 }
 0x536   : > { %1375 = vmatpush1.bf16.msra.mxu0 %v1273_v25  ;;  %1363 = vmatprep.mubr.bf16.mxu0 %v3399_v61 }
 0x537   : > { %1376 = vmatprep.subr.bf16.mxu0 %v1276_v5 }
 0x53a   : > { %1377 = vmatpush1.bf16.msra.mxu0 %v1275_v44  ;;  %v1429_v36 = vpop.permute.xlu1 %1428  ;;  %v1433_v21 = vpop.permute.xlu0 %1432 }
 0x53d   : > { %1364 = vmatmul.mubr.bf16.gmra.mrb[12].mxu0 %v3401_v58 }
 0x53e   : > { %1406 = vmatprep.mubr.bf16.mxu0 %v3612_v13  ;;  %v1437_v30 = vpop.permute.xlu0 %1436 }
 0x53f   : > { %v1453_v55 = vpop.permute.xlu1 %1452 }
 0x543   : > { %v1457_v2 = vpop.permute.xlu1 %1456  ;;  %v1465_v39 = vpop.permute.xlu0 %1464 }
 0x545   : > { %2781 = vmatmul.mubr.msk.bf16.vlgmr.msra.gmra.mrb[8].mxu0 %vm4798_vm0, %v3402_v7 }
 0x546   : > { %1416 = vmatprep.mubr.bf16.mxu0 %v3612_v13 }
 0x548   : > { %v1441_v9 = vpop.permute.xlu1 %1440  ;;  %v1485_v62 = vpop.permute.xlu0 %1484 }
 0x54c   : > { %v1493_v4 = vpop.permute.xlu0 %1492 }
 0x54d   : > { %2782 = vmatmul.mubr.msk.bf16.gmra.mrb[12].mxu0 %vm4798_vm0, %v3403_v14  ;;  %v1489_v29 = vpop.permute.xlu1 %1488 }
 0x552   : > { %v1461_v19 = vpop.permute.xlu1 %1460 }
 0x557   : > { %v1517_v20 = vpop.permute.xlu1 %1516 }
 0x55b   : > { %v1521_v18 = vpop.permute.xlu1 %1520 }
 0x560   : > { %v4308_v27 = vpop.permute.xlu1 %1496 }
 0x565   : > { %v4310_v38 = vpop.permute.xlu1 %1524 }
 0x575   : > { %v1554_v61 = vpop.permute.xlu1 %1553 }
 0x618   : > { %v1408_v22 = vpop.f32.mrb[8].mxu0 }
 0x619   : > { %v1443_v41 = vmul.f32 %v1429_v36, %v1408_v22  ;;  %v1410_v42 = vpop.f32.mrb[9].mxu0 }
 0x61a   : > { %v1444_v3 = vmul.f32 %v1429_v36, %v1410_v42  ;;  %v1412_v28 = vpop.f32.mrb[10].mxu0 }
 0x61b   : > { %v1467_v34 = vadd.f32 %v1453_v55, %v1443_v41  ;;  %v1445_v57 = vmul.f32 %v1433_v21, %v1412_v28  ;;  %v1414_v59 = vpop.f32.mrb[11].mxu0 }
 0x61c   : > { %v1468_v0 = vadd.f32 %v1453_v55, %v1444_v3  ;;  %v1446_v23 = vmul.f32 %v1433_v21, %v1414_v59 }
 0x61d   : > { %vm1475_vm10 = vcmp.ge.f32.partialorder %v1467_v34, 0.0  ;;  %v1469_v53 = vadd.f32 %v1457_v2, %v1445_v57  ;;  %v1499_v50 = vmul.f32 %v1485_v62, %v1467_v34 }
 0x61e   : > { %vm1476_vm11 = vcmp.ge.f32.partialorder %v1468_v0, 0.0  ;;  %v1470_v56 = vadd.f32 %v1457_v2, %v1446_v23  ;;  %v1500_v43 = vmul.f32 %v1485_v62, %v1468_v0 }
 0x61f   : > { %vm1477_vm12 = vcmp.ge.f32.partialorder %v1469_v53, 0.0  ;;  %v1501_v54 = vmul.f32 %v1489_v29, %v1469_v53  ;;  %v1507_v60 = vsel %vm1475_vm10, %v1467_v34, %v1499_v50 }
 0x620   : > { %vm1478_vm13 = vcmp.ge.f32.partialorder %v1470_v56, 0.0  ;;  %v1502_v25 = vmul.f32 %v1489_v29, %v1470_v56  ;;  %v1508_v5 = vsel %vm1476_vm11, %v1468_v0, %v1500_v43  ;;  %v1531_v44 = vadd.f32 %v1517_v20, %v1507_v60  ;;  %v1418_v58 = vpop.f32.mrb[12].mxu0  ;;  %v1529_v29 = vpop.permute.xlu0 %1528 }
 0x621   : > { %v1532_v7 = vadd.f32 %v1517_v20, %v1508_v5  ;;  %v1447_v14 = vmul.f32 %v1437_v30, %v1418_v58  ;;  %v1420_v36 = vpop.f32.mrb[13].mxu0  ;;  %v1509_v55 = vsel %vm1477_vm12, %v1469_v53, %v1501_v54 }
 0x622   : > { %v1539_v21 = vadd.f32 %v1531_v44, %v3956_v11  ;;  %v1448_v22 = vmul.f32 %v1437_v30, %v1420_v36  ;;  %v1510_v41 = vsel %vm1478_vm13, %v1470_v56, %v1502_v25  ;;  %v1533_v2 = vadd.f32 %v1521_v18, %v1509_v55  ;;  %v1422_v42 = vpop.f32.mrb[14].mxu0  ;;  %v1559_v30 = vpop.permute.xlu1 %1558 }
 0x623   : > { %v1540_v62 = vadd.f32 %v1532_v7, %v3959_v15  ;;  %v1471_v3 = vadd.f32 %v1461_v19, %v1447_v14  ;;  %v1534_v28 = vadd.f32 %v1521_v18, %v1510_v41  ;;  %v1449_v34 = vmul.f32 %v1441_v9, %v1422_v42  ;;  %v1424_v57 = vpop.f32.mrb[15].mxu0 }
 0x624   : > { %v4314_v59 = vadd.f32 %v1554_v61, %v1539_v21  ;;  %v1472_v0 = vadd.f32 %v1461_v19, %v1448_v22  ;;  %v1541_v20 = vadd.f32 %v1533_v2, %v3952_v6  ;;  %v1450_v23 = vmul.f32 %v1441_v9, %v1424_v57 }
 0x625   : > { %v4317_v53 = vadd.f32 %v1554_v61, %v1540_v62  ;;  %vm1479_vm14 = vcmp.ge.f32.partialorder %v1471_v3, 0.0  ;;  %v1503_v11 = vmul.f32 %v1493_v4, %v1471_v3  ;;  %v1542_v50 = vadd.f32 %v1534_v28, %v3954_v8 }
 0x626   : > { %vm1480_vm15 = vcmp.ge.f32.partialorder %v1472_v0, 0.0  ;;  %v1504_v15 = vmul.f32 %v1493_v4, %v1472_v0  ;;  %v4320_v56 = vadd.f32 %v1559_v30, %v1541_v20  ;;  %v1473_v18 = vadd.f32 %v1465_v39, %v1449_v34  ;;  %v1564_v4 = vpop.permute.xlu0 %1563  ;;  %v1569_v22 = vpop.permute.xlu1 %1568 }
 0x627   : > { %v4322_v43 = vadd.f32 %v1559_v30, %v1542_v50  ;;  %v1474_v54 = vadd.f32 %v1465_v39, %v1450_v23  ;;  %v1579_v19 = vadd.f32 %v4317_v53, %v4314_v59  ;;  %v1511_v6 = vsel %vm1479_vm14, %v1471_v3, %v1503_v11  ;;  %v4340_v23 = vld [vmem:[#allocation5 + $0x10] sm:$0xff]  ;;  %v4344_v11 = vld [vmem:[#allocation5 + $0x18] sm:$0xff]  ;;  %v3463_v30 = vld [vmem:[#allocation5] sm:$0xff] }
 0x628   : > { %v1505_v9 = vmul.f32 %v4308_v27, %v1473_v18  ;;  %vm1481_vm1 = vcmp.ge.f32.partialorder %v1473_v18, 0.0  ;;  %v1512_v60 = vsel %vm1480_vm15, %v1472_v0, %v1504_v15  ;;  %v1535_v61 = vadd.f32 %v4310_v38, %v1511_v6 }
 0x629   : > { %v1506_v8 = vmul.f32 %v4308_v27, %v1474_v54  ;;  %vm1482_vm10 = vcmp.ge.f32.partialorder %v1474_v54, 0.0  ;;  %1580 = vadd.xlane.f32.xlu1 %v1579_v19  ;;  %v1536_v25 = vadd.f32 %v4310_v38, %v1512_v60  ;;  %v1582_v39 = vadd.f32 %v4322_v43, %v4320_v56 }
 0x62a   : > { %v1513_v5 = vsel %vm1481_vm1, %v1473_v18, %v1505_v9  ;;  %v1543_v44 = vadd.f32 %v1535_v61, %v3991_v51 }
 0x62b   : > { %v1514_v58 = vsel %vm1482_vm10, %v1474_v54, %v1506_v8  ;;  %v1537_v7 = vadd.f32 %v1529_v29, %v1513_v5  ;;  %v1544_v14 = vadd.f32 %v1536_v25, %v3994_v52  ;;  %1583 = vadd.xlane.f32.xlu0 %v1582_v39 }
 0x62c   : > { %v1538_v36 = vadd.f32 %v1529_v29, %v1514_v58  ;;  %v1575_v55 = vadd.f32 %v1564_v4, %v1543_v44 }
 0x62d   : > { %v1545_v27 = vadd.f32 %v1537_v7, %v3979_v45  ;;  %v1576_v21 = vadd.f32 %v1564_v4, %v1544_v14 }
 0x62e   : > { %v1546_v41 = vadd.f32 %v1538_v36, %v3982_v46  ;;  %v4336_v46 = vld [vmem:[#allocation5 + $0x8] sm:$0xff] }
 0x62f   : > { %v1585_v38 = vadd.f32 %v1576_v21, %v1575_v55  ;;  %v1577_v2 = vadd.f32 %v1569_v22, %v1545_v27 }
 0x630   : > { %v1578_v42 = vadd.f32 %v1569_v22, %v1546_v41 }
 0x631   : > { %1586 = vadd.xlane.f32.xlu0 %v1585_v38 }
 0x632   : > { %v1588_v62 = vadd.f32 %v1578_v42, %v1577_v2 }
 0x634   : > { %1589 = vadd.xlane.f32.xlu1 %v1588_v62  ;;  %v4406_v62 = vld [vmem:[%s4786_s6 + $0x18] sm:$0xff] }
 0x6b6   : > { %v1581_v51 = vpop.xlane.xlu1 %1580 }
 0x6b7   : > { %v1591_v28 = vmul.f32 0.00390625, %v1581_v51 }
 0x6b8   : > { %v1584_v3 = vpop.xlane.xlu0 %1583 }
 0x6b9   : > { %v1592_v34 = vmul.f32 0.00390625, %v1584_v3 }
 0x6bb   : > { %v2911_v52 = vpack.c.bf16 %v1592_v34, %v1591_v28 }
 0x6bd   : > { %2912 = vmatprep.subr.bf16.mxu1 %v2911_v52 }
 0x6be   : > { %2914 = vmatpush3.bf16.msra.mxu1 %v2911_v52  ;;  %v1587_v57 = vpop.xlane.xlu0 %1586 }
 0x6bf   : > { %v1593_v45 = vmul.f32 0.00390625, %v1587_v57 }
 0x6c1   : > { %v1590_v29 = vpop.xlane.xlu1 %1589 }
 0x6c2   : > { %v1594_v0 = vmul.f32 0.00390625, %v1590_v29 }
 0x6c4   : > { %v2915_v20 = vpack.c.bf16 %v1594_v0, %v1593_v45 }
 0x6c6   : > { %2916 = vmatprep.subr.bf16.mxu1 %v2915_v20 }
 0x6c7   : > { %2918 = vmatpush3.bf16.msra.mxu1 %v2915_v20 }
 0x6ca   : > { %2876 = vmatmul.mubr.msk.f32.vlgmr.msra.gmra.mrb[0].mxu1 %vm4798_vm0, %v4336_v46 }
 0x6cb   : > { %2878 = vmatprep.mubr.msk.f32.mxu1 %vm4798_vm0, %v4340_v23 }
 0x6ce   : > { %2879 = vmatmul.mubr.msk.f32.gmra.mrb[2].mxu1 %vm4798_vm0, %v4344_v11 }
 0x6cf   : > { %2889 = vmatprep.mubr.msk.f32.mxu1 %vm4798_vm0, %v3463_v30  ;;  %v3629_v30 = vmov 8  }
 0x79d   : > { %v2877_v50 = vpop.f32.mrb[0].mxu1 }
 0x79e   : > { %1687 = vperm.xlu1 %3208, %v2877_v50   ;;  %v1661_v15 = vpop.f32.mrb[1].mxu1 }
 0x79f   : > { %1682 = vperm.xlu0 %3209, %v1661_v15  }
 0x7a1   : > { %v2880_v18 = vpop.f32.mrb[2].mxu1 }
 0x7a2   : > { %v1671_v54 = vpop.f32.mrb[3].mxu1 }
 0x7a3   : > { %1697 = vperm.xlu0 %3209, %v2880_v18   ;;  %1692 = vperm.xlu1 %3208, %v1671_v54  }
 0x7a7   : > { %3211 = vset.pattern.permute.xlu0 %v3629_v30  ;;  %3210 = vset.pattern.permute.xlu1 %v3629_v30 }
 0x81d   : > { %v1688_v19 = vpop.permute.xlu1 %1687 }
 0x81e   : > { %v4350_v6 = vsub.f32 %v4320_v56, %v1688_v19  ;;  %v4353_v9 = vsub.f32 %v4322_v43, %v1688_v19  ;;  %v1683_v60 = vpop.permute.xlu0 %1682 }
 0x81f   : > { %v4356_v61 = vsub.f32 %v4314_v59, %v1683_v60  ;;  %v4359_v8 = vsub.f32 %v4317_v53, %v1683_v60 }
 0x820   : > { %v1710_v4 = vmul.f32 %v4350_v6, %v4350_v6  ;;  %v1711_v25 = vmul.f32 %v4353_v9, %v4353_v9 }
 0x821   : > { %v1708_v56 = vmul.f32 %v4356_v61, %v4356_v61  ;;  %v1709_v43 = vmul.f32 %v4359_v8, %v4359_v8 }
 0x822   : > { %v1698_v39 = vpop.permute.xlu0 %1697  ;;  %v1693_v5 = vpop.permute.xlu1 %1692  ;;  %v1719_v44 = vadd.f32 %v1711_v25, %v1710_v4 }
 0x823   : > { %v4369_v59 = vsub.f32 %v1577_v2, %v1698_v39  ;;  %v4371_v58 = vsub.f32 %v1578_v42, %v1698_v39  ;;  %v4373_v53 = vsub.f32 %v1575_v55, %v1693_v5  ;;  %v4375_v7 = vsub.f32 %v1576_v21, %v1693_v5  ;;  %v4388_v21 = vld [vmem:[%s4786_s6 + $0x8] sm:$0xff]  ;;  %v4394_v2 = vld [vmem:[%s4786_s6] sm:$0xff]  ;;  %v4400_v42 = vld [vmem:[%s4786_s6 + $0x10] sm:$0xff] }
 0x824   : > { %1720 = vadd.xlane.f32.xlu0 %v1719_v44  ;;  %v1716_v14 = vadd.f32 %v1709_v43, %v1708_v56 }
 0x825   : > { %v1714_v36 = vmul.f32 %v4369_v59, %v4369_v59  ;;  %v1715_v27 = vmul.f32 %v4371_v58, %v4371_v58  ;;  %v1712_v22 = vmul.f32 %v4373_v53, %v4373_v53  ;;  %v1713_v41 = vmul.f32 %v4375_v7, %v4375_v7 }
 0x826   : > { %1717 = vadd.xlane.f32.xlu1 %v1716_v14 }
 0x827   : > { %v1725_v38 = vadd.f32 %v1715_v27, %v1714_v36  ;;  %v1722_v55 = vadd.f32 %v1713_v41, %v1712_v22  ;;  %v3630_v41 = vmov 9  }
 0x829   : > { %1723 = vadd.xlane.f32.xlu0 %v1722_v55 }
 0x82a   : > { %1726 = vadd.xlane.f32.xlu1 %v1725_v38 }
 0x83b   : > { %1823 = vrot.lane.b32.xlu1 %v4388_v21, %s3628_s17 }
 0x83f   : > { %1821 = vrot.lane.b32.xlu0 %v4394_v2, %s3628_s17  ;;  %1825 = vrot.lane.b32.xlu1 %v4400_v42, %s3628_s17 }
 0x843   : > { %1827 = vrot.lane.b32.xlu0 %v4406_v62, %s3628_s17  ;;  %1866 = vperm.xlu1 %3210, %v4394_v2   ;;  %s4705_s17 = scalar_lea.vmem [#allocation7], %s4815_s16 }
 0x844   : > { %s2649_s29 = sshll.u32 %s4705_s17, 4  ;;  %s4732_s29 = int_to_ptr.vmem [resolvable:$true] %s2649_s29 }
 0x847   : > { %1870 = vperm.xlu0 %3211, %v4388_v21   ;;  %3214 = vset.pattern.permute.xlu1 %v3612_v13 }
 0x84b   : > { %3212 = vset.pattern.permute.xlu0 %v3612_v13 }
 0x8b1   : > { %v1721_v51 = vpop.xlane.xlu0 %1720 }
 0x8b2   : > { %v1729_v3 = vmul.f32 0.00390625, %v1721_v51 }
 0x8b3   : > { %v1718_v28 = vpop.xlane.xlu1 %1717 }
 0x8b4   : > { %v1728_v34 = vmul.f32 0.00390625, %v1718_v28 }
 0x8b6   : > { %v2919_v52 = vpack.c.bf16 %v1729_v3, %v1728_v34  ;;  %v1724_v57 = vpop.xlane.xlu0 %1723 }
 0x8b7   : > { %v1730_v29 = vmul.f32 0.00390625, %v1724_v57  ;;  %v1727_v45 = vpop.xlane.xlu1 %1726 }
 0x8b8   : > { %v1731_v0 = vmul.f32 0.00390625, %v1727_v45  ;;  %2920 = vmatprep.subr.bf16.mxu1 %v2919_v52 }
 0x8b9   : > { %2922 = vmatpush3.bf16.msra.mxu1 %v2919_v52 }
 0x8ba   : > { %v2923_v20 = vpack.c.bf16 %v1731_v0, %v1730_v29  ;;  %v1822_v60 = vpop.permute.xlu0 %1821 }
 0x8bb   : > { %v1824_v4 = vpop.permute.xlu1 %1823 }
 0x8bc   : > { %2924 = vmatprep.subr.bf16.mxu1 %v2923_v20 }
 0x8bd   : > { %2926 = vmatpush3.bf16.msra.mxu1 %v2923_v20 }
 0x8be   : > { %v1828_v5 = vpop.permute.xlu0 %1827 }
 0x8bf   : > { %v1826_v27 = vpop.permute.xlu1 %1825 }
 0x8c0   : > { %2890 = vmatmul.mubr.msk.f32.vlgmr.msra.gmra.mrb[4].mxu1 %vm4798_vm0, %v4336_v46 }
 0x8c1   : > { %2892 = vmatprep.mubr.msk.f32.mxu1 %vm4798_vm0, %v4340_v23 }
 0x8c3   : > { %v1867_v55 = vpop.permute.xlu1 %1866 }
 0x8c4   : > { %2893 = vmatmul.mubr.msk.f32.gmra.mrb[6].mxu1 %vm4798_vm0, %v4344_v11 }
 0x8c6   : > { %v1871_v38 = vpop.permute.xlu0 %1870 }
 0x993   : > { %v2891_v50 = vpop.f32.mrb[4].mxu1 }
 0x994   : > { %v1804_v15 = vadd.f32 1e-05, %v2891_v50  ;;  %v1798_v46 = vpop.f32.mrb[5].mxu1 }
 0x995   : > { %v1799_v18 = vadd.f32 1e-05, %v1798_v46 }
 0x996   : > { %3436 = vrsqrt.f32 %v1804_v15 }
 0x997   : > { %3438 = vrsqrt.f32 %v1799_v18  ;;  %v2894_v23 = vpop.f32.mrb[6].mxu1 }
 0x998   : > { %v1814_v54 = vadd.f32 1e-05, %v2894_v23  ;;  %v1808_v11 = vpop.f32.mrb[7].mxu1 }
 0x999   : > { %v1809_v19 = vadd.f32 1e-05, %v1808_v11 }
 0x99a   : > { %3440 = vrsqrt.f32 %v1814_v54 }
 0x99b   : > { %3442 = vrsqrt.f32 %v1809_v19 }
 0x9a0   : > { %v3437_v25 = vpop.eup %3436 }
 0x9a1   : > { %v3439_v56 = vpop.eup %3438  ;;  %v1834_v43 = vmul.f32 %v3437_v25, %v1824_v4 }
 0x9a2   : > { %v1833_v39 = vmul.f32 %v3439_v56, %v1822_v60 }
 0x9a3   : > { %1844 = vperm.xlu0 %3212, %v1834_v43  }
 0x9a4   : > { %v3441_v44 = vpop.eup %3440  ;;  %1839 = vperm.xlu1 %3214, %v1833_v39  }
 0x9a5   : > { %v1836_v14 = vmul.f32 %v3441_v44, %v1828_v5  ;;  %v3443_v36 = vpop.eup %3442 }
 0x9a6   : > { %v1835_v22 = vmul.f32 %v3443_v36, %v1826_v27 }
 0x9a7   : > { %3213 = vset.pattern.permute.xlu0 %v3629_v30 }
 0x9a8   : > { %1854 = vperm.xlu1 %3214, %v1836_v14   ;;  %1874 = vperm.xlu0 %3213, %v4400_v42  }
 0x9ac   : > { %1849 = vperm.xlu1 %3214, %v1835_v22   ;;  %3216 = vset.pattern.permute.xlu0 %v3630_v41 }
 0x9ad   : > { %1930 = vperm.xlu0 %3216, %v4394_v2  }
 0x9b0   : > { %3215 = vset.pattern.permute.xlu1 %v3629_v30 }
 0x9b1   : > { %1878 = vperm.xlu1 %3215, %v4406_v62   ;;  %1942 = vperm.xlu0 %3216, %v4406_v62  }
 0x9b5   : > { %3217 = vset.pattern.permute.xlu1 %v3630_v41 }
 0x9b6   : > { %1934 = vperm.xlu1 %3217, %v4388_v21  }
 0x9ba   : > { %1938 = vperm.xlu1 %3217, %v4400_v42  }
 0xa22   : > { %v1845_v51 = vpop.permute.xlu0 %1844 }
 0xa23   : > { %v1859_v3 = vmul.f32 %v1845_v51, %v4350_v6  ;;  %v1860_v28 = vmul.f32 %v1845_v51, %v4353_v9  ;;  %v1840_v34 = vpop.permute.xlu1 %1839 }
 0xa24   : > { %v1857_v52 = vmul.f32 %v1840_v34, %v4356_v61  ;;  %v1858_v57 = vmul.f32 %v1840_v34, %v4359_v8 }
 0xa25   : > { %v1883_v29 = vadd.f32 %v1871_v38, %v1859_v3  ;;  %v1884_v45 = vadd.f32 %v1871_v38, %v1860_v28 }
 0xa26   : > { %v1881_v0 = vadd.f32 %v1867_v55, %v1857_v52  ;;  %v1882_v20 = vadd.f32 %v1867_v55, %v1858_v57 }
 0xa27   : > { %v1891_v30 = vmul.f32 0.5, %v1883_v29  ;;  %v1892_v50 = vmul.f32 0.5, %v1884_v45  ;;  %v1855_v15 = vpop.permute.xlu1 %1854  ;;  %v1875_v23 = vpop.permute.xlu0 %1874 }
 0xa28   : > { %v1889_v46 = vmul.f32 0.5, %v1881_v0  ;;  %v1890_v18 = vmul.f32 0.5, %v1882_v20  ;;  %v1863_v11 = vmul.f32 %v1855_v15, %v4369_v59  ;;  %v1864_v19 = vmul.f32 %v1855_v15, %v4371_v58 }
 0xa29   : > { %3444 = vtanh.f32 %v1891_v30 }
 0xa2a   : > { %3446 = vtanh.f32 %v1892_v50 }
 0xa2b   : > { %3448 = vtanh.f32 %v1889_v46  ;;  %v1850_v6 = vpop.permute.xlu1 %1849 }
 0xa2c   : > { %3450 = vtanh.f32 %v1890_v18  ;;  %v1861_v9 = vmul.f32 %v1850_v6, %v4373_v53  ;;  %v1862_v61 = vmul.f32 %v1850_v6, %v4375_v7  ;;  %v1931_v28 = vpop.permute.xlu0 %1930 }
 0xa2e   : > { %v4431_v8 = vadd.f32 %v1875_v23, %v1861_v9  ;;  %v4433_v54 = vadd.f32 %v1875_v23, %v1862_v61 }
 0xa30   : > { %v1893_v60 = vmul.f32 0.5, %v4431_v8  ;;  %v1894_v4 = vmul.f32 0.5, %v4433_v54  ;;  %v1879_v25 = vpop.permute.xlu1 %1878 }
 0xa31   : > { %v1887_v56 = vadd.f32 %v1879_v25, %v1863_v11  ;;  %v4439_v43 = vadd.f32 %v1879_v25, %v1864_v19 }
 0xa32   : > { %3452 = vtanh.f32 %v1893_v60 }
 0xa33   : > { %v3445_v39 = vpop.eup %3444  ;;  %v1895_v53 = vmul.f32 0.5, %v1887_v56  ;;  %v1896_v7 = vmul.f32 0.5, %v4439_v43  ;;  %3454 = vtanh.f32 %v1894_v4 }
 0xa34   : > { %v3447_v5 = vpop.eup %3446  ;;  %v1907_v44 = vmul.f32 0.5, %v3445_v39 }
 0xa35   : > { %v3449_v14 = vpop.eup %3448  ;;  %3456 = vtanh.f32 %v1895_v53  ;;  %v1908_v59 = vmul.f32 0.5, %v3447_v5  ;;  %v1935_v41 = vpop.permute.xlu1 %1934 }
 0xa36   : > { %v3451_v58 = vpop.eup %3450  ;;  %3458 = vtanh.f32 %v1896_v7  ;;  %v1915_v36 = vadd.f32 0.5, %v1907_v44  ;;  %v1905_v27 = vmul.f32 0.5, %v3449_v14 }
 0xa37   : > { %v1916_v22 = vadd.f32 0.5, %v1908_v59  ;;  %v1906_v38 = vmul.f32 0.5, %v3451_v58 }
 0xa38   : > { %v4442_v55 = vmul.f32 %v1915_v36, %v1883_v29  ;;  %v1913_v51 = vadd.f32 0.5, %v1905_v27 }
 0xa39   : > { %v4444_v3 = vmul.f32 %v1916_v22, %v1884_v45  ;;  %v1914_v34 = vadd.f32 0.5, %v1906_v38  ;;  %v1939_v36 = vpop.permute.xlu1 %1938 }
 0xa3a   : > { %v1947_v52 = vadd.f32 %v1935_v41, %v4442_v55  ;;  %v4447_v57 = vmul.f32 %v1913_v51, %v1881_v0 }
 0xa3b   : > { %v1948_v30 = vadd.f32 %v1935_v41, %v4444_v3  ;;  %v4450_v50 = vmul.f32 %v1914_v34, %v1882_v20  ;;  %v1943_v41 = vpop.permute.xlu0 %1942 }
 0xa3c   : > { %vm1955_vm11 = vcmp.gt.f32.partialorder %v1947_v52, 0.0  ;;  %vm1963_vm12 = vcmp.lt.f32.partialorder %v1947_v52, 0.0  ;;  %v1945_v15 = vadd.f32 %v1931_v28, %v4447_v57  ;;  %v3453_v46 = vpop.eup %3452 }
 0xa3d   : > { %vm1956_vm13 = vcmp.gt.f32.partialorder %v1948_v30, 0.0  ;;  %vm1964_vm14 = vcmp.lt.f32.partialorder %v1948_v30, 0.0  ;;  %v1971_v29 = vsel %vm1963_vm12, -1.0, %v3615_v24  ;;  %v1946_v45 = vadd.f32 %v1931_v28, %v4450_v50  ;;  %v3455_v18 = vpop.eup %3454 }
 0xa3e   : > { %v1972_v6 = vsel %vm1964_vm14, -1.0, %v3615_v24  ;;  %v4456_v0 = vsel %vm1955_vm11, 1.0, %v1971_v29  ;;  %vm1953_vm15 = vcmp.gt.f32.partialorder %v1945_v15, 0.0  ;;  %vm1961_vm1 = vcmp.lt.f32.partialorder %v1945_v15, 0.0 }
 0xa3f   : > { %v3457_v20 = vpop.eup %3456  ;;  %v4458_v23 = vsel %vm1956_vm13, 1.0, %v1972_v6  ;;  %vm1954_vm10 = vcmp.gt.f32.partialorder %v1946_v45, 0.0  ;;  %vm1962_vm0 = vcmp.lt.f32.partialorder %v1946_v45, 0.0  ;;  %v1969_v9 = vsel %vm1961_vm1, -1.0, %v3615_v24 }
 0xa40   : > { %v3459_v61 = vpop.eup %3458  ;;  %v1970_v11 = vsel %vm1962_vm0, -1.0, %v3615_v24  ;;  %v4462_v19 = vsel %vm1953_vm15, 1.0, %v1969_v9  ;;  %v1911_v60 = vmul.f32 0.5, %v3457_v20  ;;  %v1909_v4 = vmul.f32 0.5, %v3453_v46 }
 0xa41   : > { %v4464_v25 = vsel %vm1954_vm10, 1.0, %v1970_v11  ;;  %v1912_v39 = vmul.f32 0.5, %v3459_v61  ;;  %v1910_v53 = vmul.f32 0.5, %v3455_v18  ;;  %v3223_v7 = vpack.i.bf16 %v4456_v0, %v4462_v19 }
 0xa42   : > { %v1919_v5 = vadd.f32 0.5, %v1911_v60  ;;  %v1917_v44 = vadd.f32 0.5, %v1909_v4  ;;  %v3218_v14 = vpack.i.bf16 %v4458_v23, %v4464_v25  ;;  %v2170_v20 = vpack.c.bf16 %v4458_v23, %v4464_v25 }
 0xa43   : > { %v1920_v59 = vadd.f32 0.5, %v1912_v39  ;;  %v1918_v58 = vadd.f32 0.5, %v1910_v53  ;;  %3224 = vrot.lane.b32.xlu0 %v3223_v7, %s3616_s10  ;;  %v3303_v11 = vpack.i.bf16 %v4458_v23, %v4456_v0  ;;  %v3298_v60 = vpack.i.bf16 %v4464_v25, %v4462_v19  ;;  %v3406_v53 = vld [vmem:[%s4785_s5 + $0x4] ss:$12 sps:$4 sm:$0xff]  }
 0xa44   : > { %v4471_v27 = vmul.f32 %v1919_v5, %v1887_v56  ;;  %v4474_v22 = vmul.f32 %v1917_v44, %v4431_v8  ;;  %3219 = vrot.lane.b32.xlu1 %v3218_v14, %s3616_s10  ;;  %2425 = vmatprep.mubr.bf16.mxu1 %v3406_v53  ;;  %v3632_v5 = vmov 11   ;;  %v3633_v44 = vmov 10  }
 0xa45   : > { %v4478_v38 = vmul.f32 %v1920_v59, %v4439_v43  ;;  %v4481_v51 = vmul.f32 %v1918_v58, %v4433_v54 }
 0xa46   : > { %v1951_v28 = vadd.f32 %v1943_v41, %v4471_v27  ;;  %v1949_v34 = vadd.f32 %v1939_v36, %v4474_v22 }
 0xa47   : > { %v1952_v52 = vadd.f32 %v1943_v41, %v4478_v38  ;;  %v1950_v56 = vadd.f32 %v1939_v36, %v4481_v51 }
 0xa48   : > { %vm1959_vm0 = vcmp.gt.f32.partialorder %v1951_v28, 0.0  ;;  %vm1967_vm11 = vcmp.lt.f32.partialorder %v1951_v28, 0.0  ;;  %vm1957_vm12 = vcmp.gt.f32.partialorder %v1949_v34, 0.0  ;;  %vm1965_vm13 = vcmp.lt.f32.partialorder %v1949_v34, 0.0 }
 0xa49   : > { %vm1960_vm14 = vcmp.gt.f32.partialorder %v1952_v52, 0.0  ;;  %vm1968_vm15 = vcmp.lt.f32.partialorder %v1952_v52, 0.0  ;;  %v1975_v8 = vsel %vm1967_vm11, -1.0, %v3615_v24  ;;  %vm1958_vm1 = vcmp.gt.f32.partialorder %v1950_v56, 0.0 }
 0xa4a   : > { %v1976_v54 = vsel %vm1968_vm15, -1.0, %v3615_v24  ;;  %v4489_v43 = vsel %vm1959_vm0, 1.0, %v1975_v8  ;;  %vm1966_vm10 = vcmp.lt.f32.partialorder %v1950_v56, 0.0  ;;  %v1973_v30 = vsel %vm1965_vm13, -1.0, %v3615_v24 }
 0xa4b   : > { %v4492_v15 = vsel %vm1960_vm14, 1.0, %v1976_v54  ;;  %v1974_v46 = vsel %vm1966_vm10, -1.0, %v3615_v24  ;;  %v4495_v29 = vsel %vm1957_vm12, 1.0, %v1973_v30  ;;  %v2169_v24 = vpack.c.bf16 %v4456_v0, %v4462_v19 }
 0xa4c   : > { %v4497_v45 = vsel %vm1958_vm1, 1.0, %v1974_v46  ;;  %v3238_v18 = vpack.i.bf16 %v4489_v43, %v4495_v29  ;;  %v2171_v61 = vpack.c.bf16 %v4489_v43, %v4495_v29  ;;  %v3308_v4 = vpack.i.bf16 %v4492_v15, %v4489_v43 }
 0xa4d   : > { %v3228_v6 = vpack.i.bf16 %v4492_v15, %v4497_v45  ;;  %v2172_v9 = vpack.c.bf16 %v4492_v15, %v4497_v45  ;;  %v3313_v39 = vpack.i.bf16 %v4497_v45, %v4495_v29 }
 0xa4e   : > { %3239 = vrot.lane.b32.xlu0 %v3238_v18, %s3616_s10 }
 0xa4f   : > { %3229 = vrot.lane.b32.xlu1 %v3228_v6, %s3616_s10  ;;  %s4810_s10 = smov 113  }
 0xa52   : > { %3244 = vrot.lane.b32.xlu0 %v3223_v7, %s3617_s22 }
 0xa53   : > { %3234 = vrot.lane.b32.xlu1 %v3218_v14, %s3617_s22 }
 0xa56   : > { %3259 = vrot.lane.b32.xlu0 %v3238_v18, %s3617_s22 }
 0xa57   : > { %3249 = vrot.lane.b32.xlu1 %v3228_v6, %s3617_s22 }
 0xa5a   : > { %3264 = vrot.lane.b32.xlu0 %v3223_v7, %s3618_s20 }
 0xa5b   : > { %3254 = vrot.lane.b32.xlu1 %v3218_v14, %s3618_s20 }
 0xa5e   : > { %3279 = vrot.lane.b32.xlu0 %v3238_v18, %s3618_s20 }
 0xa5f   : > { %3269 = vrot.lane.b32.xlu1 %v3228_v6, %s3618_s20  ;;  %s4811_s20 = smov 112  }
 0xa62   : > { %3284 = vrot.lane.b32.xlu0 %v3223_v7, %s3619_s30  ;;  %v3631_v7 = vmov 13  }
 0xa63   : > { %3274 = vrot.lane.b32.xlu1 %v3218_v14, %s3619_s30  ;;  %3379 = vset.pattern.permute.xlu0 %v3631_v7  ;;  %v3634_v14 = vmov 12  }
 0xa64   : > { %3378 = vset.pattern.permute.xlu1 %v3631_v7 }
 0xa66   : > { %3294 = vrot.lane.b32.xlu0 %v3238_v18, %s3619_s30 }
 0xa67   : > { %3289 = vrot.lane.b32.xlu1 %v3228_v6, %s3619_s30  ;;  %s4812_s30 = smov 111  }
 0xa6a   : > { %3304 = vrot.lane.b32.xlu0 %v3303_v11, %s3620_s9 }
 0xa6b   : > { %3299 = vrot.lane.b32.xlu1 %v3298_v60, %s3620_s9 }
 0xa6e   : > { %3309 = vrot.lane.b32.xlu0 %v3308_v4, %s3620_s9 }
 0xa6f   : > { %3314 = vrot.lane.b32.xlu1 %v3313_v39, %s3620_s9 }
 0xa72   : > { %3324 = vrot.lane.b32.xlu0 %v3303_v11, %s4810_s10 }
 0xa73   : > { %3319 = vrot.lane.b32.xlu1 %v3298_v60, %s4810_s10 }
 0xa76   : > { %3329 = vrot.lane.b32.xlu0 %v3308_v4, %s4810_s10 }
 0xa77   : > { %3334 = vrot.lane.b32.xlu1 %v3313_v39, %s4810_s10  ;;  %s3534_s10 = scalar_lea.vmem %s4732_s29, 1024 }
 0xa78   : > { %p3535_p6 = scmp.ne.s32.totalorder %s4732_s29, %s3534_s10 }
 0xa7a   : > { %3344 = vrot.lane.b32.xlu0 %v3303_v11, %s4811_s20  ;;  %p3536_p8 = pnand %p3535_p6, %p3768_p12 }
 0xa7b   : > { %3339 = vrot.lane.b32.xlu1 %v3298_v60, %s4811_s20 }
 0xa7c   : > { %p3537_p10 = pneg %p3536_p8 }
 0xa7e   : > { %3354 = vrot.lane.b32.xlu0 %v3308_v4, %s4811_s20 }
 0xa7f   : > { %3349 = vrot.lane.b32.xlu1 %v3313_v39, %s4811_s20  ;;  %s3635_s20 = smov [#allocation7]  }
 0xa82   : > { %3364 = vrot.lane.b32.xlu0 %v3303_v11, %s4812_s30 }
 0xa83   : > { %3359 = vrot.lane.b32.xlu1 %v3298_v60, %s4812_s30 }
 0xa86   : > { %3374 = vrot.lane.b32.xlu0 %v3308_v4, %s4812_s30 }
 0xa87   : > { %3369 = vrot.lane.b32.xlu1 %v3313_v39, %s4812_s30  ;;  %s3538_s30 = sshll.u32 %s3635_s20, 4  ;;  %s3539_s30 = int_to_ptr.vmem [resolvable:$false] %s3538_s30 }
 0xa88   : > { %p3541_p13 = scmp.lt.s32.totalorder %s4732_s29, %s3539_s30 }
 0xa8a   : > { %2504 = vperm.xlu0 %3379, %v4388_v21  }
 0xa8b   : > { %2500 = vperm.xlu1 %3378, %v4394_v2  }
 0xa8e   : > { %3380 = vset.pattern.permute.xlu0 %v3632_v5 }
 0xa8f   : > { %2508 = vperm.xlu1 %3378, %v4400_v42   ;;  %2524 = vperm.xlu0 %3380, %v4394_v2  }
 0xa93   : > { %2512 = vperm.xlu1 %3378, %v4406_v62   ;;  %2536 = vperm.xlu0 %3380, %v4406_v62  }
 0xa97   : > { %3381 = vset.pattern.permute.xlu1 %v3632_v5  ;;  %3383 = vset.pattern.permute.xlu0 %v3633_v44 }
 0xa98   : > { %2528 = vperm.xlu1 %3381, %v4388_v21   ;;  %2560 = vperm.xlu0 %3383, %v4388_v21  }
 0xa9c   : > { %2532 = vperm.xlu1 %3381, %v4400_v42   ;;  %3384 = vset.pattern.permute.xlu0 %v3634_v14 }
 0xa9d   : > { %2588 = vperm.xlu0 %3384, %v4394_v2  }
 0xaa0   : > { %3382 = vset.pattern.permute.xlu1 %v3633_v44 }
 0xaa1   : > { %2556 = vperm.xlu1 %3382, %v4394_v2   ;;  %2600 = vperm.xlu0 %3384, %v4406_v62  }
 0xaa5   : > { %2564 = vperm.xlu1 %3382, %v4400_v42  }
 0xaa9   : > { %2568 = vperm.xlu1 %3382, %v4406_v62  }
 0xaad   : > { %3385 = vset.pattern.permute.xlu1 %v3634_v14 }
 0xaae   : > { %2592 = vperm.xlu1 %3385, %v4388_v21  }
 0xab2   : > { %2596 = vperm.xlu1 %3385, %v4400_v42  }
 0xab5   : > { %v3225_v59 = vpop.permute.xlu0 %3224 }
 0xab6   : > { %v3227_v58 = vunpack.i.h.bf16 %v3225_v59  ;;  %v3226_v36 = vunpack.i.l.bf16 %v3225_v59  ;;  %v3220_v41 = vpop.permute.xlu1 %3219 }
 0xab7   : > { %v3222_v28 = vunpack.i.h.bf16 %v3220_v41  ;;  %v3221_v34 = vunpack.i.l.bf16 %v3220_v41 }
 0xab9   : > { %v2014_v52 = vsel %vm794_vm2, %v3227_v58, %v3222_v28  ;;  %v2026_v56 = vsel %vm794_vm2, %v3222_v28, %v3227_v58  ;;  %v2013_v8 = vsel %vm794_vm2, %v3226_v36, %v3221_v34  ;;  %v2025_v54 = vsel %vm794_vm2, %v3221_v34, %v3226_v36 }
 0xaba   : > { %v2029_v30 = vpack.c.bf16 %v2026_v56, %v2025_v54  ;;  %v2030_v46 = vpack.c.bf16 %v2014_v52, %v2013_v8 }
 0xabc   : > { %v2034_v2 = vmul.bf16 %v2030_v46, %v4095_v32  ;;  %v2033_v18 = vmul.bf16 %v2029_v30, %v4098_v33 }
 0xabe   : > { %2393 = vmatprep.subr.bf16.mxu1 %v2034_v2 }
 0xabf   : > { %2394 = vmatpush1.bf16.msra.mxu1 %v2033_v18 }
 0xac0   : > { %v3240_v6 = vpop.permute.xlu0 %3239 }
 0xac1   : > { %v3242_v11 = vunpack.i.h.bf16 %v3240_v6  ;;  %v3241_v60 = vunpack.i.l.bf16 %v3240_v6  ;;  %v3230_v4 = vpop.permute.xlu1 %3229 }
 0xac2   : > { %v3232_v39 = vunpack.i.h.bf16 %v3230_v4  ;;  %v3231_v53 = vunpack.i.l.bf16 %v3230_v4 }
 0xac4   : > { %v2016_v7 = vsel %vm794_vm2, %v3242_v11, %v3232_v39  ;;  %v2028_v5 = vsel %vm794_vm2, %v3232_v39, %v3242_v11  ;;  %v2015_v44 = vsel %vm794_vm2, %v3241_v60, %v3231_v53  ;;  %v2027_v59 = vsel %vm794_vm2, %v3231_v53, %v3241_v60  ;;  %v3245_v62 = vpop.permute.xlu0 %3244 }
 0xac5   : > { %v2031_v58 = vpack.c.bf16 %v2028_v5, %v2027_v59  ;;  %v3247_v36 = vunpack.i.h.bf16 %v3245_v62  ;;  %v3246_v41 = vunpack.i.l.bf16 %v3245_v62  ;;  %v3235_v28 = vpop.permute.xlu1 %3234  ;;  %v2032_v34 = vpack.c.bf16 %v2016_v7, %v2015_v44 }
 0xac6   : > { %v3237_v52 = vunpack.i.h.bf16 %v3235_v28  ;;  %v3236_v14 = vunpack.i.l.bf16 %v3235_v28  ;;  %vm4813_vm2 = vcmask 261120  }
 0xac7   : > { %v2036_v21 = vmul.bf16 %v2032_v34, %v4095_v32  ;;  %v2035_v56 = vmul.bf16 %v2031_v58, %v4098_v33 }
 0xac8   : > { %v2058_v8 = vsel %vm858_vm3, %v3247_v36, %v3237_v52  ;;  %v2070_v54 = vsel %vm858_vm3, %v3237_v52, %v3247_v36  ;;  %v2057_v30 = vsel %vm858_vm3, %v3246_v41, %v3236_v14  ;;  %v2069_v46 = vsel %vm858_vm3, %v3236_v14, %v3246_v41  ;;  %v3260_v2 = vpop.permute.xlu0 %3259 }
 0xac9   : > { %v2073_v18 = vpack.c.bf16 %v2070_v54, %v2069_v46  ;;  %v3262_v6 = vunpack.i.h.bf16 %v3260_v2  ;;  %v3261_v11 = vunpack.i.l.bf16 %v3260_v2  ;;  %v3250_v60 = vpop.permute.xlu1 %3249  ;;  %2395 = vmatprep.subr.bf16.mxu1 %v2036_v21  ;;  %v2074_v4 = vpack.c.bf16 %v2058_v8, %v2057_v30 }
 0xaca   : > { %v3252_v42 = vunpack.i.h.bf16 %v3250_v60  ;;  %v3251_v39 = vunpack.i.l.bf16 %v3250_v60  ;;  %2396 = vmatpush1.bf16.msra.mxu1 %v2035_v56 }
 0xacb   : > { %v2078_v32 = vmul.bf16 %v2074_v4, %v4119_v31  ;;  %v2077_v33 = vmul.bf16 %v2073_v18, %v4127_v16 }
 0xacc   : > { %v2060_v53 = vsel %vm858_vm3, %v3262_v6, %v3252_v42  ;;  %v2072_v7 = vsel %vm858_vm3, %v3252_v42, %v3262_v6  ;;  %v2059_v5 = vsel %vm858_vm3, %v3261_v11, %v3251_v39  ;;  %v2071_v44 = vsel %vm858_vm3, %v3251_v39, %v3261_v11  ;;  %v3265_v59 = vpop.permute.xlu0 %3264  ;;  %vm4814_vm3 = vmmov %vm4813_vm2 }
 0xacd   : > { %v2075_v62 = vpack.c.bf16 %v2072_v7, %v2071_v44  ;;  %v3267_v58 = vunpack.i.h.bf16 %v3265_v59  ;;  %v3266_v36 = vunpack.i.l.bf16 %v3265_v59  ;;  %v3255_v41 = vpop.permute.xlu1 %3254  ;;  %2397 = vmatprep.subr.bf16.mxu1 %v2078_v32  ;;  %v2076_v28 = vpack.c.bf16 %v2060_v53, %v2059_v5 }
 0xace   : > { %v3257_v34 = vunpack.i.h.bf16 %v3255_v41  ;;  %v3256_v52 = vunpack.i.l.bf16 %v3255_v41  ;;  %2398 = vmatpush1.bf16.msra.mxu1 %v2077_v33 }
 0xacf   : > { %v2080_v14 = vmul.bf16 %v2076_v28, %v4119_v31  ;;  %v2079_v21 = vmul.bf16 %v2075_v62, %v4127_v16 }
 0xad0   : > { %v2102_v56 = vsel %vm917_vm4, %v3267_v58, %v3257_v34  ;;  %v2114_v8 = vsel %vm917_vm4, %v3257_v34, %v3267_v58  ;;  %v2101_v54 = vsel %vm917_vm4, %v3266_v36, %v3256_v52  ;;  %v2113_v30 = vsel %vm917_vm4, %v3256_v52, %v3266_v36  ;;  %v3280_v46 = vpop.permute.xlu0 %3279 }
 0xad1   : > { %v2117_v2 = vpack.c.bf16 %v2114_v8, %v2113_v30  ;;  %v3282_v18 = vunpack.i.h.bf16 %v3280_v46  ;;  %v3281_v6 = vunpack.i.l.bf16 %v3280_v46  ;;  %v3270_v11 = vpop.permute.xlu1 %3269  ;;  %2399 = vmatprep.subr.bf16.mxu1 %v2080_v14  ;;  %v2118_v60 = vpack.c.bf16 %v2102_v56, %v2101_v54 }
 0xad2   : > { %v3272_v4 = vunpack.i.h.bf16 %v3270_v11  ;;  %v3271_v42 = vunpack.i.l.bf16 %v3270_v11  ;;  %2400 = vmatpush1.bf16.msra.mxu1 %v2079_v21 }
 0xad3   : > { %v2122_v31 = vmul.bf16 %v2118_v60, %v4152_v26  ;;  %v2121_v16 = vmul.bf16 %v2117_v2, %v4159_v48 }
 0xad4   : > { %v2104_v39 = vsel %vm917_vm4, %v3282_v18, %v3272_v4  ;;  %v2116_v32 = vsel %vm917_vm4, %v3272_v4, %v3282_v18  ;;  %v2103_v33 = vsel %vm917_vm4, %v3281_v6, %v3271_v42  ;;  %v2115_v53 = vsel %vm917_vm4, %v3271_v42, %v3281_v6  ;;  %v3285_v7 = vpop.permute.xlu0 %3284 }
 0xad5   : > { %v2119_v5 = vpack.c.bf16 %v2116_v32, %v2115_v53  ;;  %v3287_v44 = vunpack.i.h.bf16 %v3285_v7  ;;  %v3286_v59 = vunpack.i.l.bf16 %v3285_v7  ;;  %v3275_v62 = vpop.permute.xlu1 %3274  ;;  %2401 = vmatprep.subr.bf16.mxu1 %v2122_v31  ;;  %v2120_v58 = vpack.c.bf16 %v2104_v39, %v2103_v33 }
 0xad6   : > { %v3277_v36 = vunpack.i.h.bf16 %v3275_v62  ;;  %v3276_v41 = vunpack.i.l.bf16 %v3275_v62  ;;  %2402 = vmatpush1.bf16.msra.mxu1 %v2121_v16 }
 0xad7   : > { %v2124_v28 = vmul.bf16 %v2120_v58, %v4152_v26  ;;  %v2123_v34 = vmul.bf16 %v2119_v5, %v4159_v48 }
 0xad8   : > { %v2146_v52 = vsel %vm981_vm5, %v3287_v44, %v3277_v36  ;;  %v2158_v14 = vsel %vm981_vm5, %v3277_v36, %v3287_v44  ;;  %v2145_v21 = vsel %vm981_vm5, %v3286_v59, %v3276_v41  ;;  %v2157_v56 = vsel %vm981_vm5, %v3276_v41, %v3286_v59  ;;  %v3295_v8 = vpop.permute.xlu0 %3294 }
 0xad9   : > { %v2161_v54 = vpack.c.bf16 %v2158_v14, %v2157_v56  ;;  %v3297_v30 = vunpack.i.h.bf16 %v3295_v8  ;;  %v3296_v46 = vunpack.i.l.bf16 %v3295_v8  ;;  %v3290_v2 = vpop.permute.xlu1 %3289  ;;  %2403 = vmatprep.subr.bf16.mxu1 %v2124_v28  ;;  %v2162_v18 = vpack.c.bf16 %v2146_v52, %v2145_v21 }
 0xada   : > { %v3292_v6 = vunpack.i.h.bf16 %v3290_v2  ;;  %v3291_v11 = vunpack.i.l.bf16 %v3290_v2  ;;  %2404 = vmatpush1.bf16.msra.mxu1 %v2123_v34 }
 0xadb   : > { %v2166_v26 = vmul.bf16 %v2162_v18, %v4178_v40  ;;  %v2165_v48 = vmul.bf16 %v2161_v54, %v4183_v49 }
 0xadc   : > { %v2148_v60 = vsel %vm981_vm5, %v3297_v30, %v3292_v6  ;;  %v2160_v4 = vsel %vm981_vm5, %v3292_v6, %v3297_v30  ;;  %v2147_v42 = vsel %vm981_vm5, %v3296_v46, %v3291_v11  ;;  %v2159_v31 = vsel %vm981_vm5, %v3291_v11, %v3296_v46  ;;  %v3305_v16 = vpop.permute.xlu0 %3304 }
 0xadd   : > { %v2163_v39 = vpack.c.bf16 %v2160_v4, %v2159_v31  ;;  %v3307_v32 = vunpack.i.h.bf16 %v3305_v16  ;;  %v3306_v33 = vunpack.i.l.bf16 %v3305_v16  ;;  %v3300_v53 = vpop.permute.xlu1 %3299  ;;  %2405 = vmatprep.subr.bf16.mxu1 %v2166_v26  ;;  %v2164_v7 = vpack.c.bf16 %v2148_v60, %v2147_v42 }
 0xade   : > { %v3302_v5 = vunpack.i.h.bf16 %v3300_v53  ;;  %v3301_v44 = vunpack.i.l.bf16 %v3300_v53  ;;  %2406 = vmatpush1.bf16.msra.mxu1 %v2165_v48 }
 0xadf   : > { %v2168_v59 = vmul.bf16 %v2164_v7, %v4178_v40  ;;  %v2167_v62 = vmul.bf16 %v2163_v39, %v4183_v49  ;;  %v2206_v36 = vsel %vm1040_vm6, %v3307_v32, %v3306_v33  ;;  %v2190_v49 = vsel %vm1040_vm6, %v3306_v33, %v3307_v32 }
 0xae0   : > { %v3310_v58 = vpop.permute.xlu0 %3309  ;;  %v2205_v41 = vsel %vm1040_vm6, %v3302_v5, %v3301_v44  ;;  %v2189_v8 = vsel %vm1040_vm6, %v3301_v44, %v3302_v5 }
 0xae1   : > { %v3315_v28 = vpop.permute.xlu1 %3314  ;;  %2407 = vmatprep.subr.bf16.mxu1 %v2168_v59  ;;  %v3312_v34 = vunpack.i.h.bf16 %v3310_v58  ;;  %v3311_v52 = vunpack.i.l.bf16 %v3310_v58  ;;  %v2210_v40 = vpack.c.bf16 %v2206_v36, %v2205_v41  ;;  %v2209_v23 = vpack.c.bf16 %v2190_v49, %v2189_v8 }
 0xae2   : > { %v3317_v14 = vunpack.i.h.bf16 %v3315_v28  ;;  %v3316_v21 = vunpack.i.l.bf16 %v3315_v28  ;;  %2408 = vmatpush1.bf16.msra.mxu1 %v2167_v62 }
 0xae3   : > { %2409 = vmatprep.subr.bf16.mxu1 %v2170_v20  ;;  %v2208_v2 = vsel %vm1040_vm6, %v3312_v34, %v3311_v52  ;;  %v2192_v25 = vsel %vm1040_vm6, %v3311_v52, %v3312_v34  ;;  %v2214_v26 = vmul.bf16 %v2210_v40, %v4206_v10  ;;  %v2213_v39 = vmul.bf16 %v2209_v23, %v4222_v47 }
 0xae4   : > { %v3325_v56 = vpop.permute.xlu0 %3324  ;;  %v2207_v18 = vsel %vm1040_vm6, %v3317_v14, %v3316_v21  ;;  %v2191_v48 = vsel %vm1040_vm6, %v3316_v21, %v3317_v14 }
 0xae5   : > { %v3327_v54 = vunpack.i.h.bf16 %v3325_v56  ;;  %v3326_v30 = vunpack.i.l.bf16 %v3325_v56  ;;  %v3320_v46 = vpop.permute.xlu1 %3319  ;;  %v2212_v31 = vpack.c.bf16 %v2208_v2, %v2207_v18  ;;  %v2211_v15 = vpack.c.bf16 %v2192_v25, %v2191_v48 }
 0xae6   : > { %v3322_v6 = vunpack.i.h.bf16 %v3320_v46  ;;  %v3321_v11 = vunpack.i.l.bf16 %v3320_v46  ;;  %2410 = vmatpush1.bf16.msra.mxu1 %v2169_v24 }
 0xae7   : > { %2411 = vmatprep.subr.bf16.mxu1 %v2172_v9  ;;  %v2250_v60 = vsel %vm1106_vm7, %v3327_v54, %v3326_v30  ;;  %v2234_v45 = vsel %vm1106_vm7, %v3326_v30, %v3327_v54  ;;  %v2216_v44 = vmul.bf16 %v2212_v31, %v4206_v10  ;;  %v2215_v41 = vmul.bf16 %v2211_v15, %v4222_v47 }
 0xae8   : > { %v3330_v20 = vpop.permute.xlu0 %3329  ;;  %v2249_v4 = vsel %vm1106_vm7, %v3322_v6, %v3321_v11  ;;  %v2233_v33 = vsel %vm1106_vm7, %v3321_v11, %v3322_v6 }
 0xae9   : > { %v3335_v42 = vpop.permute.xlu1 %3334  ;;  %v3332_v0 = vunpack.i.h.bf16 %v3330_v20  ;;  %v3331_v19 = vunpack.i.l.bf16 %v3330_v20  ;;  %v2254_v32 = vpack.c.bf16 %v2250_v60, %v2249_v4  ;;  %v2253_v62 = vpack.c.bf16 %v2234_v45, %v2233_v33 }
 0xaea   : > { %v3337_v24 = vunpack.i.h.bf16 %v3335_v42  ;;  %v3336_v16 = vunpack.i.l.bf16 %v3335_v42  ;;  %2412 = vmatpush1.bf16.msra.mxu1 %v2171_v61 }
 0xaeb   : > { %2413 = vmatprep.subr.bf16.mxu1 %v2214_v26  ;;  %v2252_v59 = vsel %vm1106_vm7, %v3332_v0, %v3331_v19  ;;  %v2236_v58 = vsel %vm1106_vm7, %v3331_v19, %v3332_v0  ;;  %v2258_v28 = vmul.bf16 %v2254_v32, %v4232_v17  ;;  %v2257_v46 = vmul.bf16 %v2253_v62, %v4241_v12 }
 0xaec   : > { %v3345_v9 = vpop.permute.xlu0 %3344  ;;  %v2251_v43 = vsel %vm1106_vm7, %v3337_v24, %v3336_v16  ;;  %v2235_v34 = vsel %vm1106_vm7, %v3336_v16, %v3337_v24 }
 0xaed   : > { %v3347_v53 = vunpack.i.h.bf16 %v3345_v9  ;;  %v3346_v7 = vunpack.i.l.bf16 %v3345_v9  ;;  %v3340_v5 = vpop.permute.xlu1 %3339  ;;  %v2256_v21 = vpack.c.bf16 %v2252_v59, %v2251_v43  ;;  %v2255_v54 = vpack.c.bf16 %v2236_v58, %v2235_v34  ;;  %v3407_v34 = vld [vmem:[%s4785_s5 + $0x1c] ss:$12 sps:$4 sm:$0xff]  }
 0xaee   : > { %v3342_v29 = vunpack.i.h.bf16 %v3340_v5  ;;  %v3341_v61 = vunpack.i.l.bf16 %v3340_v5  ;;  %2414 = vmatpush1.bf16.msra.mxu1 %v2213_v39 }
 0xaef   : > { %2415 = vmatprep.subr.bf16.mxu1 %v2216_v44  ;;  %v2294_v10 = vsel %vm1170_vm8, %v3347_v53, %v3346_v7  ;;  %v2278_v30 = vsel %vm1170_vm8, %v3346_v7, %v3347_v53  ;;  %v2260_v25 = vmul.bf16 %v2256_v21, %v4232_v17  ;;  %v2259_v0 = vmul.bf16 %v2255_v54, %v4241_v12  ;;  %v3409_v21 = vld [vmem:[%s4785_s5 + $0x18] ss:$12 sps:$4 sm:$0xff]  }
 0xaf0   : > { %v3355_v36 = vpop.permute.xlu0 %3354  ;;  %v2293_v52 = vsel %vm1170_vm8, %v3342_v29, %v3341_v61  ;;  %v2277_v18 = vsel %vm1170_vm8, %v3341_v61, %v3342_v29 }
 0xaf1   : > { %v3350_v14 = vpop.permute.xlu1 %3349  ;;  %v3357_v56 = vunpack.i.h.bf16 %v3355_v36  ;;  %v3356_v40 = vunpack.i.l.bf16 %v3355_v36  ;;  %v2298_v2 = vpack.c.bf16 %v2294_v10, %v2293_v52  ;;  %v2297_v4 = vpack.c.bf16 %v2278_v30, %v2277_v18 }
 0xaf2   : > { %v3352_v49 = vunpack.i.h.bf16 %v3350_v14  ;;  %v3351_v8 = vunpack.i.l.bf16 %v3350_v14  ;;  %2416 = vmatpush1.bf16.msra.mxu1 %v2215_v41 }
 0xaf3   : > { %2417 = vmatprep.subr.bf16.mxu1 %v2258_v28  ;;  %v2296_v20 = vsel %vm1170_vm8, %v3357_v56, %v3356_v40  ;;  %v2280_v42 = vsel %vm1170_vm8, %v3356_v40, %v3357_v56  ;;  %v2302_v19 = vmul.bf16 %v2298_v2, %v4253_v63  ;;  %v2301_v7 = vmul.bf16 %v2297_v4, %v4262_v1  ;;  %v3410_v56 = vld [vmem:[%s4785_s5 + $0x8] ss:$12 sps:$4 sm:$0xff]  }
 0xaf4   : > { %v3365_v47 = vpop.permute.xlu0 %3364  ;;  %v2295_v26 = vsel %vm1170_vm8, %v3352_v49, %v3351_v8  ;;  %v2279_v24 = vsel %vm1170_vm8, %v3351_v8, %v3352_v49 }
 0xaf5   : > { %v3367_v6 = vunpack.i.h.bf16 %v3365_v47  ;;  %v3366_v11 = vunpack.i.l.bf16 %v3365_v47  ;;  %v3360_v23 = vpop.permute.xlu1 %3359  ;;  %v2300_v45 = vpack.c.bf16 %v2296_v20, %v2295_v26  ;;  %v2299_v53 = vpack.c.bf16 %v2280_v42, %v2279_v24 }
 0xaf6   : > { %v3362_v48 = vunpack.i.h.bf16 %v3360_v23  ;;  %v3361_v60 = vunpack.i.l.bf16 %v3360_v23  ;;  %2418 = vmatpush1.bf16.msra.mxu1 %v2257_v46 }
 0xaf7   : > { %2419 = vmatprep.subr.bf16.mxu1 %v2260_v25  ;;  %v2338_v17 = vsel %vm1229_vm9, %v3367_v6, %v3366_v11  ;;  %v2322_v12 = vsel %vm1229_vm9, %v3366_v11, %v3367_v6  ;;  %v2304_v44 = vmul.bf16 %v2300_v45, %v4253_v63  ;;  %v2303_v62 = vmul.bf16 %v2299_v53, %v4262_v1  ;;  %v3404_v63 = vld [vmem:[%s4785_s5] ss:$12 sps:$4 sm:$0xff]  }
 0xaf8   : > { %v3375_v31 = vpop.permute.xlu0 %3374  ;;  %v2337_v16 = vsel %vm1229_vm9, %v3362_v48, %v3361_v60  ;;  %v2321_v5 = vsel %vm1229_vm9, %v3361_v60, %v3362_v48 }
 0xaf9   : > { %v3370_v15 = vpop.permute.xlu1 %3369  ;;  %v3377_v9 = vunpack.i.h.bf16 %v3375_v31  ;;  %v3376_v39 = vunpack.i.l.bf16 %v3375_v31  ;;  %v2342_v59 = vpack.c.bf16 %v2338_v17, %v2337_v16  ;;  %v2341_v61 = vpack.c.bf16 %v2322_v12, %v2321_v5 }
 0xafa   : > { %v3372_v32 = vunpack.i.h.bf16 %v3370_v15  ;;  %v3371_v33 = vunpack.i.l.bf16 %v3370_v15  ;;  %2420 = vmatpush1.bf16.msra.mxu1 %v2259_v0 }
 0xafb   : > { %2421 = vmatprep.subr.bf16.mxu1 %v2302_v19  ;;  %v2340_v43 = vsel %vm1229_vm9, %v3377_v9, %v3376_v39  ;;  %v2324_v58 = vsel %vm1229_vm9, %v3376_v39, %v3377_v9  ;;  %v2346_v41 = vmul.bf16 %v2342_v59, %v4272_v35  ;;  %v2345_v1 = vmul.bf16 %v2341_v61, %v4281_v37 }
 0xafc   : > { %v2339_v29 = vsel %vm1229_vm9, %v3372_v32, %v3371_v33  ;;  %v2323_v36 = vsel %vm1229_vm9, %v3371_v33, %v3372_v32 }
 0xafd   : > { %v2344_v28 = vpack.c.bf16 %v2340_v43, %v2339_v29  ;;  %v2343_v10 = vpack.c.bf16 %v2324_v58, %v2323_v36 }
 0xafe   : > { %2422 = vmatpush1.bf16.msra.mxu1 %v2301_v7 }
 0xaff   : > { %2423 = vmatprep.subr.bf16.mxu1 %v2304_v44  ;;  %v2348_v52 = vmul.bf16 %v2344_v28, %v4272_v35  ;;  %v2347_v14 = vmul.bf16 %v2343_v10, %v4281_v37  ;;  %v3411_v35 = vld [vmem:[%s4785_s5 + $0x20] ss:$12 sps:$4 sm:$0xff]  }
 0xb02   : > { %2424 = vmatpush1.bf16.msra.mxu1 %v2303_v62 }
 0xb03   : > { %2446 = vmatprep.subr.bf16.mxu1 %v2346_v41 }
 0xb05   : > { %2426 = vmatmul.mubr.bf16.vlgmr.msra.gmra.mrb[8].mxu1 %v3404_v63 }
 0xb06   : > { %2447 = vmatpush1.bf16.msra.mxu1 %v2345_v1  ;;  %2435 = vmatprep.mubr.bf16.mxu1 %v3407_v34  ;;  %v3468_v34 = vld [vmem:[%s3822_s11] sm:$0xff] }
 0xb07   : > { %2448 = vmatprep.subr.bf16.mxu1 %v2348_v52 }
 0xb09   : > { %v2505_v54 = vpop.permute.xlu0 %2504 }
 0xb0a   : > { %2449 = vmatpush1.bf16.msra.mxu1 %v2347_v14  ;;  %v2501_v37 = vpop.permute.xlu1 %2500 }
 0xb0d   : > { %2436 = vmatmul.mubr.bf16.gmra.mrb[12].mxu1 %v3409_v21 }
 0xb0e   : > { %2478 = vmatprep.mubr.bf16.mxu1 %v3612_v13  ;;  %v2509_v40 = vpop.permute.xlu1 %2508  ;;  %v2525_v47 = vpop.permute.xlu0 %2524 }
 0xb12   : > { %v2513_v49 = vpop.permute.xlu1 %2512  ;;  %v2537_v2 = vpop.permute.xlu0 %2536 }
 0xb15   : > { %2797 = vmatmul.mubr.msk.bf16.vlgmr.msra.gmra.mrb[8].mxu1 %vm4813_vm2, %v3410_v56 }
 0xb16   : > { %2488 = vmatprep.mubr.bf16.mxu1 %v3612_v13 }
 0xb17   : > { %v2529_v8 = vpop.permute.xlu1 %2528  ;;  %v2561_v6 = vpop.permute.xlu0 %2560 }
 0xb1b   : > { %v2533_v30 = vpop.permute.xlu1 %2532 }
 0xb1c   : > { %v2589_v24 = vpop.permute.xlu0 %2588 }
 0xb1d   : > { %2798 = vmatmul.mubr.msk.bf16.gmra.mrb[12].mxu1 %vm4814_vm3, %v3411_v35 }
 0xb20   : > { %v2557_v46 = vpop.permute.xlu1 %2556 }
 0xb24   : > { %v4695_v18 = vpop.permute.xlu1 %2564 }
 0xb28   : > { %v2569_v48 = vpop.permute.xlu1 %2568 }
 0xb2d   : > { %v2593_v9 = vpop.permute.xlu1 %2592 }
 0xbe8   : > { %v2480_v11 = vpop.f32.mrb[8].mxu1 }
 0xbe9   : > { %v2515_v13 = vmul.f32 %v2501_v37, %v2480_v11  ;;  %v2482_v23 = vpop.f32.mrb[9].mxu1 }
 0xbea   : > { %v2516_v25 = vmul.f32 %v2501_v37, %v2482_v23  ;;  %v2484_v20 = vpop.f32.mrb[10].mxu1 }
 0xbeb   : > { %v2539_v26 = vadd.f32 %v2525_v47, %v2515_v13  ;;  %v2517_v60 = vmul.f32 %v2505_v54, %v2484_v20  ;;  %v2486_v4 = vpop.f32.mrb[11].mxu1 }
 0xbec   : > { %v2540_v42 = vadd.f32 %v2525_v47, %v2516_v25  ;;  %v2518_v31 = vmul.f32 %v2505_v54, %v2486_v4 }
 0xbed   : > { %v2571_v0 = vmul.f32 %v2557_v46, %v2539_v26  ;;  %v2541_v19 = vadd.f32 %v2529_v8, %v2517_v60  ;;  %vm2547_vm4 = vcmp.ge.f32.partialorder %v2539_v26, 0.0 }
 0xbee   : > { %v2572_v17 = vmul.f32 %v2557_v46, %v2540_v42  ;;  %v2542_v16 = vadd.f32 %v2529_v8, %v2518_v31  ;;  %vm2548_vm5 = vcmp.ge.f32.partialorder %v2540_v42, 0.0  ;;  %v3471_v8 = vld [vmem:[%s3822_s11 + $0x18] sm:$0xff] }
 0xbef   : > { %v2573_v15 = vmul.f32 %v2561_v6, %v2541_v19  ;;  %v2579_v45 = vsel %vm2547_vm4, %v2539_v26, %v2571_v0  ;;  %vm2549_vm6 = vcmp.ge.f32.partialorder %v2541_v19, 0.0  ;;  %v3473_v0 = vld [vmem:[%s3822_s11 + $0x30] sm:$0xff] }
 0xbf0   : > { %v2574_v39 = vmul.f32 %v2561_v6, %v2542_v16  ;;  %v2580_v32 = vsel %vm2548_vm5, %v2540_v42, %v2572_v17  ;;  %v2603_v33 = vadd.f32 %v2589_v24, %v2579_v45  ;;  %v2490_v53 = vpop.f32.mrb[12].mxu1  ;;  %vm2550_vm7 = vcmp.ge.f32.partialorder %v2542_v16, 0.0  ;;  %v3472_v42 = vld [vmem:[%s3822_s11 + $0x20] sm:$0xff] }
 0xbf1   : > { %v2604_v7 = vadd.f32 %v2589_v24, %v2580_v32  ;;  %v2519_v12 = vmul.f32 %v2509_v40, %v2490_v53  ;;  %v2581_v5 = vsel %vm2549_vm6, %v2541_v19, %v2573_v15  ;;  %v2492_v44 = vpop.f32.mrb[13].mxu1  ;;  %v3474_v24 = vld [vmem:[%s3822_s11 + $0x28] sm:$0xff] }
 0xbf2   : > { %v2611_v59 = vadd.f32 %v2603_v33, %v4447_v57  ;;  %v2582_v43 = vsel %vm2550_vm7, %v2542_v16, %v2574_v39  ;;  %v2605_v29 = vadd.f32 %v2593_v9, %v2581_v5  ;;  %v2520_v61 = vmul.f32 %v2509_v40, %v2492_v44  ;;  %v2494_v62 = vpop.f32.mrb[14].mxu1  ;;  %v3469_v57 = vld [vmem:[%s3822_s11 + $0x8] sm:$0xff]  ;;  %v2597_v40 = vpop.permute.xlu1 %2596 }
 0xbf3   : > { %v2612_v58 = vadd.f32 %v2604_v7, %v4450_v50  ;;  %v2543_v36 = vadd.f32 %v2533_v30, %v2519_v12  ;;  %v2606_v41 = vadd.f32 %v2593_v9, %v2582_v43  ;;  %v2521_v63 = vmul.f32 %v2513_v49, %v2494_v62  ;;  %v2496_v28 = vpop.f32.mrb[15].mxu1  ;;  %v3470_v50 = vld [vmem:[%s3822_s11 + $0x10] sm:$0xff] }
 0xbf4   : > { %v2619_v10 = vadd.f32 %v3468_v34, %v2611_v59  ;;  %v2613_v1 = vadd.f32 %v2605_v29, %v4442_v55  ;;  %v2544_v52 = vadd.f32 %v2533_v30, %v2520_v61  ;;  %v2522_v14 = vmul.f32 %v2513_v49, %v2496_v28 }
 0xbf5   : > { %v2620_v21 = vadd.f32 %v3469_v57, %v2612_v58  ;;  %v2614_v56 = vadd.f32 %v2606_v41, %v4444_v3  ;;  %v2545_v35 = vadd.f32 %v2537_v2, %v2521_v63  ;;  %vm2551_vm8 = vcmp.ge.f32.partialorder %v2543_v36, 0.0 }
 0xbf6   : > { %2627 = vst [vmem:[%s4705_s17] sm:$0xff] %v2619_v10  ;;  %v2621_v37 = vadd.f32 %v3470_v50, %v2613_v1  ;;  %v2546_v55 = vadd.f32 %v2537_v2, %v2522_v14  ;;  %vm2552_vm9 = vcmp.ge.f32.partialorder %v2544_v52, 0.0  ;;  %v2575_v49 = vmul.f32 %v4695_v18, %v2543_v36  ;;  %v2601_v2 = vpop.permute.xlu0 %2600 }
 0xbf7   : > { %2628 = vst [vmem:[%s4705_s17 + $0x8] sm:$0xff] %v2620_v21  ;;  %v2622_v3 = vadd.f32 %v3471_v8, %v2614_v56  ;;  %vm2553_vm0 = vcmp.ge.f32.partialorder %v2545_v35, 0.0  ;;  %v2577_v54 = vmul.f32 %v2569_v48, %v2545_v35  ;;  %v2576_v30 = vmul.f32 %v4695_v18, %v2544_v52 }
 0xbf8   : > { %2629 = vst [vmem:[%s4705_s17 + $0x10] sm:$0xff] %v2621_v37  ;;  %vm2554_vm11 = vcmp.ge.f32.partialorder %v2546_v55, 0.0  ;;  %v2578_v47 = vmul.f32 %v2569_v48, %v2546_v55  ;;  %v2583_v46 = vsel %vm2551_vm8, %v2543_v36, %v2575_v49 }
 0xbf9   : > { %2630 = vst [vmem:[%s4705_s17 + $0x18] sm:$0xff] %v2622_v3  ;;  %v2585_v6 = vsel %vm2553_vm0, %v2545_v35, %v2577_v54  ;;  %v2584_v11 = vsel %vm2552_vm9, %v2544_v52, %v2576_v30  ;;  %v2607_v13 = vadd.f32 %v2597_v40, %v2583_v46 }
 0xbfa   : > { %v2586_v23 = vsel %vm2554_vm11, %v2546_v55, %v2578_v47  ;;  %v2609_v25 = vadd.f32 %v2601_v2, %v2585_v6  ;;  %v2608_v20 = vadd.f32 %v2597_v40, %v2584_v11 }
 0xbfb   : > { %v2610_v26 = vadd.f32 %v2601_v2, %v2586_v23  ;;  %v2615_v18 = vadd.f32 %v2607_v13, %v4474_v22 }
 0xbfc   : > { %v2617_v48 = vadd.f32 %v2609_v25, %v4471_v27  ;;  %v2616_v60 = vadd.f32 %v2608_v20, %v4481_v51  ;;  %v3475_v27 = vld [vmem:[%s3822_s11 + $0x38] sm:$0xff]  ;;  %s3540_s11 = scalar_lea.vmem %s3539_s30, 2048 }
 0xbfd   : > { %v2618_v4 = vadd.f32 %v2610_v26, %v4478_v38  ;;  %v2623_v31 = vadd.f32 %v3472_v42, %v2615_v18  ;;  %p3542_p3 = scmp.lt.s32.totalorder %s3540_s11, %s3534_s10 }
 0xbfe   : > { %v2625_v19 = vadd.f32 %v3473_v0, %v2617_v48  ;;  %v2624_v17 = vadd.f32 %v3474_v24, %v2616_v60 }
 0xbff   : > { %v2626_v22 = vadd.f32 %v3475_v27, %v2618_v4  ;;  %2631 = vst [vmem:[%s4705_s17 + $0x20] sm:$0xff] %v2623_v31  ;;  %p3543_p7 = por %p3542_p3, %p3541_p13 }
 0xc00   : > { %2633 = vst [vmem:[%s4705_s17 + $0x30] sm:$0xff] %v2625_v19  ;;  %2632 = vst [vmem:[%s4705_s17 + $0x28] sm:$0xff] %v2624_v17 }
 0xc01   : > { %2634 = vst [vmem:[%s4705_s17 + $0x38] sm:$0xff] %v2626_v22  ;;  %p3544_p9 = pnand %p3543_p7, %p3537_p10 }
 0xc03   : > { %3547 = shalt.err (!%p3544_p9)
}
 0xc04   : > { %s3548_s9 = scalar_lea.hbm %s4728_s14, 1024  ;;  %s3552_s21 = scalar_lea.hbm %s4787_s7, 2048 }
 0xc05   : > { %p3549_p2 = scmp.ne.s32.totalorder %s4728_s14, %s3548_s9  ;;  %p3553_p11 = scmp.lt.u32.totalorder %s4728_s14, %s4787_s7 }
 0xc06   : > { %p3554_p1 = scmp.lt.u32.totalorder %s3552_s21, %s3548_s9  ;;  %p3556_p6 = scmp.lt.u32.totalorder %s3548_s9, %s4728_s14 }
 0xc07   : > { %p3550_p0 = pnand %p3549_p2, %p3768_p12 }
 0xc08   : > { %p3555_p4 = por %p3554_p1, %p3553_p11 }
 0xc09   : > { %p3551_p5 = pneg %p3550_p0 }
 0xc0a   : > { %p3557_p8 = por %p3556_p6, %p3555_p4 }
 0xc0c   : > { %p3558_p10 = pnand %p3557_p8, %p3551_p5 }
 0xc0e   : > { %3561 = shalt.err (!%p3558_p10)
}
 0xc0f   : > { %s3636_s10 = smov 256  }
 0xc10   : > { %2949 = dma.vmem_to_hbm [thread:$0]  (%p3768_p12), %s4732_s29, 1024, %s4728_s14, %s2636_s15, %s3636_s10, %s3636_s10, %s3617_s22  }
 0xc11 PF: > { %s2664_s20 = sand.u32 1, %s3592_s24   ;;  %p4816_p13 = scmp.ne.s32.totalorder %s4800_s8, 0 }
 0xc12   : > { %p4817_p3 = scmp.ge.s32.totalorder %s3604_s27, 2  ;;  %s2665_s30 = scalar_lea.sflag [#allocation4], %s2664_s20 }
 0xc14   : > { %p2960_p7 = pnand %p4817_p3, %p4816_p13 }
 0xc16   : > { %3587 = dma.done.wait (!%p2960_p7), %s2665_s30, 1024  }
 0xc17   : > { %3589 = vsyncadd (!%p2960_p7), %s2665_s30, 4294966272  ;;  %p21_p9 = scmp.ge.s32.totalorder %s3733_s13, 4   ;;  %s4818_s24 = smov %s3596_s25 }
 0xc18   : > { %s4819_s25 = smov %s3600_s26  ;;  %s4820_s26 = smov %s3764_s18 }
 0xc19   : > { %s4821_s27 = smov %s3733_s13  ;;  %23 = sbr.rel (!%p21_p9) target bundleno = 6 (0x6), region = 100 }
 0xc20   :  { %2670 = vsyncpa [#allocation3], 1 }
 0xc21   :  { %2672 = vsyncpa [#allocation3 + $0x1], 1 }
 0xc22   :  { %2673 = vsyncpa [#allocation6], 1 }
 0xc23   :  { %2674 = vsyncpa [#allocation4], 1 }
 0xc24   :  { %2676 = vsyncpa [#allocation4 + $0x1], 1 }

</bundles_post_ra>
